<compile_context>
chip_gen: v5e
topology: v5e:2x2
jax: 0.10.0
libtpu: 0.0.40
codegen_flags: <defaults>
</compile_context>

<pallas_src>
import functools

import jax
import jax.numpy as jnp
from jax import lax
from jax.experimental import pallas as pl
from jax.experimental.pallas import tpu as pltpu

KSIZE = 7
PAD = 3
EPS = 1e-5                                  # nn.BatchNorm2d default eps
VMEM_LIMIT_BYTES = 32 * 1024 * 1024
BLOCK_BYTES_BUDGET = 8 * 1024 * 1024        # target resident block bytes (incl. 2x dbl-buffer)


def _lane_roll(x, shift):
    """Roll along the last (lane) axis; skip the XLU op when shift == 0."""
    if shift == 0:
        return x
    return pltpu.roll(x, shift=shift, axis=1)


def _pool_conv_kernel(w_ref, b_ref, masks_ref, x1_ref, x2_ref, f1_ref, *, H, W):
    """Channel max/mean pooling + Conv2d(2,1,7,pad=3) in flat (TB, H*W) layout."""
    TB, C, HW = x1_ref.shape

    f = x1_ref[...] - x2_ref[...]                       # (TB, C, HW), lane-dense
    pooled = (jnp.max(f, axis=1),                       # torch.max(f, dim=1)[0]
              jnp.sum(f, axis=1) * (1.0 / C))           # torch.mean(f, dim=1)

    masks = masks_ref[...]                              # (2*KSIZE, HW) 0/1 f32

    # out[p] += w[c,kh,kw] * pooled_c[p + (kh-3)*W + (kw-3)], where the H/W
    # validity masks zero taps that fall outside the image (zero padding).
    # The (c, kh) row shift is hoisted; the 7 kw shifts reuse it via pltpu.roll.
    # TODO(synk): for much larger H*W tiles, switch the kh loop to
    # lax.fori_loop (kw unrolled) with a VMEM scratch accumulator.
    acc = jnp.full((TB, HW), b_ref[0], dtype=jnp.float32)
    for c in range(2):
        for kh in range(KSIZE):
            dh = kh - PAD
            hmask = masks[kh:kh + 1]                                   # (1, HW)
            row = _lane_roll(pooled[c], (-dh * W) % HW) * hmask        # (TB, HW)
            for kw in range(KSIZE):
                dw = kw - PAD
                wgt = w_ref[c * KSIZE * KSIZE + kh * KSIZE + kw]       # SMEM scalar
                wmask = masks[KSIZE + kw:KSIZE + kw + 1]               # (1, HW)
                acc = acc + wgt * (_lane_roll(row, (-dw) % HW) * wmask)
    f1_ref[...] = acc


def _bn_residual_kernel(ss_ref, x1_ref, x2_ref, f1_ref, out_r_ref, out_i_ref):
    """BatchNorm affine apply (precomputed scale/shift) + the two residual adds."""
    f1 = f1_ref[...] * ss_ref[0] + ss_ref[1]            # (TB, HW)
    f1 = f1[:, None, :]                                 # broadcast over channels
    out_r_ref[...] = x1_ref[...] + f1
    out_i_ref[...] = x2_ref[...] + f1


def _pick_tile(n, bytes_per_unit, budget=BLOCK_BYTES_BUDGET):
    """Largest divisor of n keeping resident blocks under budget.

    Candidates are restricted to d == n or d % 8 == 0 so blocks whose
    second-to-last dim is the tile obey the TPU (8, 128) tiling rule.
    """
    cands = [d for d in range(1, n + 1) if n % d == 0 and (d == n or d % 8 == 0)]
    fits = [d for d in cands if d * bytes_per_unit <= budget]
    return max(fits) if fits else min(cands)


def sam_module(x1, x2, conv_w, conv_b, gamma, beta):
    """x1, x2: (B, C, H, W) f32. conv_w: (1, 2, 7, 7). conv_b/gamma/beta: (1,)."""
    B, C, H, W = x1.shape
    HW = H * W

    # Lane-dense views of the big tensors: last dim H*W maps onto the 128 lanes.
    x1f = x1.reshape(B, C, HW).astype(jnp.float32)
    x2f = x2.reshape(B, C, HW).astype(jnp.float32)

    w_flat = conv_w.reshape(-1).astype(jnp.float32)     # (2*7*7,) -> SMEM scalars
    bias = conv_b.reshape(-1).astype(jnp.float32)       # (1,)

    # 0/1 validity masks for the 7 vertical / 7 horizontal conv shifts
    # (pure shape geometry, computed once).
    pos = jnp.arange(HW, dtype=jnp.int32)
    h_idx, w_idx = pos // W, pos % W
    hmasks = jnp.stack([(h_idx + d >= 0) & (h_idx + d < H)
                        for d in range(-PAD, PAD + 1)])
    wmasks = jnp.stack([(w_idx + d >= 0) & (w_idx + d < W)
                        for d in range(-PAD, PAD + 1)])
    masks = jnp.concatenate([hmasks, wmasks], axis=0).astype(jnp.float32)  # (14, HW)

    # ---------------- pass 1: pooling + conv(+bias) -> f1_raw (B, HW) --------
    # TODO(synk): pass 1 keeps the full channel dim in one block (needed for the
    # channel max/mean); extremely large C would need a C-tiled running max/sum.
    tb1 = _pick_tile(B, 8 * (2 * C * HW + HW))          # f32 bytes x 2 (dbl buffer)
    cost1 = pl.CostEstimate(
        flops=int(B * HW * (3 * C + 4 * 2 * KSIZE * KSIZE)),
        transcendentals=0,
        bytes_accessed=int(4 * (2 * B * C * HW + B * HW + masks.size + w_flat.size + 1)))
    f1_raw = pl.pallas_call(
        functools.partial(_pool_conv_kernel, H=H, W=W),
        out_shape=jax.ShapeDtypeStruct((B, HW), jnp.float32),
        grid=(B // tb1,),
        in_specs=[
            pl.BlockSpec(memory_space=pltpu.MemorySpace.SMEM),       # conv weights (98,)
            pl.BlockSpec(memory_space=pltpu.MemorySpace.SMEM),       # conv bias (1,)
            pl.BlockSpec((2 * KSIZE, HW), lambda i: (0, 0)),         # shift masks
            pl.BlockSpec((tb1, C, HW), lambda i: (i, 0, 0)),         # x1
            pl.BlockSpec((tb1, C, HW), lambda i: (i, 0, 0)),         # x2
        ],
        out_specs=pl.BlockSpec((tb1, HW), lambda i: (i, 0)),
        compiler_params=pltpu.CompilerParams(
            dimension_semantics=("parallel",),
            vmem_limit_bytes=VMEM_LIMIT_BYTES),
        cost_estimate=cost1,
    )(w_flat, bias, masks, x1f, x2f)

    # ------ BatchNorm2d(1) batch statistics (training mode, biased var) ------
    # Global batch stats couple every batch tile, so this tiny reduction over
    # the single-channel (B, HW) conv output runs in XLA between the passes.
    mean = jnp.mean(f1_raw)
    var = jnp.mean(jnp.square(f1_raw - mean))
    scale = gamma.reshape(()).astype(jnp.float32) * lax.rsqrt(var + EPS)
    shift = beta.reshape(()).astype(jnp.float32) - mean * scale
    scale_shift = jnp.stack([scale, shift])             # (2,) SMEM scalars
    # TODO(synk): BatchNorm running_mean/var buffer updates (a training-mode
    # side effect) are not emulated; they do not affect this forward's outputs.

    # -------- pass 2: BN apply + residual adds, in place over x1 / x2 --------
    tb2 = _pick_tile(B, 8 * (4 * C * HW + HW))
    tc2 = _pick_tile(C, 8 * (4 * tb2 * HW))
    cost2 = pl.CostEstimate(
        flops=int(2 * B * C * HW + 2 * B * HW),
        transcendentals=0,
        bytes_accessed=int(4 * (4 * B * C * HW + B * HW + 2)))
    out_r, out_i = pl.pallas_call(
        _bn_residual_kernel,
        out_shape=(jax.ShapeDtypeStruct((B, C, HW), jnp.float32),
                   jax.ShapeDtypeStruct((B, C, HW), jnp.float32)),
        grid=(B // tb2, C // tc2),
        in_specs=[
            pl.BlockSpec(memory_space=pltpu.MemorySpace.SMEM),       # (scale, shift)
            pl.BlockSpec((tb2, tc2, HW), lambda i, j: (i, j, 0)),    # x1
            pl.BlockSpec((tb2, tc2, HW), lambda i, j: (i, j, 0)),    # x2
            pl.BlockSpec((tb2, HW), lambda i, j: (i, 0)),            # f1_raw
        ],
        out_specs=(pl.BlockSpec((tb2, tc2, HW), lambda i, j: (i, j, 0)),
                   pl.BlockSpec((tb2, tc2, HW), lambda i, j: (i, j, 0))),
        input_output_aliases={1: 0, 2: 1},   # out_r reuses x1's buffer, out_i x2's
        compiler_params=pltpu.CompilerParams(
            dimension_semantics=("parallel", "parallel"),
            vmem_limit_bytes=VMEM_LIMIT_BYTES),
        cost_estimate=cost2,
    )(scale_shift, x1f, x2f, f1_raw)

    return out_r.reshape(B, C, H, W), out_i.reshape(B, C, H, W)


def sam_reference(x1, x2, conv_w, conv_b, gamma, beta):
    """Pure-JAX reference mirroring the PyTorch forward (training-mode BN)."""
    f = x1 - x2
    max_pool = jnp.max(f, axis=1, keepdims=True)
    avg_pool = jnp.mean(f, axis=1, keepdims=True)
    pooled = jnp.concatenate([max_pool, avg_pool], axis=1)
    f1 = lax.conv_general_dilated(pooled, conv_w, (1, 1), [(PAD, PAD), (PAD, PAD)],
                                  dimension_numbers=("NCHW", "OIHW", "NCHW"))
    f1 = f1 + conv_b.reshape(1, -1, 1, 1)
    mean = jnp.mean(f1, axis=(0, 2, 3), keepdims=True)
    var = jnp.mean((f1 - mean) ** 2, axis=(0, 2, 3), keepdims=True)
    f1 = (f1 - mean) / jnp.sqrt(var + EPS) * gamma.reshape(1, -1, 1, 1) \
         + beta.reshape(1, -1, 1, 1)
    return x1 + f1, x2 + f1


if __name__ == "__main__":
    B, C, H, W = 2, 4, 16, 16

    key = jax.random.PRNGKey(0)
    k1, k2, kw, kb = jax.random.split(key, 4)

    x1 = jax.random.normal(k1, (B, C, H, W), jnp.float32)
    x2 = jax.random.normal(k2, (B, C, H, W), jnp.float32)

    # Conv2d(2, 1, 7) / BatchNorm2d(1) parameter shapes, deterministic init.
    fan_in = 2 * KSIZE * KSIZE
    bound = 1.0 / (fan_in ** 0.5)
    conv_w = jax.random.uniform(kw, (1, 2, KSIZE, KSIZE), jnp.float32, -bound, bound)
    conv_b = jax.random.uniform(kb, (1,), jnp.float32, -bound, bound)
    gamma = jnp.ones((1,), jnp.float32)     # BatchNorm2d default weight
    beta = jnp.zeros((1,), jnp.float32)     # BatchNorm2d default bias

    out_r, out_i = sam_module(x1, x2, conv_w, conv_b, gamma, beta)
    jax.block_until_ready((out_r, out_i))

    ref_r, ref_i = sam_reference(x1, x2, conv_w, conv_b, gamma, beta)
    assert jnp.allclose(out_r, ref_r, atol=1e-3, rtol=1e-3), "out_r mismatch"
    assert jnp.allclose(out_i, ref_i, atol=1e-3, rtol=1e-3), "out_i mismatch"

    print("KERNEL_OK")
</pallas_src>

<mosaic_0001>
module attributes {stable_mosaic.version = 11 : i64} {
  func.func @_pool_conv_kernel(%arg0: i32, %arg1: memref<98xf32, #tpu.memory_space<smem>>, %arg2: memref<1xf32, #tpu.memory_space<smem>>, %arg3: memref<14x256xf32, #tpu.memory_space<vmem>>, %arg4: memref<2x4x256xf32, #tpu.memory_space<vmem>>, %arg5: memref<2x4x256xf32, #tpu.memory_space<vmem>>, %arg6: memref<2x256xf32, #tpu.memory_space<vmem>>) attributes {dimension_semantics = [#tpu.dimension_semantics<parallel>], iteration_bounds = array<i64: 1>, scalar_prefetch = 0 : i64, scratch_operands = 0 : i64, tpu.core_type = #tpu.core_type<tc>, window_params = [{transform_indices = @transform_0, window_bounds = array<i64: 98>}, {transform_indices = @transform_1, window_bounds = array<i64: 1>}, {pipeline_mode = #tpu.pipeline_mode<synchronous>, transform_indices = @transform_2, window_bounds = array<i64: 14, 256>}, {transform_indices = @transform_3, window_bounds = array<i64: 2, 4, 256>}, {transform_indices = @transform_4, window_bounds = array<i64: 2, 4, 256>}, {transform_indices = @transform_5, window_bounds = array<i64: 2, 256>}]} {
    %c0 = arith.constant 0 : index
    %c0_0 = arith.constant 0 : index
    %c0_1 = arith.constant 0 : index
    %0 = vector.load %arg4[%c0, %c0_0, %c0_1] : memref<2x4x256xf32, #tpu.memory_space<vmem>>, vector<2x4x256xf32>
    %c0_2 = arith.constant 0 : index
    %c0_3 = arith.constant 0 : index
    %c0_4 = arith.constant 0 : index
    %1 = vector.load %arg5[%c0_2, %c0_3, %c0_4] : memref<2x4x256xf32, #tpu.memory_space<vmem>>, vector<2x4x256xf32>
    %2 = arith.subf %0, %1 : vector<2x4x256xf32>
    %cst = arith.constant dense<0xFF800000> : vector<2x256xf32>
    %3 = vector.multi_reduction <maximumf>, %2, %cst [1] : vector<2x4x256xf32> to vector<2x256xf32>
    %cst_5 = arith.constant dense<0.000000e+00> : vector<2x256xf32>
    %4 = vector.multi_reduction <add>, %2, %cst_5 [1] : vector<2x4x256xf32> to vector<2x256xf32>
    %cst_6 = arith.constant 2.500000e-01 : f32
    %5 = vector.broadcast %cst_6 : f32 to vector<2x256xf32>
    %6 = arith.mulf %4, %5 : vector<2x256xf32>
    %c0_7 = arith.constant 0 : index
    %c0_8 = arith.constant 0 : index
    %7 = vector.load %arg3[%c0_7, %c0_8] : memref<14x256xf32, #tpu.memory_space<vmem>>, vector<14x256xf32>
    %c0_9 = arith.constant 0 : index
    %8 = memref.load %arg2[%c0_9] : memref<1xf32, #tpu.memory_space<smem>>
    %9 = vector.broadcast %8 : f32 to vector<2x256xf32>
    %10 = vector.extract_strided_slice %7 {offsets = [0, 0], sizes = [1, 256], strides = [1, 1]} : vector<14x256xf32> to vector<1x256xf32>
    %c48_i32 = arith.constant 48 : i32
    %11 = tpu.dynamic_rotate %3 by %c48_i32 dim 1 : vector<2x256xf32>, i32 -> vector<2x256xf32>
    %12 = vector.broadcast %10 : vector<1x256xf32> to vector<2x256xf32>
    %13 = arith.mulf %11, %12 : vector<2x256xf32>
    %c0_10 = arith.constant 0 : index
    %14 = memref.load %arg1[%c0_10] : memref<98xf32, #tpu.memory_space<smem>>
    %15 = vector.extract_strided_slice %7 {offsets = [7, 0], sizes = [1, 256], strides = [1, 1]} : vector<14x256xf32> to vector<1x256xf32>
    %c3_i32 = arith.constant 3 : i32
    %16 = tpu.dynamic_rotate %13 by %c3_i32 dim 1 : vector<2x256xf32>, i32 -> vector<2x256xf32>
    %17 = vector.broadcast %15 : vector<1x256xf32> to vector<2x256xf32>
    %18 = arith.mulf %16, %17 : vector<2x256xf32>
    %19 = vector.broadcast %14 : f32 to vector<2x256xf32>
    %20 = arith.mulf %19, %18 : vector<2x256xf32>
    %21 = arith.addf %9, %20 : vector<2x256xf32>
    %c1 = arith.constant 1 : index
    %22 = memref.load %arg1[%c1] : memref<98xf32, #tpu.memory_space<smem>>
    %23 = vector.extract_strided_slice %7 {offsets = [8, 0], sizes = [1, 256], strides = [1, 1]} : vector<14x256xf32> to vector<1x256xf32>
    %c2_i32 = arith.constant 2 : i32
    %24 = tpu.dynamic_rotate %13 by %c2_i32 dim 1 : vector<2x256xf32>, i32 -> vector<2x256xf32>
    %25 = vector.broadcast %23 : vector<1x256xf32> to vector<2x256xf32>
    %26 = arith.mulf %24, %25 : vector<2x256xf32>
    %27 = vector.broadcast %22 : f32 to vector<2x256xf32>
    %28 = arith.mulf %27, %26 : vector<2x256xf32>
    %29 = arith.addf %21, %28 : vector<2x256xf32>
    %c2 = arith.constant 2 : index
    %30 = memref.load %arg1[%c2] : memref<98xf32, #tpu.memory_space<smem>>
    %31 = vector.extract_strided_slice %7 {offsets = [9, 0], sizes = [1, 256], strides = [1, 1]} : vector<14x256xf32> to vector<1x256xf32>
    %c1_i32 = arith.constant 1 : i32
    %32 = tpu.dynamic_rotate %13 by %c1_i32 dim 1 : vector<2x256xf32>, i32 -> vector<2x256xf32>
    %33 = vector.broadcast %31 : vector<1x256xf32> to vector<2x256xf32>
    %34 = arith.mulf %32, %33 : vector<2x256xf32>
    %35 = vector.broadcast %30 : f32 to vector<2x256xf32>
    %36 = arith.mulf %35, %34 : vector<2x256xf32>
    %37 = arith.addf %29, %36 : vector<2x256xf32>
    %c3 = arith.constant 3 : index
    %38 = memref.load %arg1[%c3] : memref<98xf32, #tpu.memory_space<smem>>
    %39 = vector.extract_strided_slice %7 {offsets = [10, 0], sizes = [1, 256], strides = [1, 1]} : vector<14x256xf32> to vector<1x256xf32>
    %40 = vector.broadcast %39 : vector<1x256xf32> to vector<2x256xf32>
    %41 = arith.mulf %13, %40 : vector<2x256xf32>
    %42 = vector.broadcast %38 : f32 to vector<2x256xf32>
    %43 = arith.mulf %42, %41 : vector<2x256xf32>
    %44 = arith.addf %37, %43 : vector<2x256xf32>
    %c4 = arith.constant 4 : index
    %45 = memref.load %arg1[%c4] : memref<98xf32, #tpu.memory_space<smem>>
    %46 = vector.extract_strided_slice %7 {offsets = [11, 0], sizes = [1, 256], strides = [1, 1]} : vector<14x256xf32> to vector<1x256xf32>
    %c255_i32 = arith.constant 255 : i32
    %47 = tpu.dynamic_rotate %13 by %c255_i32 dim 1 : vector<2x256xf32>, i32 -> vector<2x256xf32>
    %48 = vector.broadcast %46 : vector<1x256xf32> to vector<2x256xf32>
    %49 = arith.mulf %47, %48 : vector<2x256xf32>
    %50 = vector.broadcast %45 : f32 to vector<2x256xf32>
    %51 = arith.mulf %50, %49 : vector<2x256xf32>
    %52 = arith.addf %44, %51 : vector<2x256xf32>
    %c5 = arith.constant 5 : index
    %53 = memref.load %arg1[%c5] : memref<98xf32, #tpu.memory_space<smem>>
    %54 = vector.extract_strided_slice %7 {offsets = [12, 0], sizes = [1, 256], strides = [1, 1]} : vector<14x256xf32> to vector<1x256xf32>
    %c254_i32 = arith.constant 254 : i32
    %55 = tpu.dynamic_rotate %13 by %c254_i32 dim 1 : vector<2x256xf32>, i32 -> vector<2x256xf32>
    %56 = vector.broadcast %54 : vector<1x256xf32> to vector<2x256xf32>
    %57 = arith.mulf %55, %56 : vector<2x256xf32>
    %58 = vector.broadcast %53 : f32 to vector<2x256xf32>
    %59 = arith.mulf %58, %57 : vector<2x256xf32>
    %60 = arith.addf %52, %59 : vector<2x256xf32>
    %c6 = arith.constant 6 : index
    %61 = memref.load %arg1[%c6] : memref<98xf32, #tpu.memory_space<smem>>
    %62 = vector.extract_strided_slice %7 {offsets = [13, 0], sizes = [1, 256], strides = [1, 1]} : vector<14x256xf32> to vector<1x256xf32>
    %c253_i32 = arith.constant 253 : i32
    %63 = tpu.dynamic_rotate %13 by %c253_i32 dim 1 : vector<2x256xf32>, i32 -> vector<2x256xf32>
    %64 = vector.broadcast %62 : vector<1x256xf32> to vector<2x256xf32>
    %65 = arith.mulf %63, %64 : vector<2x256xf32>
    %66 = vector.broadcast %61 : f32 to vector<2x256xf32>
    %67 = arith.mulf %66, %65 : vector<2x256xf32>
    %68 = arith.addf %60, %67 : vector<2x256xf32>
    %69 = vector.extract_strided_slice %7 {offsets = [1, 0], sizes = [1, 256], strides = [1, 1]} : vector<14x256xf32> to vector<1x256xf32>
    %c32_i32 = arith.constant 32 : i32
    %70 = tpu.dynamic_rotate %3 by %c32_i32 dim 1 : vector<2x256xf32>, i32 -> vector<2x256xf32>
    %71 = vector.broadcast %69 : vector<1x256xf32> to vector<2x256xf32>
    %72 = arith.mulf %70, %71 : vector<2x256xf32>
    %c7 = arith.constant 7 : index
    %73 = memref.load %arg1[%c7] : memref<98xf32, #tpu.memory_space<smem>>
    %74 = vector.extract_strided_slice %7 {offsets = [7, 0], sizes = [1, 256], strides = [1, 1]} : vector<14x256xf32> to vector<1x256xf32>
    %c3_i32_11 = arith.constant 3 : i32
    %75 = tpu.dynamic_rotate %72 by %c3_i32_11 dim 1 : vector<2x256xf32>, i32 -> vector<2x256xf32>
    %76 = vector.broadcast %74 : vector<1x256xf32> to vector<2x256xf32>
    %77 = arith.mulf %75, %76 : vector<2x256xf32>
    %78 = vector.broadcast %73 : f32 to vector<2x256xf32>
    %79 = arith.mulf %78, %77 : vector<2x256xf32>
    %80 = arith.addf %68, %79 : vector<2x256xf32>
    %c8 = arith.constant 8 : index
    %81 = memref.load %arg1[%c8] : memref<98xf32, #tpu.memory_space<smem>>
    %82 = vector.extract_strided_slice %7 {offsets = [8, 0], sizes = [1, 256], strides = [1, 1]} : vector<14x256xf32> to vector<1x256xf32>
    %c2_i32_12 = arith.constant 2 : i32
    %83 = tpu.dynamic_rotate %72 by %c2_i32_12 dim 1 : vector<2x256xf32>, i32 -> vector<2x256xf32>
    %84 = vector.broadcast %82 : vector<1x256xf32> to vector<2x256xf32>
    %85 = arith.mulf %83, %84 : vector<2x256xf32>
    %86 = vector.broadcast %81 : f32 to vector<2x256xf32>
    %87 = arith.mulf %86, %85 : vector<2x256xf32>
    %88 = arith.addf %80, %87 : vector<2x256xf32>
    %c9 = arith.constant 9 : index
    %89 = memref.load %arg1[%c9] : memref<98xf32, #tpu.memory_space<smem>>
    %90 = vector.extract_strided_slice %7 {offsets = [9, 0], sizes = [1, 256], strides = [1, 1]} : vector<14x256xf32> to vector<1x256xf32>
    %c1_i32_13 = arith.constant 1 : i32
    %91 = tpu.dynamic_rotate %72 by %c1_i32_13 dim 1 : vector<2x256xf32>, i32 -> vector<2x256xf32>
    %92 = vector.broadcast %90 : vector<1x256xf32> to vector<2x256xf32>
    %93 = arith.mulf %91, %92 : vector<2x256xf32>
    %94 = vector.broadcast %89 : f32 to vector<2x256xf32>
    %95 = arith.mulf %94, %93 : vector<2x256xf32>
    %96 = arith.addf %88, %95 : vector<2x256xf32>
    %c10 = arith.constant 10 : index
    %97 = memref.load %arg1[%c10] : memref<98xf32, #tpu.memory_space<smem>>
    %98 = vector.extract_strided_slice %7 {offsets = [10, 0], sizes = [1, 256], strides = [1, 1]} : vector<14x256xf32> to vector<1x256xf32>
    %99 = vector.broadcast %98 : vector<1x256xf32> to vector<2x256xf32>
    %100 = arith.mulf %72, %99 : vector<2x256xf32>
    %101 = vector.broadcast %97 : f32 to vector<2x256xf32>
    %102 = arith.mulf %101, %100 : vector<2x256xf32>
    %103 = arith.addf %96, %102 : vector<2x256xf32>
    %c11 = arith.constant 11 : index
    %104 = memref.load %arg1[%c11] : memref<98xf32, #tpu.memory_space<smem>>
    %105 = vector.extract_strided_slice %7 {offsets = [11, 0], sizes = [1, 256], strides = [1, 1]} : vector<14x256xf32> to vector<1x256xf32>
    %c255_i32_14 = arith.constant 255 : i32
    %106 = tpu.dynamic_rotate %72 by %c255_i32_14 dim 1 : vector<2x256xf32>, i32 -> vector<2x256xf32>
    %107 = vector.broadcast %105 : vector<1x256xf32> to vector<2x256xf32>
    %108 = arith.mulf %106, %107 : vector<2x256xf32>
    %109 = vector.broadcast %104 : f32 to vector<2x256xf32>
    %110 = arith.mulf %109, %108 : vector<2x256xf32>
    %111 = arith.addf %103, %110 : vector<2x256xf32>
    %c12 = arith.constant 12 : index
    %112 = memref.load %arg1[%c12] : memref<98xf32, #tpu.memory_space<smem>>
    %113 = vector.extract_strided_slice %7 {offsets = [12, 0], sizes = [1, 256], strides = [1, 1]} : vector<14x256xf32> to vector<1x256xf32>
    %c254_i32_15 = arith.constant 254 : i32
    %114 = tpu.dynamic_rotate %72 by %c254_i32_15 dim 1 : vector<2x256xf32>, i32 -> vector<2x256xf32>
    %115 = vector.broadcast %113 : vector<1x256xf32> to vector<2x256xf32>
    %116 = arith.mulf %114, %115 : vector<2x256xf32>
    %117 = vector.broadcast %112 : f32 to vector<2x256xf32>
    %118 = arith.mulf %117, %116 : vector<2x256xf32>
    %119 = arith.addf %111, %118 : vector<2x256xf32>
    %c13 = arith.constant 13 : index
    %120 = memref.load %arg1[%c13] : memref<98xf32, #tpu.memory_space<smem>>
    %121 = vector.extract_strided_slice %7 {offsets = [13, 0], sizes = [1, 256], strides = [1, 1]} : vector<14x256xf32> to vector<1x256xf32>
    %c253_i32_16 = arith.constant 253 : i32
    %122 = tpu.dynamic_rotate %72 by %c253_i32_16 dim 1 : vector<2x256xf32>, i32 -> vector<2x256xf32>
    %123 = vector.broadcast %121 : vector<1x256xf32> to vector<2x256xf32>
    %124 = arith.mulf %122, %123 : vector<2x256xf32>
    %125 = vector.broadcast %120 : f32 to vector<2x256xf32>
    %126 = arith.mulf %125, %124 : vector<2x256xf32>
    %127 = arith.addf %119, %126 : vector<2x256xf32>
    %128 = vector.extract_strided_slice %7 {offsets = [2, 0], sizes = [1, 256], strides = [1, 1]} : vector<14x256xf32> to vector<1x256xf32>
    %c16_i32 = arith.constant 16 : i32
    %129 = tpu.dynamic_rotate %3 by %c16_i32 dim 1 : vector<2x256xf32>, i32 -> vector<2x256xf32>
    %130 = vector.broadcast %128 : vector<1x256xf32> to vector<2x256xf32>
    %131 = arith.mulf %129, %130 : vector<2x256xf32>
    %c14 = arith.constant 14 : index
    %132 = memref.load %arg1[%c14] : memref<98xf32, #tpu.memory_space<smem>>
    %133 = vector.extract_strided_slice %7 {offsets = [7, 0], sizes = [1, 256], strides = [1, 1]} : vector<14x256xf32> to vector<1x256xf32>
    %c3_i32_17 = arith.constant 3 : i32
    %134 = tpu.dynamic_rotate %131 by %c3_i32_17 dim 1 : vector<2x256xf32>, i32 -> vector<2x256xf32>
    %135 = vector.broadcast %133 : vector<1x256xf32> to vector<2x256xf32>
    %136 = arith.mulf %134, %135 : vector<2x256xf32>
    %137 = vector.broadcast %132 : f32 to vector<2x256xf32>
    %138 = arith.mulf %137, %136 : vector<2x256xf32>
    %139 = arith.addf %127, %138 : vector<2x256xf32>
    %c15 = arith.constant 15 : index
    %140 = memref.load %arg1[%c15] : memref<98xf32, #tpu.memory_space<smem>>
    %141 = vector.extract_strided_slice %7 {offsets = [8, 0], sizes = [1, 256], strides = [1, 1]} : vector<14x256xf32> to vector<1x256xf32>
    %c2_i32_18 = arith.constant 2 : i32
    %142 = tpu.dynamic_rotate %131 by %c2_i32_18 dim 1 : vector<2x256xf32>, i32 -> vector<2x256xf32>
    %143 = vector.broadcast %141 : vector<1x256xf32> to vector<2x256xf32>
    %144 = arith.mulf %142, %143 : vector<2x256xf32>
    %145 = vector.broadcast %140 : f32 to vector<2x256xf32>
    %146 = arith.mulf %145, %144 : vector<2x256xf32>
    %147 = arith.addf %139, %146 : vector<2x256xf32>
    %c16 = arith.constant 16 : index
    %148 = memref.load %arg1[%c16] : memref<98xf32, #tpu.memory_space<smem>>
    %149 = vector.extract_strided_slice %7 {offsets = [9, 0], sizes = [1, 256], strides = [1, 1]} : vector<14x256xf32> to vector<1x256xf32>
    %c1_i32_19 = arith.constant 1 : i32
    %150 = tpu.dynamic_rotate %131 by %c1_i32_19 dim 1 : vector<2x256xf32>, i32 -> vector<2x256xf32>
    %151 = vector.broadcast %149 : vector<1x256xf32> to vector<2x256xf32>
    %152 = arith.mulf %150, %151 : vector<2x256xf32>
    %153 = vector.broadcast %148 : f32 to vector<2x256xf32>
    %154 = arith.mulf %153, %152 : vector<2x256xf32>
    %155 = arith.addf %147, %154 : vector<2x256xf32>
    %c17 = arith.constant 17 : index
    %156 = memref.load %arg1[%c17] : memref<98xf32, #tpu.memory_space<smem>>
    %157 = vector.extract_strided_slice %7 {offsets = [10, 0], sizes = [1, 256], strides = [1, 1]} : vector<14x256xf32> to vector<1x256xf32>
    %158 = vector.broadcast %157 : vector<1x256xf32> to vector<2x256xf32>
    %159 = arith.mulf %131, %158 : vector<2x256xf32>
    %160 = vector.broadcast %156 : f32 to vector<2x256xf32>
    %161 = arith.mulf %160, %159 : vector<2x256xf32>
    %162 = arith.addf %155, %161 : vector<2x256xf32>
    %c18 = arith.constant 18 : index
    %163 = memref.load %arg1[%c18] : memref<98xf32, #tpu.memory_space<smem>>
    %164 = vector.extract_strided_slice %7 {offsets = [11, 0], sizes = [1, 256], strides = [1, 1]} : vector<14x256xf32> to vector<1x256xf32>
    %c255_i32_20 = arith.constant 255 : i32
    %165 = tpu.dynamic_rotate %131 by %c255_i32_20 dim 1 : vector<2x256xf32>, i32 -> vector<2x256xf32>
    %166 = vector.broadcast %164 : vector<1x256xf32> to vector<2x256xf32>
    %167 = arith.mulf %165, %166 : vector<2x256xf32>
    %168 = vector.broadcast %163 : f32 to vector<2x256xf32>
    %169 = arith.mulf %168, %167 : vector<2x256xf32>
    %170 = arith.addf %162, %169 : vector<2x256xf32>
    %c19 = arith.constant 19 : index
    %171 = memref.load %arg1[%c19] : memref<98xf32, #tpu.memory_space<smem>>
    %172 = vector.extract_strided_slice %7 {offsets = [12, 0], sizes = [1, 256], strides = [1, 1]} : vector<14x256xf32> to vector<1x256xf32>
    %c254_i32_21 = arith.constant 254 : i32
    %173 = tpu.dynamic_rotate %131 by %c254_i32_21 dim 1 : vector<2x256xf32>, i32 -> vector<2x256xf32>
    %174 = vector.broadcast %172 : vector<1x256xf32> to vector<2x256xf32>
    %175 = arith.mulf %173, %174 : vector<2x256xf32>
    %176 = vector.broadcast %171 : f32 to vector<2x256xf32>
    %177 = arith.mulf %176, %175 : vector<2x256xf32>
    %178 = arith.addf %170, %177 : vector<2x256xf32>
    %c20 = arith.constant 20 : index
    %179 = memref.load %arg1[%c20] : memref<98xf32, #tpu.memory_space<smem>>
    %180 = vector.extract_strided_slice %7 {offsets = [13, 0], sizes = [1, 256], strides = [1, 1]} : vector<14x256xf32> to vector<1x256xf32>
    %c253_i32_22 = arith.constant 253 : i32
    %181 = tpu.dynamic_rotate %131 by %c253_i32_22 dim 1 : vector<2x256xf32>, i32 -> vector<2x256xf32>
    %182 = vector.broadcast %180 : vector<1x256xf32> to vector<2x256xf32>
    %183 = arith.mulf %181, %182 : vector<2x256xf32>
    %184 = vector.broadcast %179 : f32 to vector<2x256xf32>
    %185 = arith.mulf %184, %183 : vector<2x256xf32>
    %186 = arith.addf %178, %185 : vector<2x256xf32>
    %187 = vector.extract_strided_slice %7 {offsets = [3, 0], sizes = [1, 256], strides = [1, 1]} : vector<14x256xf32> to vector<1x256xf32>
    %188 = vector.broadcast %187 : vector<1x256xf32> to vector<2x256xf32>
    %189 = arith.mulf %3, %188 : vector<2x256xf32>
    %c21 = arith.constant 21 : index
    %190 = memref.load %arg1[%c21] : memref<98xf32, #tpu.memory_space<smem>>
    %191 = vector.extract_strided_slice %7 {offsets = [7, 0], sizes = [1, 256], strides = [1, 1]} : vector<14x256xf32> to vector<1x256xf32>
    %c3_i32_23 = arith.constant 3 : i32
    %192 = tpu.dynamic_rotate %189 by %c3_i32_23 dim 1 : vector<2x256xf32>, i32 -> vector<2x256xf32>
    %193 = vector.broadcast %191 : vector<1x256xf32> to vector<2x256xf32>
    %194 = arith.mulf %192, %193 : vector<2x256xf32>
    %195 = vector.broadcast %190 : f32 to vector<2x256xf32>
    %196 = arith.mulf %195, %194 : vector<2x256xf32>
    %197 = arith.addf %186, %196 : vector<2x256xf32>
    %c22 = arith.constant 22 : index
    %198 = memref.load %arg1[%c22] : memref<98xf32, #tpu.memory_space<smem>>
    %199 = vector.extract_strided_slice %7 {offsets = [8, 0], sizes = [1, 256], strides = [1, 1]} : vector<14x256xf32> to vector<1x256xf32>
    %c2_i32_24 = arith.constant 2 : i32
    %200 = tpu.dynamic_rotate %189 by %c2_i32_24 dim 1 : vector<2x256xf32>, i32 -> vector<2x256xf32>
    %201 = vector.broadcast %199 : vector<1x256xf32> to vector<2x256xf32>
    %202 = arith.mulf %200, %201 : vector<2x256xf32>
    %203 = vector.broadcast %198 : f32 to vector<2x256xf32>
    %204 = arith.mulf %203, %202 : vector<2x256xf32>
    %205 = arith.addf %197, %204 : vector<2x256xf32>
    %c23 = arith.constant 23 : index
    %206 = memref.load %arg1[%c23] : memref<98xf32, #tpu.memory_space<smem>>
    %207 = vector.extract_strided_slice %7 {offsets = [9, 0], sizes = [1, 256], strides = [1, 1]} : vector<14x256xf32> to vector<1x256xf32>
    %c1_i32_25 = arith.constant 1 : i32
    %208 = tpu.dynamic_rotate %189 by %c1_i32_25 dim 1 : vector<2x256xf32>, i32 -> vector<2x256xf32>
    %209 = vector.broadcast %207 : vector<1x256xf32> to vector<2x256xf32>
    %210 = arith.mulf %208, %209 : vector<2x256xf32>
    %211 = vector.broadcast %206 : f32 to vector<2x256xf32>
    %212 = arith.mulf %211, %210 : vector<2x256xf32>
    %213 = arith.addf %205, %212 : vector<2x256xf32>
    %c24 = arith.constant 24 : index
    %214 = memref.load %arg1[%c24] : memref<98xf32, #tpu.memory_space<smem>>
    %215 = vector.extract_strided_slice %7 {offsets = [10, 0], sizes = [1, 256], strides = [1, 1]} : vector<14x256xf32> to vector<1x256xf32>
    %216 = vector.broadcast %215 : vector<1x256xf32> to vector<2x256xf32>
    %217 = arith.mulf %189, %216 : vector<2x256xf32>
    %218 = vector.broadcast %214 : f32 to vector<2x256xf32>
    %219 = arith.mulf %218, %217 : vector<2x256xf32>
    %220 = arith.addf %213, %219 : vector<2x256xf32>
    %c25 = arith.constant 25 : index
    %221 = memref.load %arg1[%c25] : memref<98xf32, #tpu.memory_space<smem>>
    %222 = vector.extract_strided_slice %7 {offsets = [11, 0], sizes = [1, 256], strides = [1, 1]} : vector<14x256xf32> to vector<1x256xf32>
    %c255_i32_26 = arith.constant 255 : i32
    %223 = tpu.dynamic_rotate %189 by %c255_i32_26 dim 1 : vector<2x256xf32>, i32 -> vector<2x256xf32>
    %224 = vector.broadcast %222 : vector<1x256xf32> to vector<2x256xf32>
    %225 = arith.mulf %223, %224 : vector<2x256xf32>
    %226 = vector.broadcast %221 : f32 to vector<2x256xf32>
    %227 = arith.mulf %226, %225 : vector<2x256xf32>
    %228 = arith.addf %220, %227 : vector<2x256xf32>
    %c26 = arith.constant 26 : index
    %229 = memref.load %arg1[%c26] : memref<98xf32, #tpu.memory_space<smem>>
    %230 = vector.extract_strided_slice %7 {offsets = [12, 0], sizes = [1, 256], strides = [1, 1]} : vector<14x256xf32> to vector<1x256xf32>
    %c254_i32_27 = arith.constant 254 : i32
    %231 = tpu.dynamic_rotate %189 by %c254_i32_27 dim 1 : vector<2x256xf32>, i32 -> vector<2x256xf32>
    %232 = vector.broadcast %230 : vector<1x256xf32> to vector<2x256xf32>
    %233 = arith.mulf %231, %232 : vector<2x256xf32>
    %234 = vector.broadcast %229 : f32 to vector<2x256xf32>
    %235 = arith.mulf %234, %233 : vector<2x256xf32>
    %236 = arith.addf %228, %235 : vector<2x256xf32>
    %c27 = arith.constant 27 : index
    %237 = memref.load %arg1[%c27] : memref<98xf32, #tpu.memory_space<smem>>
    %238 = vector.extract_strided_slice %7 {offsets = [13, 0], sizes = [1, 256], strides = [1, 1]} : vector<14x256xf32> to vector<1x256xf32>
    %c253_i32_28 = arith.constant 253 : i32
    %239 = tpu.dynamic_rotate %189 by %c253_i32_28 dim 1 : vector<2x256xf32>, i32 -> vector<2x256xf32>
    %240 = vector.broadcast %238 : vector<1x256xf32> to vector<2x256xf32>
    %241 = arith.mulf %239, %240 : vector<2x256xf32>
    %242 = vector.broadcast %237 : f32 to vector<2x256xf32>
    %243 = arith.mulf %242, %241 : vector<2x256xf32>
    %244 = arith.addf %236, %243 : vector<2x256xf32>
    %245 = vector.extract_strided_slice %7 {offsets = [4, 0], sizes = [1, 256], strides = [1, 1]} : vector<14x256xf32> to vector<1x256xf32>
    %c240_i32 = arith.constant 240 : i32
    %246 = tpu.dynamic_rotate %3 by %c240_i32 dim 1 : vector<2x256xf32>, i32 -> vector<2x256xf32>
    %247 = vector.broadcast %245 : vector<1x256xf32> to vector<2x256xf32>
    %248 = arith.mulf %246, %247 : vector<2x256xf32>
    %c28 = arith.constant 28 : index
    %249 = memref.load %arg1[%c28] : memref<98xf32, #tpu.memory_space<smem>>
    %250 = vector.extract_strided_slice %7 {offsets = [7, 0], sizes = [1, 256], strides = [1, 1]} : vector<14x256xf32> to vector<1x256xf32>
    %c3_i32_29 = arith.constant 3 : i32
    %251 = tpu.dynamic_rotate %248 by %c3_i32_29 dim 1 : vector<2x256xf32>, i32 -> vector<2x256xf32>
    %252 = vector.broadcast %250 : vector<1x256xf32> to vector<2x256xf32>
    %253 = arith.mulf %251, %252 : vector<2x256xf32>
    %254 = vector.broadcast %249 : f32 to vector<2x256xf32>
    %255 = arith.mulf %254, %253 : vector<2x256xf32>
    %256 = arith.addf %244, %255 : vector<2x256xf32>
    %c29 = arith.constant 29 : index
    %257 = memref.load %arg1[%c29] : memref<98xf32, #tpu.memory_space<smem>>
    %258 = vector.extract_strided_slice %7 {offsets = [8, 0], sizes = [1, 256], strides = [1, 1]} : vector<14x256xf32> to vector<1x256xf32>
    %c2_i32_30 = arith.constant 2 : i32
    %259 = tpu.dynamic_rotate %248 by %c2_i32_30 dim 1 : vector<2x256xf32>, i32 -> vector<2x256xf32>
    %260 = vector.broadcast %258 : vector<1x256xf32> to vector<2x256xf32>
    %261 = arith.mulf %259, %260 : vector<2x256xf32>
    %262 = vector.broadcast %257 : f32 to vector<2x256xf32>
    %263 = arith.mulf %262, %261 : vector<2x256xf32>
    %264 = arith.addf %256, %263 : vector<2x256xf32>
    %c30 = arith.constant 30 : index
    %265 = memref.load %arg1[%c30] : memref<98xf32, #tpu.memory_space<smem>>
    %266 = vector.extract_strided_slice %7 {offsets = [9, 0], sizes = [1, 256], strides = [1, 1]} : vector<14x256xf32> to vector<1x256xf32>
    %c1_i32_31 = arith.constant 1 : i32
    %267 = tpu.dynamic_rotate %248 by %c1_i32_31 dim 1 : vector<2x256xf32>, i32 -> vector<2x256xf32>
    %268 = vector.broadcast %266 : vector<1x256xf32> to vector<2x256xf32>
    %269 = arith.mulf %267, %268 : vector<2x256xf32>
    %270 = vector.broadcast %265 : f32 to vector<2x256xf32>
    %271 = arith.mulf %270, %269 : vector<2x256xf32>
    %272 = arith.addf %264, %271 : vector<2x256xf32>
    %c31 = arith.constant 31 : index
    %273 = memref.load %arg1[%c31] : memref<98xf32, #tpu.memory_space<smem>>
    %274 = vector.extract_strided_slice %7 {offsets = [10, 0], sizes = [1, 256], strides = [1, 1]} : vector<14x256xf32> to vector<1x256xf32>
    %275 = vector.broadcast %274 : vector<1x256xf32> to vector<2x256xf32>
    %276 = arith.mulf %248, %275 : vector<2x256xf32>
    %277 = vector.broadcast %273 : f32 to vector<2x256xf32>
    %278 = arith.mulf %277, %276 : vector<2x256xf32>
    %279 = arith.addf %272, %278 : vector<2x256xf32>
    %c32 = arith.constant 32 : index
    %280 = memref.load %arg1[%c32] : memref<98xf32, #tpu.memory_space<smem>>
    %281 = vector.extract_strided_slice %7 {offsets = [11, 0], sizes = [1, 256], strides = [1, 1]} : vector<14x256xf32> to vector<1x256xf32>
    %c255_i32_32 = arith.constant 255 : i32
    %282 = tpu.dynamic_rotate %248 by %c255_i32_32 dim 1 : vector<2x256xf32>, i32 -> vector<2x256xf32>
    %283 = vector.broadcast %281 : vector<1x256xf32> to vector<2x256xf32>
    %284 = arith.mulf %282, %283 : vector<2x256xf32>
    %285 = vector.broadcast %280 : f32 to vector<2x256xf32>
    %286 = arith.mulf %285, %284 : vector<2x256xf32>
    %287 = arith.addf %279, %286 : vector<2x256xf32>
    %c33 = arith.constant 33 : index
    %288 = memref.load %arg1[%c33] : memref<98xf32, #tpu.memory_space<smem>>
    %289 = vector.extract_strided_slice %7 {offsets = [12, 0], sizes = [1, 256], strides = [1, 1]} : vector<14x256xf32> to vector<1x256xf32>
    %c254_i32_33 = arith.constant 254 : i32
    %290 = tpu.dynamic_rotate %248 by %c254_i32_33 dim 1 : vector<2x256xf32>, i32 -> vector<2x256xf32>
    %291 = vector.broadcast %289 : vector<1x256xf32> to vector<2x256xf32>
    %292 = arith.mulf %290, %291 : vector<2x256xf32>
    %293 = vector.broadcast %288 : f32 to vector<2x256xf32>
    %294 = arith.mulf %293, %292 : vector<2x256xf32>
    %295 = arith.addf %287, %294 : vector<2x256xf32>
    %c34 = arith.constant 34 : index
    %296 = memref.load %arg1[%c34] : memref<98xf32, #tpu.memory_space<smem>>
    %297 = vector.extract_strided_slice %7 {offsets = [13, 0], sizes = [1, 256], strides = [1, 1]} : vector<14x256xf32> to vector<1x256xf32>
    %c253_i32_34 = arith.constant 253 : i32
    %298 = tpu.dynamic_rotate %248 by %c253_i32_34 dim 1 : vector<2x256xf32>, i32 -> vector<2x256xf32>
    %299 = vector.broadcast %297 : vector<1x256xf32> to vector<2x256xf32>
    %300 = arith.mulf %298, %299 : vector<2x256xf32>
    %301 = vector.broadcast %296 : f32 to vector<2x256xf32>
    %302 = arith.mulf %301, %300 : vector<2x256xf32>
    %303 = arith.addf %295, %302 : vector<2x256xf32>
    %304 = vector.extract_strided_slice %7 {offsets = [5, 0], sizes = [1, 256], strides = [1, 1]} : vector<14x256xf32> to vector<1x256xf32>
    %c224_i32 = arith.constant 224 : i32
    %305 = tpu.dynamic_rotate %3 by %c224_i32 dim 1 : vector<2x256xf32>, i32 -> vector<2x256xf32>
    %306 = vector.broadcast %304 : vector<1x256xf32> to vector<2x256xf32>
    %307 = arith.mulf %305, %306 : vector<2x256xf32>
    %c35 = arith.constant 35 : index
    %308 = memref.load %arg1[%c35] : memref<98xf32, #tpu.memory_space<smem>>
    %309 = vector.extract_strided_slice %7 {offsets = [7, 0], sizes = [1, 256], strides = [1, 1]} : vector<14x256xf32> to vector<1x256xf32>
    %c3_i32_35 = arith.constant 3 : i32
    %310 = tpu.dynamic_rotate %307 by %c3_i32_35 dim 1 : vector<2x256xf32>, i32 -> vector<2x256xf32>
    %311 = vector.broadcast %309 : vector<1x256xf32> to vector<2x256xf32>
    %312 = arith.mulf %310, %311 : vector<2x256xf32>
    %313 = vector.broadcast %308 : f32 to vector<2x256xf32>
    %314 = arith.mulf %313, %312 : vector<2x256xf32>
    %315 = arith.addf %303, %314 : vector<2x256xf32>
    %c36 = arith.constant 36 : index
    %316 = memref.load %arg1[%c36] : memref<98xf32, #tpu.memory_space<smem>>
    %317 = vector.extract_strided_slice %7 {offsets = [8, 0], sizes = [1, 256], strides = [1, 1]} : vector<14x256xf32> to vector<1x256xf32>
    %c2_i32_36 = arith.constant 2 : i32
    %318 = tpu.dynamic_rotate %307 by %c2_i32_36 dim 1 : vector<2x256xf32>, i32 -> vector<2x256xf32>
    %319 = vector.broadcast %317 : vector<1x256xf32> to vector<2x256xf32>
    %320 = arith.mulf %318, %319 : vector<2x256xf32>
    %321 = vector.broadcast %316 : f32 to vector<2x256xf32>
    %322 = arith.mulf %321, %320 : vector<2x256xf32>
    %323 = arith.addf %315, %322 : vector<2x256xf32>
    %c37 = arith.constant 37 : index
    %324 = memref.load %arg1[%c37] : memref<98xf32, #tpu.memory_space<smem>>
    %325 = vector.extract_strided_slice %7 {offsets = [9, 0], sizes = [1, 256], strides = [1, 1]} : vector<14x256xf32> to vector<1x256xf32>
    %c1_i32_37 = arith.constant 1 : i32
    %326 = tpu.dynamic_rotate %307 by %c1_i32_37 dim 1 : vector<2x256xf32>, i32 -> vector<2x256xf32>
    %327 = vector.broadcast %325 : vector<1x256xf32> to vector<2x256xf32>
    %328 = arith.mulf %326, %327 : vector<2x256xf32>
    %329 = vector.broadcast %324 : f32 to vector<2x256xf32>
    %330 = arith.mulf %329, %328 : vector<2x256xf32>
    %331 = arith.addf %323, %330 : vector<2x256xf32>
    %c38 = arith.constant 38 : index
    %332 = memref.load %arg1[%c38] : memref<98xf32, #tpu.memory_space<smem>>
    %333 = vector.extract_strided_slice %7 {offsets = [10, 0], sizes = [1, 256], strides = [1, 1]} : vector<14x256xf32> to vector<1x256xf32>
    %334 = vector.broadcast %333 : vector<1x256xf32> to vector<2x256xf32>
    %335 = arith.mulf %307, %334 : vector<2x256xf32>
    %336 = vector.broadcast %332 : f32 to vector<2x256xf32>
    %337 = arith.mulf %336, %335 : vector<2x256xf32>
    %338 = arith.addf %331, %337 : vector<2x256xf32>
    %c39 = arith.constant 39 : index
    %339 = memref.load %arg1[%c39] : memref<98xf32, #tpu.memory_space<smem>>
    %340 = vector.extract_strided_slice %7 {offsets = [11, 0], sizes = [1, 256], strides = [1, 1]} : vector<14x256xf32> to vector<1x256xf32>
    %c255_i32_38 = arith.constant 255 : i32
    %341 = tpu.dynamic_rotate %307 by %c255_i32_38 dim 1 : vector<2x256xf32>, i32 -> vector<2x256xf32>
    %342 = vector.broadcast %340 : vector<1x256xf32> to vector<2x256xf32>
    %343 = arith.mulf %341, %342 : vector<2x256xf32>
    %344 = vector.broadcast %339 : f32 to vector<2x256xf32>
    %345 = arith.mulf %344, %343 : vector<2x256xf32>
    %346 = arith.addf %338, %345 : vector<2x256xf32>
    %c40 = arith.constant 40 : index
    %347 = memref.load %arg1[%c40] : memref<98xf32, #tpu.memory_space<smem>>
    %348 = vector.extract_strided_slice %7 {offsets = [12, 0], sizes = [1, 256], strides = [1, 1]} : vector<14x256xf32> to vector<1x256xf32>
    %c254_i32_39 = arith.constant 254 : i32
    %349 = tpu.dynamic_rotate %307 by %c254_i32_39 dim 1 : vector<2x256xf32>, i32 -> vector<2x256xf32>
    %350 = vector.broadcast %348 : vector<1x256xf32> to vector<2x256xf32>
    %351 = arith.mulf %349, %350 : vector<2x256xf32>
    %352 = vector.broadcast %347 : f32 to vector<2x256xf32>
    %353 = arith.mulf %352, %351 : vector<2x256xf32>
    %354 = arith.addf %346, %353 : vector<2x256xf32>
    %c41 = arith.constant 41 : index
    %355 = memref.load %arg1[%c41] : memref<98xf32, #tpu.memory_space<smem>>
    %356 = vector.extract_strided_slice %7 {offsets = [13, 0], sizes = [1, 256], strides = [1, 1]} : vector<14x256xf32> to vector<1x256xf32>
    %c253_i32_40 = arith.constant 253 : i32
    %357 = tpu.dynamic_rotate %307 by %c253_i32_40 dim 1 : vector<2x256xf32>, i32 -> vector<2x256xf32>
    %358 = vector.broadcast %356 : vector<1x256xf32> to vector<2x256xf32>
    %359 = arith.mulf %357, %358 : vector<2x256xf32>
    %360 = vector.broadcast %355 : f32 to vector<2x256xf32>
    %361 = arith.mulf %360, %359 : vector<2x256xf32>
    %362 = arith.addf %354, %361 : vector<2x256xf32>
    %363 = vector.extract_strided_slice %7 {offsets = [6, 0], sizes = [1, 256], strides = [1, 1]} : vector<14x256xf32> to vector<1x256xf32>
    %c208_i32 = arith.constant 208 : i32
    %364 = tpu.dynamic_rotate %3 by %c208_i32 dim 1 : vector<2x256xf32>, i32 -> vector<2x256xf32>
    %365 = vector.broadcast %363 : vector<1x256xf32> to vector<2x256xf32>
    %366 = arith.mulf %364, %365 : vector<2x256xf32>
    %c42 = arith.constant 42 : index
    %367 = memref.load %arg1[%c42] : memref<98xf32, #tpu.memory_space<smem>>
    %368 = vector.extract_strided_slice %7 {offsets = [7, 0], sizes = [1, 256], strides = [1, 1]} : vector<14x256xf32> to vector<1x256xf32>
    %c3_i32_41 = arith.constant 3 : i32
    %369 = tpu.dynamic_rotate %366 by %c3_i32_41 dim 1 : vector<2x256xf32>, i32 -> vector<2x256xf32>
    %370 = vector.broadcast %368 : vector<1x256xf32> to vector<2x256xf32>
    %371 = arith.mulf %369, %370 : vector<2x256xf32>
    %372 = vector.broadcast %367 : f32 to vector<2x256xf32>
    %373 = arith.mulf %372, %371 : vector<2x256xf32>
    %374 = arith.addf %362, %373 : vector<2x256xf32>
    %c43 = arith.constant 43 : index
    %375 = memref.load %arg1[%c43] : memref<98xf32, #tpu.memory_space<smem>>
    %376 = vector.extract_strided_slice %7 {offsets = [8, 0], sizes = [1, 256], strides = [1, 1]} : vector<14x256xf32> to vector<1x256xf32>
    %c2_i32_42 = arith.constant 2 : i32
    %377 = tpu.dynamic_rotate %366 by %c2_i32_42 dim 1 : vector<2x256xf32>, i32 -> vector<2x256xf32>
    %378 = vector.broadcast %376 : vector<1x256xf32> to vector<2x256xf32>
    %379 = arith.mulf %377, %378 : vector<2x256xf32>
    %380 = vector.broadcast %375 : f32 to vector<2x256xf32>
    %381 = arith.mulf %380, %379 : vector<2x256xf32>
    %382 = arith.addf %374, %381 : vector<2x256xf32>
    %c44 = arith.constant 44 : index
    %383 = memref.load %arg1[%c44] : memref<98xf32, #tpu.memory_space<smem>>
    %384 = vector.extract_strided_slice %7 {offsets = [9, 0], sizes = [1, 256], strides = [1, 1]} : vector<14x256xf32> to vector<1x256xf32>
    %c1_i32_43 = arith.constant 1 : i32
    %385 = tpu.dynamic_rotate %366 by %c1_i32_43 dim 1 : vector<2x256xf32>, i32 -> vector<2x256xf32>
    %386 = vector.broadcast %384 : vector<1x256xf32> to vector<2x256xf32>
    %387 = arith.mulf %385, %386 : vector<2x256xf32>
    %388 = vector.broadcast %383 : f32 to vector<2x256xf32>
    %389 = arith.mulf %388, %387 : vector<2x256xf32>
    %390 = arith.addf %382, %389 : vector<2x256xf32>
    %c45 = arith.constant 45 : index
    %391 = memref.load %arg1[%c45] : memref<98xf32, #tpu.memory_space<smem>>
    %392 = vector.extract_strided_slice %7 {offsets = [10, 0], sizes = [1, 256], strides = [1, 1]} : vector<14x256xf32> to vector<1x256xf32>
    %393 = vector.broadcast %392 : vector<1x256xf32> to vector<2x256xf32>
    %394 = arith.mulf %366, %393 : vector<2x256xf32>
    %395 = vector.broadcast %391 : f32 to vector<2x256xf32>
    %396 = arith.mulf %395, %394 : vector<2x256xf32>
    %397 = arith.addf %390, %396 : vector<2x256xf32>
    %c46 = arith.constant 46 : index
    %398 = memref.load %arg1[%c46] : memref<98xf32, #tpu.memory_space<smem>>
    %399 = vector.extract_strided_slice %7 {offsets = [11, 0], sizes = [1, 256], strides = [1, 1]} : vector<14x256xf32> to vector<1x256xf32>
    %c255_i32_44 = arith.constant 255 : i32
    %400 = tpu.dynamic_rotate %366 by %c255_i32_44 dim 1 : vector<2x256xf32>, i32 -> vector<2x256xf32>
    %401 = vector.broadcast %399 : vector<1x256xf32> to vector<2x256xf32>
    %402 = arith.mulf %400, %401 : vector<2x256xf32>
    %403 = vector.broadcast %398 : f32 to vector<2x256xf32>
    %404 = arith.mulf %403, %402 : vector<2x256xf32>
    %405 = arith.addf %397, %404 : vector<2x256xf32>
    %c47 = arith.constant 47 : index
    %406 = memref.load %arg1[%c47] : memref<98xf32, #tpu.memory_space<smem>>
    %407 = vector.extract_strided_slice %7 {offsets = [12, 0], sizes = [1, 256], strides = [1, 1]} : vector<14x256xf32> to vector<1x256xf32>
    %c254_i32_45 = arith.constant 254 : i32
    %408 = tpu.dynamic_rotate %366 by %c254_i32_45 dim 1 : vector<2x256xf32>, i32 -> vector<2x256xf32>
    %409 = vector.broadcast %407 : vector<1x256xf32> to vector<2x256xf32>
    %410 = arith.mulf %408, %409 : vector<2x256xf32>
    %411 = vector.broadcast %406 : f32 to vector<2x256xf32>
    %412 = arith.mulf %411, %410 : vector<2x256xf32>
    %413 = arith.addf %405, %412 : vector<2x256xf32>
    %c48 = arith.constant 48 : index
    %414 = memref.load %arg1[%c48] : memref<98xf32, #tpu.memory_space<smem>>
    %415 = vector.extract_strided_slice %7 {offsets = [13, 0], sizes = [1, 256], strides = [1, 1]} : vector<14x256xf32> to vector<1x256xf32>
    %c253_i32_46 = arith.constant 253 : i32
    %416 = tpu.dynamic_rotate %366 by %c253_i32_46 dim 1 : vector<2x256xf32>, i32 -> vector<2x256xf32>
    %417 = vector.broadcast %415 : vector<1x256xf32> to vector<2x256xf32>
    %418 = arith.mulf %416, %417 : vector<2x256xf32>
    %419 = vector.broadcast %414 : f32 to vector<2x256xf32>
    %420 = arith.mulf %419, %418 : vector<2x256xf32>
    %421 = arith.addf %413, %420 : vector<2x256xf32>
    %422 = vector.extract_strided_slice %7 {offsets = [0, 0], sizes = [1, 256], strides = [1, 1]} : vector<14x256xf32> to vector<1x256xf32>
    %c48_i32_47 = arith.constant 48 : i32
    %423 = tpu.dynamic_rotate %6 by %c48_i32_47 dim 1 : vector<2x256xf32>, i32 -> vector<2x256xf32>
    %424 = vector.broadcast %422 : vector<1x256xf32> to vector<2x256xf32>
    %425 = arith.mulf %423, %424 : vector<2x256xf32>
    %c49 = arith.constant 49 : index
    %426 = memref.load %arg1[%c49] : memref<98xf32, #tpu.memory_space<smem>>
    %427 = vector.extract_strided_slice %7 {offsets = [7, 0], sizes = [1, 256], strides = [1, 1]} : vector<14x256xf32> to vector<1x256xf32>
    %c3_i32_48 = arith.constant 3 : i32
    %428 = tpu.dynamic_rotate %425 by %c3_i32_48 dim 1 : vector<2x256xf32>, i32 -> vector<2x256xf32>
    %429 = vector.broadcast %427 : vector<1x256xf32> to vector<2x256xf32>
    %430 = arith.mulf %428, %429 : vector<2x256xf32>
    %431 = vector.broadcast %426 : f32 to vector<2x256xf32>
    %432 = arith.mulf %431, %430 : vector<2x256xf32>
    %433 = arith.addf %421, %432 : vector<2x256xf32>
    %c50 = arith.constant 50 : index
    %434 = memref.load %arg1[%c50] : memref<98xf32, #tpu.memory_space<smem>>
    %435 = vector.extract_strided_slice %7 {offsets = [8, 0], sizes = [1, 256], strides = [1, 1]} : vector<14x256xf32> to vector<1x256xf32>
    %c2_i32_49 = arith.constant 2 : i32
    %436 = tpu.dynamic_rotate %425 by %c2_i32_49 dim 1 : vector<2x256xf32>, i32 -> vector<2x256xf32>
    %437 = vector.broadcast %435 : vector<1x256xf32> to vector<2x256xf32>
    %438 = arith.mulf %436, %437 : vector<2x256xf32>
    %439 = vector.broadcast %434 : f32 to vector<2x256xf32>
    %440 = arith.mulf %439, %438 : vector<2x256xf32>
    %441 = arith.addf %433, %440 : vector<2x256xf32>
    %c51 = arith.constant 51 : index
    %442 = memref.load %arg1[%c51] : memref<98xf32, #tpu.memory_space<smem>>
    %443 = vector.extract_strided_slice %7 {offsets = [9, 0], sizes = [1, 256], strides = [1, 1]} : vector<14x256xf32> to vector<1x256xf32>
    %c1_i32_50 = arith.constant 1 : i32
    %444 = tpu.dynamic_rotate %425 by %c1_i32_50 dim 1 : vector<2x256xf32>, i32 -> vector<2x256xf32>
    %445 = vector.broadcast %443 : vector<1x256xf32> to vector<2x256xf32>
    %446 = arith.mulf %444, %445 : vector<2x256xf32>
    %447 = vector.broadcast %442 : f32 to vector<2x256xf32>
    %448 = arith.mulf %447, %446 : vector<2x256xf32>
    %449 = arith.addf %441, %448 : vector<2x256xf32>
    %c52 = arith.constant 52 : index
    %450 = memref.load %arg1[%c52] : memref<98xf32, #tpu.memory_space<smem>>
    %451 = vector.extract_strided_slice %7 {offsets = [10, 0], sizes = [1, 256], strides = [1, 1]} : vector<14x256xf32> to vector<1x256xf32>
    %452 = vector.broadcast %451 : vector<1x256xf32> to vector<2x256xf32>
    %453 = arith.mulf %425, %452 : vector<2x256xf32>
    %454 = vector.broadcast %450 : f32 to vector<2x256xf32>
    %455 = arith.mulf %454, %453 : vector<2x256xf32>
    %456 = arith.addf %449, %455 : vector<2x256xf32>
    %c53 = arith.constant 53 : index
    %457 = memref.load %arg1[%c53] : memref<98xf32, #tpu.memory_space<smem>>
    %458 = vector.extract_strided_slice %7 {offsets = [11, 0], sizes = [1, 256], strides = [1, 1]} : vector<14x256xf32> to vector<1x256xf32>
    %c255_i32_51 = arith.constant 255 : i32
    %459 = tpu.dynamic_rotate %425 by %c255_i32_51 dim 1 : vector<2x256xf32>, i32 -> vector<2x256xf32>
    %460 = vector.broadcast %458 : vector<1x256xf32> to vector<2x256xf32>
    %461 = arith.mulf %459, %460 : vector<2x256xf32>
    %462 = vector.broadcast %457 : f32 to vector<2x256xf32>
    %463 = arith.mulf %462, %461 : vector<2x256xf32>
    %464 = arith.addf %456, %463 : vector<2x256xf32>
    %c54 = arith.constant 54 : index
    %465 = memref.load %arg1[%c54] : memref<98xf32, #tpu.memory_space<smem>>
    %466 = vector.extract_strided_slice %7 {offsets = [12, 0], sizes = [1, 256], strides = [1, 1]} : vector<14x256xf32> to vector<1x256xf32>
    %c254_i32_52 = arith.constant 254 : i32
    %467 = tpu.dynamic_rotate %425 by %c254_i32_52 dim 1 : vector<2x256xf32>, i32 -> vector<2x256xf32>
    %468 = vector.broadcast %466 : vector<1x256xf32> to vector<2x256xf32>
    %469 = arith.mulf %467, %468 : vector<2x256xf32>
    %470 = vector.broadcast %465 : f32 to vector<2x256xf32>
    %471 = arith.mulf %470, %469 : vector<2x256xf32>
    %472 = arith.addf %464, %471 : vector<2x256xf32>
    %c55 = arith.constant 55 : index
    %473 = memref.load %arg1[%c55] : memref<98xf32, #tpu.memory_space<smem>>
    %474 = vector.extract_strided_slice %7 {offsets = [13, 0], sizes = [1, 256], strides = [1, 1]} : vector<14x256xf32> to vector<1x256xf32>
    %c253_i32_53 = arith.constant 253 : i32
    %475 = tpu.dynamic_rotate %425 by %c253_i32_53 dim 1 : vector<2x256xf32>, i32 -> vector<2x256xf32>
    %476 = vector.broadcast %474 : vector<1x256xf32> to vector<2x256xf32>
    %477 = arith.mulf %475, %476 : vector<2x256xf32>
    %478 = vector.broadcast %473 : f32 to vector<2x256xf32>
    %479 = arith.mulf %478, %477 : vector<2x256xf32>
    %480 = arith.addf %472, %479 : vector<2x256xf32>
    %481 = vector.extract_strided_slice %7 {offsets = [1, 0], sizes = [1, 256], strides = [1, 1]} : vector<14x256xf32> to vector<1x256xf32>
    %c32_i32_54 = arith.constant 32 : i32
    %482 = tpu.dynamic_rotate %6 by %c32_i32_54 dim 1 : vector<2x256xf32>, i32 -> vector<2x256xf32>
    %483 = vector.broadcast %481 : vector<1x256xf32> to vector<2x256xf32>
    %484 = arith.mulf %482, %483 : vector<2x256xf32>
    %c56 = arith.constant 56 : index
    %485 = memref.load %arg1[%c56] : memref<98xf32, #tpu.memory_space<smem>>
    %486 = vector.extract_strided_slice %7 {offsets = [7, 0], sizes = [1, 256], strides = [1, 1]} : vector<14x256xf32> to vector<1x256xf32>
    %c3_i32_55 = arith.constant 3 : i32
    %487 = tpu.dynamic_rotate %484 by %c3_i32_55 dim 1 : vector<2x256xf32>, i32 -> vector<2x256xf32>
    %488 = vector.broadcast %486 : vector<1x256xf32> to vector<2x256xf32>
    %489 = arith.mulf %487, %488 : vector<2x256xf32>
    %490 = vector.broadcast %485 : f32 to vector<2x256xf32>
    %491 = arith.mulf %490, %489 : vector<2x256xf32>
    %492 = arith.addf %480, %491 : vector<2x256xf32>
    %c57 = arith.constant 57 : index
    %493 = memref.load %arg1[%c57] : memref<98xf32, #tpu.memory_space<smem>>
    %494 = vector.extract_strided_slice %7 {offsets = [8, 0], sizes = [1, 256], strides = [1, 1]} : vector<14x256xf32> to vector<1x256xf32>
    %c2_i32_56 = arith.constant 2 : i32
    %495 = tpu.dynamic_rotate %484 by %c2_i32_56 dim 1 : vector<2x256xf32>, i32 -> vector<2x256xf32>
    %496 = vector.broadcast %494 : vector<1x256xf32> to vector<2x256xf32>
    %497 = arith.mulf %495, %496 : vector<2x256xf32>
    %498 = vector.broadcast %493 : f32 to vector<2x256xf32>
    %499 = arith.mulf %498, %497 : vector<2x256xf32>
    %500 = arith.addf %492, %499 : vector<2x256xf32>
    %c58 = arith.constant 58 : index
    %501 = memref.load %arg1[%c58] : memref<98xf32, #tpu.memory_space<smem>>
    %502 = vector.extract_strided_slice %7 {offsets = [9, 0], sizes = [1, 256], strides = [1, 1]} : vector<14x256xf32> to vector<1x256xf32>
    %c1_i32_57 = arith.constant 1 : i32
    %503 = tpu.dynamic_rotate %484 by %c1_i32_57 dim 1 : vector<2x256xf32>, i32 -> vector<2x256xf32>
    %504 = vector.broadcast %502 : vector<1x256xf32> to vector<2x256xf32>
    %505 = arith.mulf %503, %504 : vector<2x256xf32>
    %506 = vector.broadcast %501 : f32 to vector<2x256xf32>
    %507 = arith.mulf %506, %505 : vector<2x256xf32>
    %508 = arith.addf %500, %507 : vector<2x256xf32>
    %c59 = arith.constant 59 : index
    %509 = memref.load %arg1[%c59] : memref<98xf32, #tpu.memory_space<smem>>
    %510 = vector.extract_strided_slice %7 {offsets = [10, 0], sizes = [1, 256], strides = [1, 1]} : vector<14x256xf32> to vector<1x256xf32>
    %511 = vector.broadcast %510 : vector<1x256xf32> to vector<2x256xf32>
    %512 = arith.mulf %484, %511 : vector<2x256xf32>
    %513 = vector.broadcast %509 : f32 to vector<2x256xf32>
    %514 = arith.mulf %513, %512 : vector<2x256xf32>
    %515 = arith.addf %508, %514 : vector<2x256xf32>
    %c60 = arith.constant 60 : index
    %516 = memref.load %arg1[%c60] : memref<98xf32, #tpu.memory_space<smem>>
    %517 = vector.extract_strided_slice %7 {offsets = [11, 0], sizes = [1, 256], strides = [1, 1]} : vector<14x256xf32> to vector<1x256xf32>
    %c255_i32_58 = arith.constant 255 : i32
    %518 = tpu.dynamic_rotate %484 by %c255_i32_58 dim 1 : vector<2x256xf32>, i32 -> vector<2x256xf32>
    %519 = vector.broadcast %517 : vector<1x256xf32> to vector<2x256xf32>
    %520 = arith.mulf %518, %519 : vector<2x256xf32>
    %521 = vector.broadcast %516 : f32 to vector<2x256xf32>
    %522 = arith.mulf %521, %520 : vector<2x256xf32>
    %523 = arith.addf %515, %522 : vector<2x256xf32>
    %c61 = arith.constant 61 : index
    %524 = memref.load %arg1[%c61] : memref<98xf32, #tpu.memory_space<smem>>
    %525 = vector.extract_strided_slice %7 {offsets = [12, 0], sizes = [1, 256], strides = [1, 1]} : vector<14x256xf32> to vector<1x256xf32>
    %c254_i32_59 = arith.constant 254 : i32
    %526 = tpu.dynamic_rotate %484 by %c254_i32_59 dim 1 : vector<2x256xf32>, i32 -> vector<2x256xf32>
    %527 = vector.broadcast %525 : vector<1x256xf32> to vector<2x256xf32>
    %528 = arith.mulf %526, %527 : vector<2x256xf32>
    %529 = vector.broadcast %524 : f32 to vector<2x256xf32>
    %530 = arith.mulf %529, %528 : vector<2x256xf32>
    %531 = arith.addf %523, %530 : vector<2x256xf32>
    %c62 = arith.constant 62 : index
    %532 = memref.load %arg1[%c62] : memref<98xf32, #tpu.memory_space<smem>>
    %533 = vector.extract_strided_slice %7 {offsets = [13, 0], sizes = [1, 256], strides = [1, 1]} : vector<14x256xf32> to vector<1x256xf32>
    %c253_i32_60 = arith.constant 253 : i32
    %534 = tpu.dynamic_rotate %484 by %c253_i32_60 dim 1 : vector<2x256xf32>, i32 -> vector<2x256xf32>
    %535 = vector.broadcast %533 : vector<1x256xf32> to vector<2x256xf32>
    %536 = arith.mulf %534, %535 : vector<2x256xf32>
    %537 = vector.broadcast %532 : f32 to vector<2x256xf32>
    %538 = arith.mulf %537, %536 : vector<2x256xf32>
    %539 = arith.addf %531, %538 : vector<2x256xf32>
    %540 = vector.extract_strided_slice %7 {offsets = [2, 0], sizes = [1, 256], strides = [1, 1]} : vector<14x256xf32> to vector<1x256xf32>
    %c16_i32_61 = arith.constant 16 : i32
    %541 = tpu.dynamic_rotate %6 by %c16_i32_61 dim 1 : vector<2x256xf32>, i32 -> vector<2x256xf32>
    %542 = vector.broadcast %540 : vector<1x256xf32> to vector<2x256xf32>
    %543 = arith.mulf %541, %542 : vector<2x256xf32>
    %c63 = arith.constant 63 : index
    %544 = memref.load %arg1[%c63] : memref<98xf32, #tpu.memory_space<smem>>
    %545 = vector.extract_strided_slice %7 {offsets = [7, 0], sizes = [1, 256], strides = [1, 1]} : vector<14x256xf32> to vector<1x256xf32>
    %c3_i32_62 = arith.constant 3 : i32
    %546 = tpu.dynamic_rotate %543 by %c3_i32_62 dim 1 : vector<2x256xf32>, i32 -> vector<2x256xf32>
    %547 = vector.broadcast %545 : vector<1x256xf32> to vector<2x256xf32>
    %548 = arith.mulf %546, %547 : vector<2x256xf32>
    %549 = vector.broadcast %544 : f32 to vector<2x256xf32>
    %550 = arith.mulf %549, %548 : vector<2x256xf32>
    %551 = arith.addf %539, %550 : vector<2x256xf32>
    %c64 = arith.constant 64 : index
    %552 = memref.load %arg1[%c64] : memref<98xf32, #tpu.memory_space<smem>>
    %553 = vector.extract_strided_slice %7 {offsets = [8, 0], sizes = [1, 256], strides = [1, 1]} : vector<14x256xf32> to vector<1x256xf32>
    %c2_i32_63 = arith.constant 2 : i32
    %554 = tpu.dynamic_rotate %543 by %c2_i32_63 dim 1 : vector<2x256xf32>, i32 -> vector<2x256xf32>
    %555 = vector.broadcast %553 : vector<1x256xf32> to vector<2x256xf32>
    %556 = arith.mulf %554, %555 : vector<2x256xf32>
    %557 = vector.broadcast %552 : f32 to vector<2x256xf32>
    %558 = arith.mulf %557, %556 : vector<2x256xf32>
    %559 = arith.addf %551, %558 : vector<2x256xf32>
    %c65 = arith.constant 65 : index
    %560 = memref.load %arg1[%c65] : memref<98xf32, #tpu.memory_space<smem>>
    %561 = vector.extract_strided_slice %7 {offsets = [9, 0], sizes = [1, 256], strides = [1, 1]} : vector<14x256xf32> to vector<1x256xf32>
    %c1_i32_64 = arith.constant 1 : i32
    %562 = tpu.dynamic_rotate %543 by %c1_i32_64 dim 1 : vector<2x256xf32>, i32 -> vector<2x256xf32>
    %563 = vector.broadcast %561 : vector<1x256xf32> to vector<2x256xf32>
    %564 = arith.mulf %562, %563 : vector<2x256xf32>
    %565 = vector.broadcast %560 : f32 to vector<2x256xf32>
    %566 = arith.mulf %565, %564 : vector<2x256xf32>
    %567 = arith.addf %559, %566 : vector<2x256xf32>
    %c66 = arith.constant 66 : index
    %568 = memref.load %arg1[%c66] : memref<98xf32, #tpu.memory_space<smem>>
    %569 = vector.extract_strided_slice %7 {offsets = [10, 0], sizes = [1, 256], strides = [1, 1]} : vector<14x256xf32> to vector<1x256xf32>
    %570 = vector.broadcast %569 : vector<1x256xf32> to vector<2x256xf32>
    %571 = arith.mulf %543, %570 : vector<2x256xf32>
    %572 = vector.broadcast %568 : f32 to vector<2x256xf32>
    %573 = arith.mulf %572, %571 : vector<2x256xf32>
    %574 = arith.addf %567, %573 : vector<2x256xf32>
    %c67 = arith.constant 67 : index
    %575 = memref.load %arg1[%c67] : memref<98xf32, #tpu.memory_space<smem>>
    %576 = vector.extract_strided_slice %7 {offsets = [11, 0], sizes = [1, 256], strides = [1, 1]} : vector<14x256xf32> to vector<1x256xf32>
    %c255_i32_65 = arith.constant 255 : i32
    %577 = tpu.dynamic_rotate %543 by %c255_i32_65 dim 1 : vector<2x256xf32>, i32 -> vector<2x256xf32>
    %578 = vector.broadcast %576 : vector<1x256xf32> to vector<2x256xf32>
    %579 = arith.mulf %577, %578 : vector<2x256xf32>
    %580 = vector.broadcast %575 : f32 to vector<2x256xf32>
    %581 = arith.mulf %580, %579 : vector<2x256xf32>
    %582 = arith.addf %574, %581 : vector<2x256xf32>
    %c68 = arith.constant 68 : index
    %583 = memref.load %arg1[%c68] : memref<98xf32, #tpu.memory_space<smem>>
    %584 = vector.extract_strided_slice %7 {offsets = [12, 0], sizes = [1, 256], strides = [1, 1]} : vector<14x256xf32> to vector<1x256xf32>
    %c254_i32_66 = arith.constant 254 : i32
    %585 = tpu.dynamic_rotate %543 by %c254_i32_66 dim 1 : vector<2x256xf32>, i32 -> vector<2x256xf32>
    %586 = vector.broadcast %584 : vector<1x256xf32> to vector<2x256xf32>
    %587 = arith.mulf %585, %586 : vector<2x256xf32>
    %588 = vector.broadcast %583 : f32 to vector<2x256xf32>
    %589 = arith.mulf %588, %587 : vector<2x256xf32>
    %590 = arith.addf %582, %589 : vector<2x256xf32>
    %c69 = arith.constant 69 : index
    %591 = memref.load %arg1[%c69] : memref<98xf32, #tpu.memory_space<smem>>
    %592 = vector.extract_strided_slice %7 {offsets = [13, 0], sizes = [1, 256], strides = [1, 1]} : vector<14x256xf32> to vector<1x256xf32>
    %c253_i32_67 = arith.constant 253 : i32
    %593 = tpu.dynamic_rotate %543 by %c253_i32_67 dim 1 : vector<2x256xf32>, i32 -> vector<2x256xf32>
    %594 = vector.broadcast %592 : vector<1x256xf32> to vector<2x256xf32>
    %595 = arith.mulf %593, %594 : vector<2x256xf32>
    %596 = vector.broadcast %591 : f32 to vector<2x256xf32>
    %597 = arith.mulf %596, %595 : vector<2x256xf32>
    %598 = arith.addf %590, %597 : vector<2x256xf32>
    %599 = vector.extract_strided_slice %7 {offsets = [3, 0], sizes = [1, 256], strides = [1, 1]} : vector<14x256xf32> to vector<1x256xf32>
    %600 = vector.broadcast %599 : vector<1x256xf32> to vector<2x256xf32>
    %601 = arith.mulf %6, %600 : vector<2x256xf32>
    %c70 = arith.constant 70 : index
    %602 = memref.load %arg1[%c70] : memref<98xf32, #tpu.memory_space<smem>>
    %603 = vector.extract_strided_slice %7 {offsets = [7, 0], sizes = [1, 256], strides = [1, 1]} : vector<14x256xf32> to vector<1x256xf32>
    %c3_i32_68 = arith.constant 3 : i32
    %604 = tpu.dynamic_rotate %601 by %c3_i32_68 dim 1 : vector<2x256xf32>, i32 -> vector<2x256xf32>
    %605 = vector.broadcast %603 : vector<1x256xf32> to vector<2x256xf32>
    %606 = arith.mulf %604, %605 : vector<2x256xf32>
    %607 = vector.broadcast %602 : f32 to vector<2x256xf32>
    %608 = arith.mulf %607, %606 : vector<2x256xf32>
    %609 = arith.addf %598, %608 : vector<2x256xf32>
    %c71 = arith.constant 71 : index
    %610 = memref.load %arg1[%c71] : memref<98xf32, #tpu.memory_space<smem>>
    %611 = vector.extract_strided_slice %7 {offsets = [8, 0], sizes = [1, 256], strides = [1, 1]} : vector<14x256xf32> to vector<1x256xf32>
    %c2_i32_69 = arith.constant 2 : i32
    %612 = tpu.dynamic_rotate %601 by %c2_i32_69 dim 1 : vector<2x256xf32>, i32 -> vector<2x256xf32>
    %613 = vector.broadcast %611 : vector<1x256xf32> to vector<2x256xf32>
    %614 = arith.mulf %612, %613 : vector<2x256xf32>
    %615 = vector.broadcast %610 : f32 to vector<2x256xf32>
    %616 = arith.mulf %615, %614 : vector<2x256xf32>
    %617 = arith.addf %609, %616 : vector<2x256xf32>
    %c72 = arith.constant 72 : index
    %618 = memref.load %arg1[%c72] : memref<98xf32, #tpu.memory_space<smem>>
    %619 = vector.extract_strided_slice %7 {offsets = [9, 0], sizes = [1, 256], strides = [1, 1]} : vector<14x256xf32> to vector<1x256xf32>
    %c1_i32_70 = arith.constant 1 : i32
    %620 = tpu.dynamic_rotate %601 by %c1_i32_70 dim 1 : vector<2x256xf32>, i32 -> vector<2x256xf32>
    %621 = vector.broadcast %619 : vector<1x256xf32> to vector<2x256xf32>
    %622 = arith.mulf %620, %621 : vector<2x256xf32>
    %623 = vector.broadcast %618 : f32 to vector<2x256xf32>
    %624 = arith.mulf %623, %622 : vector<2x256xf32>
    %625 = arith.addf %617, %624 : vector<2x256xf32>
    %c73 = arith.constant 73 : index
    %626 = memref.load %arg1[%c73] : memref<98xf32, #tpu.memory_space<smem>>
    %627 = vector.extract_strided_slice %7 {offsets = [10, 0], sizes = [1, 256], strides = [1, 1]} : vector<14x256xf32> to vector<1x256xf32>
    %628 = vector.broadcast %627 : vector<1x256xf32> to vector<2x256xf32>
    %629 = arith.mulf %601, %628 : vector<2x256xf32>
    %630 = vector.broadcast %626 : f32 to vector<2x256xf32>
    %631 = arith.mulf %630, %629 : vector<2x256xf32>
    %632 = arith.addf %625, %631 : vector<2x256xf32>
    %c74 = arith.constant 74 : index
    %633 = memref.load %arg1[%c74] : memref<98xf32, #tpu.memory_space<smem>>
    %634 = vector.extract_strided_slice %7 {offsets = [11, 0], sizes = [1, 256], strides = [1, 1]} : vector<14x256xf32> to vector<1x256xf32>
    %c255_i32_71 = arith.constant 255 : i32
    %635 = tpu.dynamic_rotate %601 by %c255_i32_71 dim 1 : vector<2x256xf32>, i32 -> vector<2x256xf32>
    %636 = vector.broadcast %634 : vector<1x256xf32> to vector<2x256xf32>
    %637 = arith.mulf %635, %636 : vector<2x256xf32>
    %638 = vector.broadcast %633 : f32 to vector<2x256xf32>
    %639 = arith.mulf %638, %637 : vector<2x256xf32>
    %640 = arith.addf %632, %639 : vector<2x256xf32>
    %c75 = arith.constant 75 : index
    %641 = memref.load %arg1[%c75] : memref<98xf32, #tpu.memory_space<smem>>
    %642 = vector.extract_strided_slice %7 {offsets = [12, 0], sizes = [1, 256], strides = [1, 1]} : vector<14x256xf32> to vector<1x256xf32>
    %c254_i32_72 = arith.constant 254 : i32
    %643 = tpu.dynamic_rotate %601 by %c254_i32_72 dim 1 : vector<2x256xf32>, i32 -> vector<2x256xf32>
    %644 = vector.broadcast %642 : vector<1x256xf32> to vector<2x256xf32>
    %645 = arith.mulf %643, %644 : vector<2x256xf32>
    %646 = vector.broadcast %641 : f32 to vector<2x256xf32>
    %647 = arith.mulf %646, %645 : vector<2x256xf32>
    %648 = arith.addf %640, %647 : vector<2x256xf32>
    %c76 = arith.constant 76 : index
    %649 = memref.load %arg1[%c76] : memref<98xf32, #tpu.memory_space<smem>>
    %650 = vector.extract_strided_slice %7 {offsets = [13, 0], sizes = [1, 256], strides = [1, 1]} : vector<14x256xf32> to vector<1x256xf32>
    %c253_i32_73 = arith.constant 253 : i32
    %651 = tpu.dynamic_rotate %601 by %c253_i32_73 dim 1 : vector<2x256xf32>, i32 -> vector<2x256xf32>
    %652 = vector.broadcast %650 : vector<1x256xf32> to vector<2x256xf32>
    %653 = arith.mulf %651, %652 : vector<2x256xf32>
    %654 = vector.broadcast %649 : f32 to vector<2x256xf32>
    %655 = arith.mulf %654, %653 : vector<2x256xf32>
    %656 = arith.addf %648, %655 : vector<2x256xf32>
    %657 = vector.extract_strided_slice %7 {offsets = [4, 0], sizes = [1, 256], strides = [1, 1]} : vector<14x256xf32> to vector<1x256xf32>
    %c240_i32_74 = arith.constant 240 : i32
    %658 = tpu.dynamic_rotate %6 by %c240_i32_74 dim 1 : vector<2x256xf32>, i32 -> vector<2x256xf32>
    %659 = vector.broadcast %657 : vector<1x256xf32> to vector<2x256xf32>
    %660 = arith.mulf %658, %659 : vector<2x256xf32>
    %c77 = arith.constant 77 : index
    %661 = memref.load %arg1[%c77] : memref<98xf32, #tpu.memory_space<smem>>
    %662 = vector.extract_strided_slice %7 {offsets = [7, 0], sizes = [1, 256], strides = [1, 1]} : vector<14x256xf32> to vector<1x256xf32>
    %c3_i32_75 = arith.constant 3 : i32
    %663 = tpu.dynamic_rotate %660 by %c3_i32_75 dim 1 : vector<2x256xf32>, i32 -> vector<2x256xf32>
    %664 = vector.broadcast %662 : vector<1x256xf32> to vector<2x256xf32>
    %665 = arith.mulf %663, %664 : vector<2x256xf32>
    %666 = vector.broadcast %661 : f32 to vector<2x256xf32>
    %667 = arith.mulf %666, %665 : vector<2x256xf32>
    %668 = arith.addf %656, %667 : vector<2x256xf32>
    %c78 = arith.constant 78 : index
    %669 = memref.load %arg1[%c78] : memref<98xf32, #tpu.memory_space<smem>>
    %670 = vector.extract_strided_slice %7 {offsets = [8, 0], sizes = [1, 256], strides = [1, 1]} : vector<14x256xf32> to vector<1x256xf32>
    %c2_i32_76 = arith.constant 2 : i32
    %671 = tpu.dynamic_rotate %660 by %c2_i32_76 dim 1 : vector<2x256xf32>, i32 -> vector<2x256xf32>
    %672 = vector.broadcast %670 : vector<1x256xf32> to vector<2x256xf32>
    %673 = arith.mulf %671, %672 : vector<2x256xf32>
    %674 = vector.broadcast %669 : f32 to vector<2x256xf32>
    %675 = arith.mulf %674, %673 : vector<2x256xf32>
    %676 = arith.addf %668, %675 : vector<2x256xf32>
    %c79 = arith.constant 79 : index
    %677 = memref.load %arg1[%c79] : memref<98xf32, #tpu.memory_space<smem>>
    %678 = vector.extract_strided_slice %7 {offsets = [9, 0], sizes = [1, 256], strides = [1, 1]} : vector<14x256xf32> to vector<1x256xf32>
    %c1_i32_77 = arith.constant 1 : i32
    %679 = tpu.dynamic_rotate %660 by %c1_i32_77 dim 1 : vector<2x256xf32>, i32 -> vector<2x256xf32>
    %680 = vector.broadcast %678 : vector<1x256xf32> to vector<2x256xf32>
    %681 = arith.mulf %679, %680 : vector<2x256xf32>
    %682 = vector.broadcast %677 : f32 to vector<2x256xf32>
    %683 = arith.mulf %682, %681 : vector<2x256xf32>
    %684 = arith.addf %676, %683 : vector<2x256xf32>
    %c80 = arith.constant 80 : index
    %685 = memref.load %arg1[%c80] : memref<98xf32, #tpu.memory_space<smem>>
    %686 = vector.extract_strided_slice %7 {offsets = [10, 0], sizes = [1, 256], strides = [1, 1]} : vector<14x256xf32> to vector<1x256xf32>
    %687 = vector.broadcast %686 : vector<1x256xf32> to vector<2x256xf32>
    %688 = arith.mulf %660, %687 : vector<2x256xf32>
    %689 = vector.broadcast %685 : f32 to vector<2x256xf32>
    %690 = arith.mulf %689, %688 : vector<2x256xf32>
    %691 = arith.addf %684, %690 : vector<2x256xf32>
    %c81 = arith.constant 81 : index
    %692 = memref.load %arg1[%c81] : memref<98xf32, #tpu.memory_space<smem>>
    %693 = vector.extract_strided_slice %7 {offsets = [11, 0], sizes = [1, 256], strides = [1, 1]} : vector<14x256xf32> to vector<1x256xf32>
    %c255_i32_78 = arith.constant 255 : i32
    %694 = tpu.dynamic_rotate %660 by %c255_i32_78 dim 1 : vector<2x256xf32>, i32 -> vector<2x256xf32>
    %695 = vector.broadcast %693 : vector<1x256xf32> to vector<2x256xf32>
    %696 = arith.mulf %694, %695 : vector<2x256xf32>
    %697 = vector.broadcast %692 : f32 to vector<2x256xf32>
    %698 = arith.mulf %697, %696 : vector<2x256xf32>
    %699 = arith.addf %691, %698 : vector<2x256xf32>
    %c82 = arith.constant 82 : index
    %700 = memref.load %arg1[%c82] : memref<98xf32, #tpu.memory_space<smem>>
    %701 = vector.extract_strided_slice %7 {offsets = [12, 0], sizes = [1, 256], strides = [1, 1]} : vector<14x256xf32> to vector<1x256xf32>
    %c254_i32_79 = arith.constant 254 : i32
    %702 = tpu.dynamic_rotate %660 by %c254_i32_79 dim 1 : vector<2x256xf32>, i32 -> vector<2x256xf32>
    %703 = vector.broadcast %701 : vector<1x256xf32> to vector<2x256xf32>
    %704 = arith.mulf %702, %703 : vector<2x256xf32>
    %705 = vector.broadcast %700 : f32 to vector<2x256xf32>
    %706 = arith.mulf %705, %704 : vector<2x256xf32>
    %707 = arith.addf %699, %706 : vector<2x256xf32>
    %c83 = arith.constant 83 : index
    %708 = memref.load %arg1[%c83] : memref<98xf32, #tpu.memory_space<smem>>
    %709 = vector.extract_strided_slice %7 {offsets = [13, 0], sizes = [1, 256], strides = [1, 1]} : vector<14x256xf32> to vector<1x256xf32>
    %c253_i32_80 = arith.constant 253 : i32
    %710 = tpu.dynamic_rotate %660 by %c253_i32_80 dim 1 : vector<2x256xf32>, i32 -> vector<2x256xf32>
    %711 = vector.broadcast %709 : vector<1x256xf32> to vector<2x256xf32>
    %712 = arith.mulf %710, %711 : vector<2x256xf32>
    %713 = vector.broadcast %708 : f32 to vector<2x256xf32>
    %714 = arith.mulf %713, %712 : vector<2x256xf32>
    %715 = arith.addf %707, %714 : vector<2x256xf32>
    %716 = vector.extract_strided_slice %7 {offsets = [5, 0], sizes = [1, 256], strides = [1, 1]} : vector<14x256xf32> to vector<1x256xf32>
    %c224_i32_81 = arith.constant 224 : i32
    %717 = tpu.dynamic_rotate %6 by %c224_i32_81 dim 1 : vector<2x256xf32>, i32 -> vector<2x256xf32>
    %718 = vector.broadcast %716 : vector<1x256xf32> to vector<2x256xf32>
    %719 = arith.mulf %717, %718 : vector<2x256xf32>
    %c84 = arith.constant 84 : index
    %720 = memref.load %arg1[%c84] : memref<98xf32, #tpu.memory_space<smem>>
    %721 = vector.extract_strided_slice %7 {offsets = [7, 0], sizes = [1, 256], strides = [1, 1]} : vector<14x256xf32> to vector<1x256xf32>
    %c3_i32_82 = arith.constant 3 : i32
    %722 = tpu.dynamic_rotate %719 by %c3_i32_82 dim 1 : vector<2x256xf32>, i32 -> vector<2x256xf32>
    %723 = vector.broadcast %721 : vector<1x256xf32> to vector<2x256xf32>
    %724 = arith.mulf %722, %723 : vector<2x256xf32>
    %725 = vector.broadcast %720 : f32 to vector<2x256xf32>
    %726 = arith.mulf %725, %724 : vector<2x256xf32>
    %727 = arith.addf %715, %726 : vector<2x256xf32>
    %c85 = arith.constant 85 : index
    %728 = memref.load %arg1[%c85] : memref<98xf32, #tpu.memory_space<smem>>
    %729 = vector.extract_strided_slice %7 {offsets = [8, 0], sizes = [1, 256], strides = [1, 1]} : vector<14x256xf32> to vector<1x256xf32>
    %c2_i32_83 = arith.constant 2 : i32
    %730 = tpu.dynamic_rotate %719 by %c2_i32_83 dim 1 : vector<2x256xf32>, i32 -> vector<2x256xf32>
    %731 = vector.broadcast %729 : vector<1x256xf32> to vector<2x256xf32>
    %732 = arith.mulf %730, %731 : vector<2x256xf32>
    %733 = vector.broadcast %728 : f32 to vector<2x256xf32>
    %734 = arith.mulf %733, %732 : vector<2x256xf32>
    %735 = arith.addf %727, %734 : vector<2x256xf32>
    %c86 = arith.constant 86 : index
    %736 = memref.load %arg1[%c86] : memref<98xf32, #tpu.memory_space<smem>>
    %737 = vector.extract_strided_slice %7 {offsets = [9, 0], sizes = [1, 256], strides = [1, 1]} : vector<14x256xf32> to vector<1x256xf32>
    %c1_i32_84 = arith.constant 1 : i32
    %738 = tpu.dynamic_rotate %719 by %c1_i32_84 dim 1 : vector<2x256xf32>, i32 -> vector<2x256xf32>
    %739 = vector.broadcast %737 : vector<1x256xf32> to vector<2x256xf32>
    %740 = arith.mulf %738, %739 : vector<2x256xf32>
    %741 = vector.broadcast %736 : f32 to vector<2x256xf32>
    %742 = arith.mulf %741, %740 : vector<2x256xf32>
    %743 = arith.addf %735, %742 : vector<2x256xf32>
    %c87 = arith.constant 87 : index
    %744 = memref.load %arg1[%c87] : memref<98xf32, #tpu.memory_space<smem>>
    %745 = vector.extract_strided_slice %7 {offsets = [10, 0], sizes = [1, 256], strides = [1, 1]} : vector<14x256xf32> to vector<1x256xf32>
    %746 = vector.broadcast %745 : vector<1x256xf32> to vector<2x256xf32>
    %747 = arith.mulf %719, %746 : vector<2x256xf32>
    %748 = vector.broadcast %744 : f32 to vector<2x256xf32>
    %749 = arith.mulf %748, %747 : vector<2x256xf32>
    %750 = arith.addf %743, %749 : vector<2x256xf32>
    %c88 = arith.constant 88 : index
    %751 = memref.load %arg1[%c88] : memref<98xf32, #tpu.memory_space<smem>>
    %752 = vector.extract_strided_slice %7 {offsets = [11, 0], sizes = [1, 256], strides = [1, 1]} : vector<14x256xf32> to vector<1x256xf32>
    %c255_i32_85 = arith.constant 255 : i32
    %753 = tpu.dynamic_rotate %719 by %c255_i32_85 dim 1 : vector<2x256xf32>, i32 -> vector<2x256xf32>
    %754 = vector.broadcast %752 : vector<1x256xf32> to vector<2x256xf32>
    %755 = arith.mulf %753, %754 : vector<2x256xf32>
    %756 = vector.broadcast %751 : f32 to vector<2x256xf32>
    %757 = arith.mulf %756, %755 : vector<2x256xf32>
    %758 = arith.addf %750, %757 : vector<2x256xf32>
    %c89 = arith.constant 89 : index
    %759 = memref.load %arg1[%c89] : memref<98xf32, #tpu.memory_space<smem>>
    %760 = vector.extract_strided_slice %7 {offsets = [12, 0], sizes = [1, 256], strides = [1, 1]} : vector<14x256xf32> to vector<1x256xf32>
    %c254_i32_86 = arith.constant 254 : i32
    %761 = tpu.dynamic_rotate %719 by %c254_i32_86 dim 1 : vector<2x256xf32>, i32 -> vector<2x256xf32>
    %762 = vector.broadcast %760 : vector<1x256xf32> to vector<2x256xf32>
    %763 = arith.mulf %761, %762 : vector<2x256xf32>
    %764 = vector.broadcast %759 : f32 to vector<2x256xf32>
    %765 = arith.mulf %764, %763 : vector<2x256xf32>
    %766 = arith.addf %758, %765 : vector<2x256xf32>
    %c90 = arith.constant 90 : index
    %767 = memref.load %arg1[%c90] : memref<98xf32, #tpu.memory_space<smem>>
    %768 = vector.extract_strided_slice %7 {offsets = [13, 0], sizes = [1, 256], strides = [1, 1]} : vector<14x256xf32> to vector<1x256xf32>
    %c253_i32_87 = arith.constant 253 : i32
    %769 = tpu.dynamic_rotate %719 by %c253_i32_87 dim 1 : vector<2x256xf32>, i32 -> vector<2x256xf32>
    %770 = vector.broadcast %768 : vector<1x256xf32> to vector<2x256xf32>
    %771 = arith.mulf %769, %770 : vector<2x256xf32>
    %772 = vector.broadcast %767 : f32 to vector<2x256xf32>
    %773 = arith.mulf %772, %771 : vector<2x256xf32>
    %774 = arith.addf %766, %773 : vector<2x256xf32>
    %775 = vector.extract_strided_slice %7 {offsets = [6, 0], sizes = [1, 256], strides = [1, 1]} : vector<14x256xf32> to vector<1x256xf32>
    %c208_i32_88 = arith.constant 208 : i32
    %776 = tpu.dynamic_rotate %6 by %c208_i32_88 dim 1 : vector<2x256xf32>, i32 -> vector<2x256xf32>
    %777 = vector.broadcast %775 : vector<1x256xf32> to vector<2x256xf32>
    %778 = arith.mulf %776, %777 : vector<2x256xf32>
    %c91 = arith.constant 91 : index
    %779 = memref.load %arg1[%c91] : memref<98xf32, #tpu.memory_space<smem>>
    %780 = vector.extract_strided_slice %7 {offsets = [7, 0], sizes = [1, 256], strides = [1, 1]} : vector<14x256xf32> to vector<1x256xf32>
    %c3_i32_89 = arith.constant 3 : i32
    %781 = tpu.dynamic_rotate %778 by %c3_i32_89 dim 1 : vector<2x256xf32>, i32 -> vector<2x256xf32>
    %782 = vector.broadcast %780 : vector<1x256xf32> to vector<2x256xf32>
    %783 = arith.mulf %781, %782 : vector<2x256xf32>
    %784 = vector.broadcast %779 : f32 to vector<2x256xf32>
    %785 = arith.mulf %784, %783 : vector<2x256xf32>
    %786 = arith.addf %774, %785 : vector<2x256xf32>
    %c92 = arith.constant 92 : index
    %787 = memref.load %arg1[%c92] : memref<98xf32, #tpu.memory_space<smem>>
    %788 = vector.extract_strided_slice %7 {offsets = [8, 0], sizes = [1, 256], strides = [1, 1]} : vector<14x256xf32> to vector<1x256xf32>
    %c2_i32_90 = arith.constant 2 : i32
    %789 = tpu.dynamic_rotate %778 by %c2_i32_90 dim 1 : vector<2x256xf32>, i32 -> vector<2x256xf32>
    %790 = vector.broadcast %788 : vector<1x256xf32> to vector<2x256xf32>
    %791 = arith.mulf %789, %790 : vector<2x256xf32>
    %792 = vector.broadcast %787 : f32 to vector<2x256xf32>
    %793 = arith.mulf %792, %791 : vector<2x256xf32>
    %794 = arith.addf %786, %793 : vector<2x256xf32>
    %c93 = arith.constant 93 : index
    %795 = memref.load %arg1[%c93] : memref<98xf32, #tpu.memory_space<smem>>
    %796 = vector.extract_strided_slice %7 {offsets = [9, 0], sizes = [1, 256], strides = [1, 1]} : vector<14x256xf32> to vector<1x256xf32>
    %c1_i32_91 = arith.constant 1 : i32
    %797 = tpu.dynamic_rotate %778 by %c1_i32_91 dim 1 : vector<2x256xf32>, i32 -> vector<2x256xf32>
    %798 = vector.broadcast %796 : vector<1x256xf32> to vector<2x256xf32>
    %799 = arith.mulf %797, %798 : vector<2x256xf32>
    %800 = vector.broadcast %795 : f32 to vector<2x256xf32>
    %801 = arith.mulf %800, %799 : vector<2x256xf32>
    %802 = arith.addf %794, %801 : vector<2x256xf32>
    %c94 = arith.constant 94 : index
    %803 = memref.load %arg1[%c94] : memref<98xf32, #tpu.memory_space<smem>>
    %804 = vector.extract_strided_slice %7 {offsets = [10, 0], sizes = [1, 256], strides = [1, 1]} : vector<14x256xf32> to vector<1x256xf32>
    %805 = vector.broadcast %804 : vector<1x256xf32> to vector<2x256xf32>
    %806 = arith.mulf %778, %805 : vector<2x256xf32>
    %807 = vector.broadcast %803 : f32 to vector<2x256xf32>
    %808 = arith.mulf %807, %806 : vector<2x256xf32>
    %809 = arith.addf %802, %808 : vector<2x256xf32>
    %c95 = arith.constant 95 : index
    %810 = memref.load %arg1[%c95] : memref<98xf32, #tpu.memory_space<smem>>
    %811 = vector.extract_strided_slice %7 {offsets = [11, 0], sizes = [1, 256], strides = [1, 1]} : vector<14x256xf32> to vector<1x256xf32>
    %c255_i32_92 = arith.constant 255 : i32
    %812 = tpu.dynamic_rotate %778 by %c255_i32_92 dim 1 : vector<2x256xf32>, i32 -> vector<2x256xf32>
    %813 = vector.broadcast %811 : vector<1x256xf32> to vector<2x256xf32>
    %814 = arith.mulf %812, %813 : vector<2x256xf32>
    %815 = vector.broadcast %810 : f32 to vector<2x256xf32>
    %816 = arith.mulf %815, %814 : vector<2x256xf32>
    %817 = arith.addf %809, %816 : vector<2x256xf32>
    %c96 = arith.constant 96 : index
    %818 = memref.load %arg1[%c96] : memref<98xf32, #tpu.memory_space<smem>>
    %819 = vector.extract_strided_slice %7 {offsets = [12, 0], sizes = [1, 256], strides = [1, 1]} : vector<14x256xf32> to vector<1x256xf32>
    %c254_i32_93 = arith.constant 254 : i32
    %820 = tpu.dynamic_rotate %778 by %c254_i32_93 dim 1 : vector<2x256xf32>, i32 -> vector<2x256xf32>
    %821 = vector.broadcast %819 : vector<1x256xf32> to vector<2x256xf32>
    %822 = arith.mulf %820, %821 : vector<2x256xf32>
    %823 = vector.broadcast %818 : f32 to vector<2x256xf32>
    %824 = arith.mulf %823, %822 : vector<2x256xf32>
    %825 = arith.addf %817, %824 : vector<2x256xf32>
    %c97 = arith.constant 97 : index
    %826 = memref.load %arg1[%c97] : memref<98xf32, #tpu.memory_space<smem>>
    %827 = vector.extract_strided_slice %7 {offsets = [13, 0], sizes = [1, 256], strides = [1, 1]} : vector<14x256xf32> to vector<1x256xf32>
    %c253_i32_94 = arith.constant 253 : i32
    %828 = tpu.dynamic_rotate %778 by %c253_i32_94 dim 1 : vector<2x256xf32>, i32 -> vector<2x256xf32>
    %829 = vector.broadcast %827 : vector<1x256xf32> to vector<2x256xf32>
    %830 = arith.mulf %828, %829 : vector<2x256xf32>
    %831 = vector.broadcast %826 : f32 to vector<2x256xf32>
    %832 = arith.mulf %831, %830 : vector<2x256xf32>
    %833 = arith.addf %825, %832 : vector<2x256xf32>
    %c0_95 = arith.constant 0 : index
    %c0_96 = arith.constant 0 : index
    %834 = vector.load %arg6[%c0_95, %c0_96] : memref<2x256xf32, #tpu.memory_space<vmem>>, vector<2x256xf32>
    tpu.vector_store %arg6[%c0_95, %c0_96], %833 {strides = array<i32>} : memref<2x256xf32, #tpu.memory_space<vmem>>, vector<2x256xf32>,
    return
  }
  func.func @transform_0(%arg0: i32) -> i32 {
    %c0_i32 = arith.constant 0 : i32
    %c0_i32_0 = arith.constant 0 : i32
    return %c0_i32 : i32
  }
  func.func @transform_1(%arg0: i32) -> i32 {
    %c0_i32 = arith.constant 0 : i32
    %c0_i32_0 = arith.constant 0 : i32
    return %c0_i32 : i32
  }
  func.func @transform_2(%arg0: i32) -> (i32, i32) {
    %c0_i32 = arith.constant 0 : i32
    %c0_i32_0 = arith.constant 0 : i32
    %c0_i32_1 = arith.constant 0 : i32
    return %c0_i32, %c0_i32_0 : i32, i32
  }
  func.func @transform_3(%arg0: i32) -> (i32, i32, i32) {
    %c0_i32 = arith.constant 0 : i32
    %c0_i32_0 = arith.constant 0 : i32
    %c0_i32_1 = arith.constant 0 : i32
    return %arg0, %c0_i32, %c0_i32_0 : i32, i32, i32
  }
  func.func @transform_4(%arg0: i32) -> (i32, i32, i32) {
    %c0_i32 = arith.constant 0 : i32
    %c0_i32_0 = arith.constant 0 : i32
    %c0_i32_1 = arith.constant 0 : i32
    return %arg0, %c0_i32, %c0_i32_0 : i32, i32, i32
  }
  func.func @transform_5(%arg0: i32) -> (i32, i32) {
    %c0_i32 = arith.constant 0 : i32
    %c0_i32_0 = arith.constant 0 : i32
    return %arg0, %c0_i32 : i32, i32
  }
}

</mosaic_0001>

<bundles_post_ra>
// kernel: tpu_custom_call.1
= control target key start
LH: loop header
LB: loop body
LE: loop exit
PB: predicated region body
PF: predicated region fallthrough
CT: control target
= control target key end

     0   :  { %11 = vsyncpa [#allocation6], 0  ;;  %s3383_s0 = inlined_call_operand.vmem [shape: f32[98], index: 0, kind: input, shape index: {}]   ;;  %s3384_s1 = inlined_call_operand.<no memory space> [shape: f32[1], index: 1, kind: input, shape index: {}]   ;;  %s3385_s2 = inlined_call_operand.hbm [shape: f32[14,256], index: 2, kind: input, shape index: {}]   ;;  %s3386_s3 = inlined_call_operand.hbm [shape: f32[2,4,256], index: 3, kind: input, shape index: {}]   ;;  %s3387_s4 = inlined_call_operand.hbm [shape: f32[2,4,256], index: 4, kind: input, shape index: {}]   ;;  %s3388_s5 = inlined_call_operand.hbm [shape: f32[2,256], index: 5, kind: output, shape index: {}]  }
   0x1   :  { %12 = vsyncpa [#allocation4], 0 }
   0x2   :  { %13 = vsyncpa [#allocation9], 0  ;;  %s43_s20 = sshll.u32 %s3386_s3, 4  ;;  %s44_s20 = int_to_ptr.hbm [resolvable:$true] %s43_s20 }
   0x3   :  { %14 = vsyncpa [#allocation5], 0  ;;  %s1939_s21 = smov [#allocation8]   ;;  %s20_s25 = sshll.u32 %s3383_s0, 4  ;;  %s21_s25 = int_to_ptr.vmem [resolvable:$true] %s20_s25 }
   0x4   :  { %s45_s22 = sshll.u32 %s1939_s21, 4  ;;  %s1940_s26 = smov 128   ;;  %s46_s22 = int_to_ptr.vmem [resolvable:$true] %s45_s22 }
   0x5   :  { %s1941_s27 = smov 8   ;;  %s1942_s28 = smov [#allocation3]  }
   0x6   :  { %51 = dma.hbm_to_vmem [thread:$0]  %s44_s20, 256, %s46_s22, [#allocation9], %s1940_s26, %s1940_s26, %s1941_s27  }
   0x7   :  { %23 = dma.vmem_to_smem %s21_s25, 16, %s1942_s28, [#allocation6]  }
   0x8   :  { %s30_s6 = sshll.u32 %s3385_s2, 4  ;;  %s1943_s3 = smov [#allocation7]   ;;  %s31_s6 = int_to_ptr.hbm [resolvable:$true] %s30_s6 }
   0x9   :  { %s32_s7 = sshll.u32 %s1943_s3, 4  ;;  %s56_s10 = sshll.u32 %s3387_s4, 4  ;;  %s33_s7 = int_to_ptr.vmem [resolvable:$true] %s32_s7  ;;  %s57_s10 = int_to_ptr.hbm [resolvable:$true] %s56_s10 }
   0xa   :  { %s1944_s11 = smov 256   ;;  %s1945_s0 = smov 16  }
   0xb   :  { %38 = dma.hbm_to_vmem [thread:$0]  %s31_s6, 512, %s33_s7, [#allocation4], %s1944_s11, %s1944_s11, %s1945_s0  }
   0xc   :  { %s1946_s12 = smov [#allocation10]  }
   0xd   :  { %s58_s13 = sshll.u32 %s1946_s12, 4  ;;  %s59_s13 = int_to_ptr.vmem [resolvable:$true] %s58_s13 }
   0xe   :  { %64 = dma.hbm_to_vmem [thread:$0]  %s57_s10, 256, %s59_s13, [#allocation9], %s1940_s26, %s1940_s26, %s1941_s27  }
   0xf   :  { %1931 = dma.done.wait [#allocation6], 16  }
  0x10   :  { %1932 = vsyncadd [#allocation6], 4294967280 }
  0x11   :  { %1933 = dma.done.wait [#allocation4], 512  }
  0x12   :  { %1934 = vsyncadd [#allocation4], 4294966784 }
  0x13   :  { %1935 = dma.done.wait [#allocation9], 512  }
  0x14   :  { %1936 = vsyncadd [#allocation9], 4294966784 }
  0x15   :  { %81 = sfence }
  0x16   :  { %v82_v0 = vld [vmem:[#allocation8] sm:$0xff]  ;;  %v83_v1 = vld [vmem:[#allocation8 + $0x8] sm:$0xff]  ;;  %v84_v2 = vld [vmem:[#allocation10] sm:$0xff]  ;;  %vm101_vm0 = vcmask 1043456   ;;  %s1727_s2 = sld [smem:[#allocation3 + $0x18]]  ;;  %vm183_vm1 = vcmask 1041409  }
  0x17   :  { %v85_v3 = vld [vmem:[#allocation10 + $0x8] sm:$0xff]  ;;  %v86_v4 = vsub.f32 %v82_v0, %v84_v2  ;;  %v2006_v26 = vld [vmem:[#allocation7] sm:$0xff]  ;;  %v2008_v30 = vld [vmem:[#allocation7 + $0x8] sm:$0xff]  ;;  %s1947_s4 = smov 48   ;;  %s1948_s14 = smov 32   ;;  %vm1681_vm14 = vcmask 1041408  }
  0x18   :  { %v87_v5 = vsub.f32 %v83_v1, %v85_v3  ;;  %v2010_v32 = vld [vmem:[#allocation7 + $0x10] sm:$0x3f]  ;;  %v2013_v36 = vperm.slane %v2006_v26, 3  ;;  %v2015_v37 = vld [vmem:[#allocation7 + $0x18] sm:$0x3f]  ;;  %v2018_v41 = vperm.slane %v2008_v30, 3 }
  0x19   :  { %90 = vst [vmem:[#allocation1] ss:$2 sm:$0xff] %v86_v4  ;;  %v2021_v43 = vperm.slane %v2010_v32, 2  ;;  %v2025_v46 = vperm.slane %v2015_v37, 2  ;;  %s1949_s15 = smov 3   ;;  %s1950_s16 = smov 2  }
  0x1a   :  { %94 = vst [vmem:[#allocation1 + $0x10] ss:$2 sm:$0xff] %v87_v5  ;;  %s1951_s17 = smov 1   ;;  %s1952_s18 = smov 127  }
  0x1b   :  { %3404 = vst [vmem:[#allocation16_spill] sm:$0xff] %v2013_v36  ;;  %s1953_s19 = smov 126   ;;  %s1954_s20 = smov 125  }
  0x1c   :  { %3405 = vst [vmem:[#allocation17_spill] sm:$0xff] %v2018_v41  ;;  %v582_v51 = vstv %s1727_s2  ;;  %s1955_s21 = smov 112   ;;  %s201_s22 = sld [smem:[#allocation3]] }
  0x1d   :  { %s2240_s23 = sld [smem:[#allocation3 + $0x1]] }
  0x1e   :  { %s2242_s24 = sld [smem:[#allocation3 + $0x2]] }
  0x1f   :  { %s2249_s25 = sld [smem:[#allocation3 + $0x3]] }
  0x20   :  { %v91_v6 = vld.sshfl [vmem:[#allocation1] sm:$0xff pattern:$0x75316420]  ;;  %v92_v7 = vld.sshfl [vmem:[#allocation1 + $0x8] sm:$0xff pattern:$0x75316420] }
  0x21   :  { %v95_v8 = vld.sshfl [vmem:[#allocation1 + $0x10] sm:$0xff pattern:$0x75316420]  ;;  %v102_v9 = vsel %vm101_vm0, %v91_v6, -inf  ;;  %v109_v10 = vsel %vm101_vm0, %v92_v7, -inf  ;;  %s2292_s28 = sld [smem:[#allocation3 + $0x5]] }
  0x22   :  { %v103_v11 = vrot.slane %v102_v9, 4  ;;  %v116_v12 = vsel %vm101_vm0, %v95_v8, -inf  ;;  %v96_v13 = vld.sshfl [vmem:[#allocation1 + $0x18] sm:$0xff pattern:$0x75316420]  ;;  %v110_v14 = vrot.slane %v109_v10, 4 }
  0x23   :  { %v117_v15 = vrot.slane %v116_v12, 4  ;;  %v123_v16 = vsel %vm101_vm0, %v96_v13, -inf  ;;  %130 = vst [vmem:[#allocation1] ss:$2 sm:$0xff] %v86_v4  ;;  %v3394_v8 = vperm.slane %v2006_v26, 0  ;;  %s2297_s29 = sld [smem:[#allocation3 + $0x6]] }
  0x24   :  { %v104_v17 = vmax.f32 %v102_v9, %v103_v11  ;;  %v111_v18 = vmax.f32 %v109_v10, %v110_v14  ;;  %v124_v19 = vrot.slane %v123_v16, 4  ;;  %134 = vst [vmem:[#allocation1 + $0x10] ss:$2 sm:$0xff] %v87_v5  ;;  %v192_v5 = vlaneseq  ;;  %s2319_s30 = sld [smem:[#allocation3 + $0x7]] }
  0x25   :  { %v118_v20 = vmax.f32 %v116_v12, %v117_v15  ;;  %v3393_v12 = vperm.slane %v2008_v30, 0  ;;  %s2345_s6 = sld [smem:[#allocation3 + $0x8]] }
  0x26   :  { %v105_v21 = vrot.slane %v104_v17, 2  ;;  %v112_v22 = vrot.slane %v111_v18, 2  ;;  %v125_v23 = vmax.f32 %v123_v16, %v124_v19  ;;  %v2072_v7 = vand.u32 127, %v192_v5  ;;  %s2360_s3 = sld [smem:[#allocation3 + $0x9]] }
  0x27   :  { %v119_v24 = vrot.slane %v118_v20, 2  ;;  %v2238_v5 = vperm.slane %v2006_v26, 7  ;;  %s2364_s7 = sld [smem:[#allocation3 + $0xa]] }
  0x28   :  { %v106_v25 = vmax.f32 %v104_v17, %v105_v21  ;;  %v113_v27 = vmax.f32 %v111_v18, %v112_v22  ;;  %v126_v28 = vrot.slane %v125_v23, 2  ;;  %vm194_vm2 = vcmp.lt.s32.totalorder %v2072_v7, 48  ;;  %s1714_s8 = sld [smem:[#allocation3 + $0xb]] }
  0x29   :  { %v120_v29 = vmax.f32 %v118_v20, %v119_v24  ;;  %vm317_vm3 = vcmp.lt.s32.totalorder %v2072_v7, 32  ;;  %v3392_v17 = vperm.slane %v2006_v26, 1  ;;  %v3391_v20 = vperm.slane %v2008_v30, 1  ;;  %s1715_s9 = sld [smem:[#allocation3 + $0xc]] }
  0x2a   :  { %v107_v31 = vrot.slane %v106_v25, 1  ;;  %v114_v33 = vrot.slane %v113_v27, 1  ;;  %v127_v34 = vmax.f32 %v125_v23, %v126_v28  ;;  %vm420_vm4 = vcmp.lt.s32.totalorder %v2072_v7, 16  ;;  %s2398_s10 = sld [smem:[#allocation3 + $0xd]] }
  0x2b   :  { %v121_v35 = vrot.slane %v120_v29, 1  ;;  %vm206_vm5 = vcmp.lt.s32.totalorder %v2072_v7, 3  ;;  %vm223_vm6 = vcmp.lt.s32.totalorder %v2072_v7, 2  ;;  %vm240_vm7 = vcmp.lt.s32.totalorder %v2072_v7, 1  ;;  %s2402_s11 = sld [smem:[#allocation3 + $0xe]] }
  0x2c   :  { %v108_v38 = vmax.f32 %v106_v25, %v107_v31  ;;  %v115_v39 = vmax.f32 %v113_v27, %v114_v33  ;;  %v128_v40 = vrot.slane %v127_v34, 1  ;;  %v3390_v25 = vperm.slane %v2006_v26, 2  ;;  %s2416_s12 = sld [smem:[#allocation3 + $0xf]] }
  0x2d   :  { %v122_v42 = vmax.f32 %v120_v29, %v121_v35  ;;  %v3389_v31 = vperm.slane %v2008_v30, 2  ;;  %vm267_vm8 = vcmp.lt.s32.totalorder %v2072_v7, 127  ;;  %vm284_vm9 = vcmp.lt.s32.totalorder %v2072_v7, 126  ;;  %s2430_s13 = sld [smem:[#allocation3 + $0x10]] }
  0x2e   :  { %v521_v44 = vmul.f32 %v2013_v36, %v108_v38  ;;  %v129_v45 = vmax.f32 %v127_v34, %v128_v40  ;;  %v522_v47 = vmul.f32 %v2018_v41, %v115_v39  ;;  %vm301_vm10 = vcmp.lt.s32.totalorder %v2072_v7, 125  ;;  %s1720_s2 = sld [smem:[#allocation3 + $0x11]] }
  0x2f   :  { %v2029_v48 = vsel %vm183_vm1, %v122_v42, %v108_v38  ;;  %v523_v49 = vmul.f32 %v2013_v36, %v122_v42  ;;  %s2472_s26 = sld [smem:[#allocation3 + $0x17]]  ;;  %vm645_vm11 = vcmp.lt.s32.totalorder %v2072_v7, 112  ;;  %vm748_vm12 = vcmp.lt.s32.totalorder %v2072_v7, 96 }
  0x30   :  { %v578_v50 = vmul.f32 %v521_v44, %v2021_v43  ;;  %188 = vrot.lane.b32.xlu0 %v2029_v48, %s1947_s4  ;;  %v524_v52 = vmul.f32 %v2018_v41, %v129_v45  ;;  %v579_v53 = vmul.f32 %v522_v47, %v2025_v46  ;;  %313 = vrot.lane.b32.xlu2 %v2029_v48, %s1948_s14  ;;  %s2474_s27 = sld [smem:[#allocation3 + $0x16]]  ;;  %vm851_vm13 = vcmp.lt.s32.totalorder %v2072_v7, 80 }
  0x31   :  { %v580_v54 = vmul.f32 %v523_v49, %v2021_v43  ;;  %416 = vrot.lane.b32.xlu1 %v2029_v48, %s1945_s0  ;;  %v2044_v62 = vsel %vm183_vm1, %v129_v45, %v115_v39  ;;  %v530_v3 = vrot.slane %v523_v49, 7 }
  0x32   :  { %v581_v55 = vmul.f32 %v524_v52, %v2025_v46  ;;  %v532_v56 = vrot.slane %v524_v52, 7  ;;  %v583_v57 = vmul.f32 %v582_v51, %v578_v50  ;;  %v584_v59 = vmul.f32 %v582_v51, %v579_v53 }
  0x33   :  { %v585_v58 = vmul.f32 %v582_v51, %v580_v54  ;;  %v531_v4 = vsel %vm183_vm1, %v530_v3, %v521_v44 }
  0x34   :  { %v586_v60 = vmul.f32 %v582_v51, %v581_v55  ;;  %v533_v0 = vsel %vm183_vm1, %v532_v56, %v522_v47 }
  0x35   :  { %v591_v61 = vrot.slane %v585_v58, 7 }
  0x36   :  { %v593_v63 = vrot.slane %v586_v60, 7 }
  0x37   :  { %v2048_v1 = vsel %vm183_vm1, %v591_v61, %v583_v57 }
  0x38   :  { %v2051_v2 = vsel %vm183_vm1, %v593_v63, %v584_v59  ;;  %190 = vrot.lane.b32.xlu0 %v2044_v62, %s1947_s4  ;;  %418 = vrot.lane.b32.xlu2 %v2044_v62, %s1945_s0 }
  0x39   :  { %538 = vrot.lane.b32.xlu1 %v533_v0, %s1949_s15 }
  0x40   :  { %315 = vrot.lane.b32.xlu0 %v2044_v62, %s1948_s14  ;;  %550 = vrot.lane.b32.xlu2 %v531_v4, %s1950_s16 }
  0x41   :  { %564 = vrot.lane.b32.xlu1 %v531_v4, %s1951_s17 }
  0x48   :  { %536 = vrot.lane.b32.xlu0 %v531_v4, %s1949_s15  ;;  %566 = vrot.lane.b32.xlu2 %v533_v0, %s1951_s17 }
  0x49   :  { %602 = vrot.lane.b32.xlu1 %v533_v0, %s1952_s18 }
  0x50   :  { %552 = vrot.lane.b32.xlu0 %v533_v0, %s1950_s16  ;;  %614 = vrot.lane.b32.xlu2 %v531_v4, %s1953_s19 }
  0x51   :  { %628 = vrot.lane.b32.xlu1 %v531_v4, %s1954_s20 }
  0x58   :  { %600 = vrot.lane.b32.xlu0 %v531_v4, %s1952_s18  ;;  %630 = vrot.lane.b32.xlu2 %v533_v0, %s1954_s20  ;;  %v2235_v4 = vperm.slane %v2008_v30, 7 }
  0x60   :  { %616 = vrot.lane.b32.xlu0 %v533_v0, %s1953_s19 }
  0x8a   :  { %v314_v15 = vpop.permute.xlu2 %313 }
  0x92   :  { %v419_v23 = vpop.permute.xlu2 %418 }
  0x9a   :  { %v2154_v29 = vpop.permute.xlu2 %550 }
  0xa2   :  { %v189_v6 = vpop.permute.xlu0 %188  ;;  %v2173_v35 = vpop.permute.xlu2 %566 }
  0xa3   :  { %v417_v24 = vpop.permute.xlu1 %416 }
  0xa4   :  { %v422_v27 = vsel %vm420_vm4, %v419_v23, %v417_v24  ;;  %v421_v33 = vsel %vm420_vm4, %v417_v24, %v419_v23 }
  0xa5   :  { %v2152_v28 = vmul.f32 %v3390_v25, %v422_v27  ;;  %v2167_v34 = vmul.f32 %v3389_v31, %v421_v33  ;;  %v2267_v33 = vperm.slane %v2010_v32, 1  ;;  %v230_v25 = vstv %s2240_s23  ;;  %s1722_s23 = sld [smem:[#allocation3 + $0x13]] }
  0xaa   :  { %v191_v9 = vpop.permute.xlu0 %190  ;;  %v2183_v38 = vpop.permute.xlu2 %614 }
  0xab   :  { %v196_v10 = vsel %vm194_vm2, %v191_v9, %v189_v6  ;;  %v195_v13 = vsel %vm194_vm2, %v189_v6, %v191_v9  ;;  %3406 = vst [vmem:[#allocation18_spill] sm:$0xff] %v2183_v38  ;;  %v2187_v40 = vpop.permute.xlu1 %538 }
  0xac   :  { %v2080_v11 = vmul.f32 %v3394_v8, %v196_v10  ;;  %v2093_v14 = vmul.f32 %v3393_v12, %v195_v13  ;;  %v213_v13 = vstv %s201_s22  ;;  %s1721_s22 = sld [smem:[#allocation3 + $0x12]] }
  0xae   :  { %236 = vrot.lane.b32.xlu0 %v2080_v11, %s1951_s17  ;;  %219 = vrot.lane.b32.xlu2 %v2080_v11, %s1950_s16 }
  0xaf   :  { %202 = vrot.lane.b32.xlu1 %v2080_v11, %s1949_s15 }
  0xb2   :  { %v316_v16 = vpop.permute.xlu0 %315  ;;  %v2195_v42 = vpop.permute.xlu2 %630 }
  0xb3   :  { %v319_v18 = vsel %vm317_vm3, %v316_v16, %v314_v15  ;;  %v318_v21 = vsel %vm317_vm3, %v314_v15, %v316_v16  ;;  %3407 = vst [vmem:[#allocation19_spill] sm:$0xff] %v2195_v42  ;;  %v2199_v45 = vpop.permute.xlu1 %564  ;;  %v2253_v16 = vperm.slane %v2010_v32, 0 }
  0xb4   :  { %v2113_v19 = vmul.f32 %v3392_v17, %v319_v18  ;;  %v2126_v22 = vmul.f32 %v3391_v20, %v318_v21  ;;  %v2256_v18 = vperm.slane %v2015_v37, 0  ;;  %v247_v20 = vstv %s2242_s24  ;;  %s2452_s24 = sld [smem:[#allocation3 + $0x15]] }
  0xb6   :  { %265 = vrot.lane.b32.xlu0 %v2093_v14, %s1952_s18  ;;  %221 = vrot.lane.b32.xlu2 %v2093_v14, %s1950_s16 }
  0xb7   :  { %204 = vrot.lane.b32.xlu1 %v2093_v14, %s1949_s15 }
  0xba   :  { %v2185_v39 = vpop.permute.xlu0 %536 }
  0xbb   :  { %v2209_v50 = vpop.permute.xlu1 %602 }
  0xbe   :  { %297 = vrot.lane.b32.xlu0 %v2080_v11, %s1954_s20  ;;  %263 = vrot.lane.b32.xlu2 %v2080_v11, %s1952_s18 }
  0xbf   :  { %238 = vrot.lane.b32.xlu1 %v2093_v14, %s1951_s17 }
  0xc2   :  { %v2197_v44 = vpop.permute.xlu0 %552 }
  0xc3   :  { %v2217_v53 = vpop.permute.xlu1 %628 }
  0xc4   :  { %3410 = vst [vmem:[#allocation22_spill] sm:$0xff] %v2217_v53 }
  0xc6   :  { %282 = vrot.lane.b32.xlu2 %v2093_v14, %s1953_s19  ;;  %339 = vrot.lane.b32.xlu0 %v2113_v19, %s1950_s16 }
  0xc7   :  { %280 = vrot.lane.b32.xlu1 %v2080_v11, %s1953_s19 }
  0xca   :  { %v2207_v49 = vpop.permute.xlu0 %600 }
  0xcb   :  { %3408 = vst [vmem:[#allocation20_spill] sm:$0xff] %v2207_v49 }
  0xce   :  { %355 = vrot.lane.b32.xlu0 %v2126_v22, %s1951_s17  ;;  %327 = vrot.lane.b32.xlu2 %v2126_v22, %s1949_s15 }
  0xcf   :  { %299 = vrot.lane.b32.xlu1 %v2093_v14, %s1954_s20 }
  0xd2   :  { %v2213_v52 = vpop.permute.xlu0 %616 }
  0xd3   :  { %3409 = vst [vmem:[#allocation21_spill] sm:$0xff] %v2213_v52 }
  0xd6   :  { %389 = vrot.lane.b32.xlu0 %v2113_v19, %s1953_s19  ;;  %353 = vrot.lane.b32.xlu2 %v2113_v19, %s1951_s17 }
  0xd7   :  { %325 = vrot.lane.b32.xlu1 %v2113_v19, %s1949_s15 }
  0xde   :  { %405 = vrot.lane.b32.xlu0 %v2126_v22, %s1954_s20  ;;  %377 = vrot.lane.b32.xlu2 %v2126_v22, %s1952_s18 }
  0xdf   :  { %341 = vrot.lane.b32.xlu1 %v2126_v22, %s1950_s16 }
  0xe6   :  { %428 = vrot.lane.b32.xlu0 %v2152_v28, %s1949_s15  ;;  %403 = vrot.lane.b32.xlu2 %v2113_v19, %s1954_s20 }
  0xe7   :  { %375 = vrot.lane.b32.xlu1 %v2113_v19, %s1952_s18 }
  0xee   :  { %444 = vrot.lane.b32.xlu0 %v2167_v34, %s1950_s16  ;;  %442 = vrot.lane.b32.xlu2 %v2152_v28, %s1950_s16 }
  0xef   :  { %391 = vrot.lane.b32.xlu1 %v2126_v22, %s1953_s19 }
  0xf6   :  { %478 = vrot.lane.b32.xlu0 %v2152_v28, %s1952_s18  ;;  %458 = vrot.lane.b32.xlu2 %v2167_v34, %s1951_s17 }
  0xf7   :  { %430 = vrot.lane.b32.xlu1 %v2167_v34, %s1949_s15 }
  0xfe   :  { %494 = vrot.lane.b32.xlu0 %v2167_v34, %s1953_s19  ;;  %492 = vrot.lane.b32.xlu2 %v2152_v28, %s1953_s19 }
  0xff   :  { %456 = vrot.lane.b32.xlu1 %v2152_v28, %s1951_s17 }
 0x106   :  { %508 = vrot.lane.b32.xlu2 %v2167_v34, %s1954_s20  ;;  %641 = vrot.lane.b32.xlu0 %v2029_v48, %s1955_s21 }
 0x107   :  { %480 = vrot.lane.b32.xlu1 %v2167_v34, %s1952_s18 }
 0x108   :  { %v220_v47 = vpop.permute.xlu2 %219 }
 0x10f   :  { %506 = vrot.lane.b32.xlu1 %v2152_v28, %s1954_s20 }
 0x110   :  { %v222_v51 = vpop.permute.xlu2 %221 }
 0x111   :  { %v224_v21 = vsel %vm223_vm6, %v220_v47, %v222_v51  ;;  %v225_v23 = vsel %vm223_vm6, %v222_v51, %v220_v47 }
 0x112   :  { %v228_v47 = vmul.f32 %v2253_v16, %v225_v23  ;;  %v229_v51 = vmul.f32 %v2256_v18, %v224_v21  ;;  %v257_v21 = vstv %s2249_s25  ;;  %s2458_s25 = sld [smem:[#allocation3 + $0x14]] }
 0x114   :  { %v232_v12 = vmul.f32 %v230_v25, %v229_v51 }
 0x117   :  { %643 = vrot.lane.b32.xlu1 %v2044_v62, %s1955_s21 }
 0x118   :  { %v2219_v54 = vpop.permute.xlu2 %263 }
 0x120   :  { %v237_v55 = vpop.permute.xlu0 %236  ;;  %v2223_v59 = vpop.permute.xlu2 %282 }
 0x121   :  { %v203_v56 = vpop.permute.xlu1 %202 }
 0x128   :  { %v2221_v57 = vpop.permute.xlu0 %265  ;;  %v2228_v63 = vpop.permute.xlu2 %327 }
 0x129   :  { %v205_v58 = vpop.permute.xlu1 %204 }
 0x12a   :  { %v207_v0 = vsel %vm206_vm5, %v203_v56, %v205_v58  ;;  %v208_v3 = vsel %vm206_vm5, %v205_v58, %v203_v56  ;;  %v2270_v56 = vperm.slane %v2015_v37, 1 }
 0x12b   :  { %v211_v6 = vmul.f32 %v2238_v5, %v208_v3  ;;  %v212_v9 = vmul.f32 %v2235_v4, %v207_v0  ;;  %v178_v3 = vstv %s3384_s1  ;;  %s2287_s1 = sld [smem:[#allocation3 + $0x4]] }
 0x12d   :  { %v214_v58 = vmul.f32 %v213_v13, %v211_v6  ;;  %v215_v0 = vmul.f32 %v213_v13, %v212_v9  ;;  %v255_v6 = vmul.f32 %v2021_v43, %v2080_v11  ;;  %v256_v9 = vmul.f32 %v2025_v46, %v2093_v14 }
 0x12f   :  { %v216_v13 = vadd.f32 %v214_v58, %v178_v3  ;;  %v217_v17 = vadd.f32 %v215_v0, %v178_v3  ;;  %v258_v11 = vmul.f32 %v257_v21, %v255_v6  ;;  %v259_v14 = vmul.f32 %v257_v21, %v256_v9 }
 0x130   :  { %v2225_v60 = vpop.permute.xlu0 %297  ;;  %v2300_v3 = vperm.slane %v2010_v32, 3  ;;  %v2325_v6 = vperm.slane %v2015_v37, 5 }
 0x131   :  { %v239_v61 = vpop.permute.xlu1 %238  ;;  %v234_v0 = vadd.f32 %v232_v12, %v217_v17 }
 0x132   :  { %v241_v24 = vsel %vm240_vm7, %v237_v55, %v239_v61  ;;  %v242_v27 = vsel %vm240_vm7, %v239_v61, %v237_v55  ;;  %v2279_v61 = vpop.permute.xlu2 %353 }
 0x133   :  { %v245_v31 = vmul.f32 %v2267_v33, %v242_v27  ;;  %v246_v55 = vmul.f32 %v2270_v56, %v241_v24  ;;  %v231_v27 = vmul.f32 %v230_v25, %v228_v47  ;;  %v2303_v47 = vperm.slane %v2015_v37, 3 }
 0x134   :  { %v269_v25 = vsel %vm267_vm8, %v2221_v57, %v2219_v54 }
 0x135   :  { %v248_v8 = vmul.f32 %v247_v20, %v245_v31  ;;  %v249_v41 = vmul.f32 %v247_v20, %v246_v55  ;;  %v233_v58 = vadd.f32 %v231_v27, %v216_v13  ;;  %v268_v20 = vsel %vm267_vm8, %v2219_v54, %v2221_v57 }
 0x136   :  { %v2322_v55 = vperm.slane %v2010_v32, 5  ;;  %v272_v54 = vmul.f32 %v2300_v3, %v268_v20  ;;  %v273_v57 = vmul.f32 %v2303_v47, %v269_v25  ;;  %v291_v13 = vstv %s2292_s28  ;;  %s1728_s28 = sld [smem:[#allocation3 + $0x19]] }
 0x137   :  { %v250_v31 = vadd.f32 %v248_v8, %v233_v58  ;;  %v251_v12 = vadd.f32 %v249_v41, %v234_v0  ;;  %v2328_v8 = vperm.slane %v2010_v32, 4  ;;  %v2331_v41 = vperm.slane %v2015_v37, 4 }
 0x138   :  { %v2247_v10 = vpop.permute.xlu0 %339  ;;  %v274_v37 = vstv %s2287_s1  ;;  %s1956_s1 = smov 96  }
 0x139   :  { %v281_v15 = vpop.permute.xlu1 %280  ;;  %v260_v0 = vadd.f32 %v258_v11, %v250_v31  ;;  %v261_v20 = vadd.f32 %v259_v14, %v251_v12  ;;  %v275_v53 = vmul.f32 %v274_v37, %v272_v54 }
 0x13a   :  { %v285_v17 = vsel %vm284_vm9, %v281_v15, %v2223_v59  ;;  %v286_v51 = vsel %vm284_vm9, %v2223_v59, %v281_v15  ;;  %v2335_v9 = vpop.permute.xlu2 %377 }
 0x13b   :  { %v289_v21 = vmul.f32 %v2328_v8, %v285_v17  ;;  %v290_v27 = vmul.f32 %v2331_v41, %v286_v51  ;;  %v276_v17 = vmul.f32 %v274_v37, %v273_v57  ;;  %v308_v51 = vstv %s2297_s29  ;;  %s1729_s29 = sld [smem:[#allocation3 + $0x1a]] }
 0x13c   :  { %v277_v42 = vadd.f32 %v275_v53, %v260_v0 }
 0x13d   :  { %v292_v11 = vmul.f32 %v291_v13, %v289_v21  ;;  %v293_v14 = vmul.f32 %v291_v13, %v290_v27 }
 0x13f   :  { %v294_v13 = vadd.f32 %v292_v11, %v277_v42  ;;  %v368_v11 = vmul.f32 %v2126_v22, %v2025_v46 }
 0x140   :  { %v2289_v23 = vpop.permute.xlu0 %355 }
 0x141   :  { %v300_v24 = vpop.permute.xlu1 %299  ;;  %v357_v54 = vsel %vm240_vm7, %v2279_v61, %v2289_v23  ;;  %v358_v57 = vsel %vm240_vm7, %v2289_v23, %v2279_v61 }
 0x142   :  { %v302_v59 = vsel %vm301_vm10, %v2225_v60, %v300_v24  ;;  %v303_v15 = vsel %vm301_vm10, %v300_v24, %v2225_v60 }
 0x143   :  { %v306_v24 = vmul.f32 %v2322_v55, %v302_v59  ;;  %v307_v36 = vmul.f32 %v2325_v6, %v303_v15  ;;  %v347_v15 = vstv %s2345_s6  ;;  %s2575_s6 = sld [smem:[#allocation3 + $0x1c]] }
 0x145   :  { %v309_v59 = vmul.f32 %v308_v51, %v306_v24  ;;  %v310_v38 = vmul.f32 %v308_v51, %v307_v36  ;;  %v359_v36 = vmul.f32 %v358_v57, %v2267_v33  ;;  %v367_v51 = vmul.f32 %v2113_v19, %v2021_v43 }
 0x147   :  { %v311_v42 = vadd.f32 %v309_v59, %v294_v13 }
 0x148   :  { %v2343_v32 = vpop.permute.xlu0 %389 }
 0x149   :  { %v326_v58 = vpop.permute.xlu1 %325 }
 0x14a   :  { %v329_v25 = vsel %vm206_vm5, %v326_v58, %v2228_v63  ;;  %v330_v60 = vsel %vm206_vm5, %v2228_v63, %v326_v58  ;;  %v278_v63 = vadd.f32 %v276_v17, %v261_v20  ;;  %v333_v58 = vstv %s2319_s30  ;;  %v404_v20 = vpop.permute.xlu2 %403  ;;  %s1730_s30 = sld [smem:[#allocation3 + $0x1b]] }
 0x14b   :  { %v331_v31 = vmul.f32 %v330_v60, %v2238_v5  ;;  %v332_v12 = vmul.f32 %v329_v25, %v2235_v4  ;;  %v360_v25 = vmul.f32 %v357_v54, %v2270_v56  ;;  %v369_v54 = vstv %s2364_s7  ;;  %s1733_s7 = sld [smem:[#allocation3 + $0x1e]] }
 0x14c   :  { %v295_v21 = vadd.f32 %v293_v14, %v278_v63  ;;  %v361_v14 = vstv %s2360_s3  ;;  %s2583_s3 = sld [smem:[#allocation3 + $0x1d]] }
 0x14d   :  { %v334_v53 = vmul.f32 %v333_v58, %v331_v31  ;;  %v335_v27 = vmul.f32 %v333_v58, %v332_v12  ;;  %v362_v57 = vmul.f32 %v361_v14, %v359_v36 }
 0x14e   :  { %v312_v23 = vadd.f32 %v310_v38, %v295_v21  ;;  %v370_v21 = vmul.f32 %v369_v54, %v367_v51 }
 0x14f   :  { %v336_v31 = vadd.f32 %v334_v53, %v311_v42 }
 0x150   :  { %v406_v37 = vpop.permute.xlu0 %405  ;;  %v337_v12 = vadd.f32 %v335_v27, %v312_v23  ;;  %v397_v23 = vstv %s1715_s9  ;;  %s2601_s9 = sld [smem:[#allocation3 + $0x20]] }
 0x151   :  { %v342_v0 = vpop.permute.xlu1 %341  ;;  %v408_v51 = vsel %vm301_vm10, %v406_v37, %v404_v20 }
 0x152   :  { %v343_v60 = vsel %vm223_vm6, %v2247_v10, %v342_v0  ;;  %v344_v61 = vsel %vm223_vm6, %v342_v0, %v2247_v10  ;;  %v363_v10 = vmul.f32 %v361_v14, %v360_v25  ;;  %v371_v0 = vmul.f32 %v369_v54, %v368_v11  ;;  %v443_v49 = vpop.permute.xlu2 %442 }
 0x153   :  { %v345_v24 = vmul.f32 %v344_v61, %v2253_v16  ;;  %v346_v17 = vmul.f32 %v343_v60, %v2256_v18  ;;  %v383_v25 = vstv %s1714_s8  ;;  %s1734_s8 = sld [smem:[#allocation3 + $0x1f]] }
 0x155   :  { %v348_v63 = vmul.f32 %v347_v15, %v345_v24  ;;  %v349_v58 = vmul.f32 %v347_v15, %v346_v17  ;;  %v407_v17 = vsel %vm301_vm10, %v404_v20, %v406_v37 }
 0x156   :  { %v409_v20 = vmul.f32 %v407_v17, %v2322_v55 }
 0x157   :  { %v350_v59 = vadd.f32 %v348_v63, %v336_v31  ;;  %v351_v38 = vadd.f32 %v349_v58, %v337_v12 }
 0x158   :  { %v429_v13 = vpop.permute.xlu0 %428 }
 0x159   :  { %v364_v60 = vadd.f32 %v362_v57, %v350_v59  ;;  %v365_v61 = vadd.f32 %v363_v10, %v351_v38  ;;  %v376_v19 = vpop.permute.xlu1 %375  ;;  %v410_v57 = vmul.f32 %v408_v51, %v2325_v6  ;;  %v411_v10 = vstv %s2398_s10  ;;  %s1736_s10 = sld [smem:[#allocation3 + $0x21]] }
 0x15a   :  { %v379_v15 = vsel %vm267_vm8, %v376_v19, %v2335_v9  ;;  %v380_v53 = vsel %vm267_vm8, %v2335_v9, %v376_v19  ;;  %v459_v37 = vpop.permute.xlu2 %458  ;;  %v436_v19 = vstv %s2402_s11  ;;  %s1737_s11 = sld [smem:[#allocation3 + $0x22]] }
 0x15b   :  { %v372_v52 = vadd.f32 %v370_v21, %v364_v60  ;;  %v373_v22 = vadd.f32 %v371_v0, %v365_v61  ;;  %v381_v27 = vmul.f32 %v379_v15, %v2300_v3  ;;  %v382_v36 = vmul.f32 %v380_v53, %v2303_v47 }
 0x15c   :  { %v412_v53 = vmul.f32 %v411_v10, %v409_v20 }
 0x15d   :  { %v384_v14 = vmul.f32 %v383_v25, %v381_v27  ;;  %v385_v31 = vmul.f32 %v383_v25, %v382_v36  ;;  %v413_v27 = vmul.f32 %v411_v10, %v410_v57 }
 0x15f   :  { %v386_v59 = vadd.f32 %v384_v14, %v372_v52  ;;  %v387_v38 = vadd.f32 %v385_v31, %v373_v22 }
 0x160   :  { %v445_v42 = vpop.permute.xlu0 %444 }
 0x161   :  { %v392_v24 = vpop.permute.xlu1 %391  ;;  %v447_v21 = vsel %vm223_vm6, %v445_v42, %v443_v49 }
 0x162   :  { %v393_v9 = vsel %vm284_vm9, %v2343_v32, %v392_v24  ;;  %v394_v11 = vsel %vm284_vm9, %v392_v24, %v2343_v32  ;;  %v446_v32 = vsel %vm223_vm6, %v443_v49, %v445_v42  ;;  %v448_v22 = vmul.f32 %v447_v21, %v2253_v16 }
 0x163   :  { %v395_v12 = vmul.f32 %v393_v9, %v2328_v8  ;;  %v396_v63 = vmul.f32 %v394_v11, %v2331_v41  ;;  %v449_v25 = vmul.f32 %v446_v32, %v2256_v18 }
 0x165   :  { %v398_v58 = vmul.f32 %v397_v23, %v395_v12  ;;  %v399_v54 = vmul.f32 %v397_v23, %v396_v63  ;;  %v450_v23 = vstv %s2416_s12  ;;  %v493_v12 = vpop.permute.xlu2 %492  ;;  %s1957_s12 = smov 80  }
 0x166   :  { %v451_v11 = vmul.f32 %v450_v23, %v448_v22  ;;  %v452_v14 = vmul.f32 %v450_v23, %v449_v25 }
 0x167   :  { %v400_v60 = vadd.f32 %v398_v58, %v386_v59  ;;  %v401_v61 = vadd.f32 %v399_v54, %v387_v38  ;;  %v464_v59 = vstv %s2430_s13  ;;  %s1738_s13 = sld [smem:[#allocation3 + $0x23]] }
 0x168   :  { %v479_v0 = vpop.permute.xlu0 %478 }
 0x169   :  { %v431_v15 = vpop.permute.xlu1 %430  ;;  %v414_v24 = vadd.f32 %v412_v53, %v400_v60  ;;  %v415_v17 = vadd.f32 %v413_v27, %v401_v61  ;;  %v470_v61 = vmul.f32 %v2152_v28, %v2021_v43  ;;  %v472_v53 = vstv %s1720_s2  ;;  %s1739_s2 = sld [smem:[#allocation3 + $0x24]] }
 0x16a   :  { %v432_v36 = vsel %vm206_vm5, %v429_v13, %v431_v15  ;;  %v433_v52 = vsel %vm206_vm5, %v431_v15, %v429_v13  ;;  %v471_v27 = vmul.f32 %v2167_v34, %v2025_v46 }
 0x16b   :  { %v434_v49 = vmul.f32 %v433_v52, %v2238_v5  ;;  %v435_v42 = vmul.f32 %v432_v36, %v2235_v4  ;;  %v473_v22 = vmul.f32 %v472_v53, %v470_v61 }
 0x16c   :  { %v474_v25 = vmul.f32 %v472_v53, %v471_v27  ;;  %v569_v53 = vsel %vm240_vm7, %v2173_v35, %v2199_v45 }
 0x16d   :  { %v437_v51 = vmul.f32 %v436_v19, %v434_v49  ;;  %v438_v9 = vmul.f32 %v436_v19, %v435_v42  ;;  %v486_v49 = vstv %s1721_s22  ;;  %s1740_s22 = sld [smem:[#allocation3 + $0x25]] }
 0x16f   :  { %v439_v13 = vadd.f32 %v437_v51, %v414_v24  ;;  %v440_v31 = vadd.f32 %v438_v9, %v415_v17  ;;  %v540_v51 = vsel %vm206_vm5, %v2185_v39, %v2187_v40  ;;  %v500_v9 = vstv %s1722_s23  ;;  %s1741_s23 = sld [smem:[#allocation3 + $0x26]] }
 0x170   :  { %v495_v63 = vpop.permute.xlu0 %494 }
 0x171   :  { %v453_v58 = vadd.f32 %v451_v11, %v439_v13  ;;  %v454_v54 = vadd.f32 %v452_v14, %v440_v31  ;;  %v457_v20 = vpop.permute.xlu1 %456  ;;  %v496_v57 = vsel %vm284_vm9, %v493_v12, %v495_v63  ;;  %v497_v10 = vsel %vm284_vm9, %v495_v63, %v493_v12 }
 0x172   :  { %v460_v38 = vsel %vm240_vm7, %v457_v20, %v459_v37  ;;  %v461_v32 = vsel %vm240_vm7, %v459_v37, %v457_v20  ;;  %v498_v23 = vmul.f32 %v496_v57, %v2328_v8  ;;  %v499_v34 = vmul.f32 %v497_v10, %v2331_v41 }
 0x173   :  { %v462_v21 = vmul.f32 %v461_v32, %v2267_v33  ;;  %v463_v60 = vmul.f32 %v460_v38, %v2270_v56  ;;  %v543_v57 = vmul.f32 %v540_v51, %v2235_v4  ;;  %v544_v10 = vstv %s2452_s24  ;;  %s2677_s24 = sld [smem:[#allocation3 + $0x27]] }
 0x174   :  { %v501_v12 = vmul.f32 %v500_v9, %v498_v23  ;;  %v502_v63 = vmul.f32 %v500_v9, %v499_v34  ;;  %v558_v23 = vstv %s2474_s27  ;;  %v648_v34 = vperm.slane %v2006_v26, 4  ;;  %s1745_s27 = sld [smem:[#allocation3 + $0x2a]] }
 0x175   :  { %v465_v19 = vmul.f32 %v464_v59, %v462_v21  ;;  %v466_v15 = vmul.f32 %v464_v59, %v463_v60  ;;  %v555_v21 = vsel %vm223_vm6, %v2197_v44, %v2154_v29  ;;  %v514_v60 = vstv %s2458_s25  ;;  %s1743_s25 = sld [smem:[#allocation3 + $0x28]] }
 0x177   :  { %v467_v36 = vadd.f32 %v465_v19, %v453_v58  ;;  %v468_v52 = vadd.f32 %v466_v15, %v454_v54  ;;  %v568_v15 = vsel %vm240_vm7, %v2199_v45, %v2173_v35 }
 0x179   :  { %v481_v37 = vpop.permute.xlu1 %480  ;;  %v475_v11 = vadd.f32 %v473_v22, %v467_v36  ;;  %v476_v14 = vadd.f32 %v474_v25, %v468_v52  ;;  %v546_v36 = vmul.f32 %v544_v10, %v543_v57  ;;  %v572_v52 = vstv %s2472_s26  ;;  %s1744_s26 = sld [smem:[#allocation3 + $0x29]] }
 0x17a   :  { %v482_v42 = vsel %vm267_vm8, %v479_v0, %v481_v37  ;;  %v483_v28 = vsel %vm267_vm8, %v481_v37, %v479_v0  ;;  %v541_v0 = vsel %vm206_vm5, %v2187_v40, %v2185_v39  ;;  %v554_v39 = vsel %vm223_vm6, %v2154_v29, %v2197_v44  ;;  %v509_v40 = vpop.permute.xlu2 %508 }
 0x17b   :  { %v484_v24 = vmul.f32 %v482_v42, %v2300_v3  ;;  %v485_v17 = vmul.f32 %v483_v28, %v2303_v47  ;;  %v542_v20 = vmul.f32 %v541_v0, %v2238_v5  ;;  %v556_v22 = vmul.f32 %v555_v21, %v2253_v16 }
 0x17c   :  { %v557_v37 = vmul.f32 %v554_v39, %v2256_v18  ;;  %v570_v42 = vmul.f32 %v569_v53, %v2267_v33  ;;  %v571_v28 = vmul.f32 %v568_v15, %v2270_v56  ;;  %v3413_v15 = vld [vmem:[#allocation18_spill] sm:$0xff] }
 0x17d   :  { %v487_v13 = vmul.f32 %v486_v49, %v484_v24  ;;  %v488_v31 = vmul.f32 %v486_v49, %v485_v17  ;;  %v545_v27 = vmul.f32 %v544_v10, %v542_v20  ;;  %v649_v24 = vperm.slane %v2008_v30, 4  ;;  %v642_v17 = vpop.permute.xlu0 %641 }
 0x17e   :  { %v559_v51 = vmul.f32 %v558_v23, %v556_v22  ;;  %v560_v0 = vmul.f32 %v558_v23, %v557_v37 }
 0x17f   :  { %v489_v58 = vadd.f32 %v487_v13, %v475_v11  ;;  %v490_v54 = vadd.f32 %v488_v31, %v476_v14  ;;  %v573_v13 = vmul.f32 %v572_v52, %v570_v42  ;;  %v574_v31 = vmul.f32 %v572_v52, %v571_v28 }
 0x181   :  { %v503_v59 = vadd.f32 %v501_v12, %v489_v58  ;;  %v504_v38 = vadd.f32 %v502_v63, %v490_v54  ;;  %v507_v32 = vpop.permute.xlu1 %506 }
 0x182   :  { %v510_v61 = vsel %vm301_vm10, %v507_v32, %v509_v40  ;;  %v511_v19 = vsel %vm301_vm10, %v509_v40, %v507_v32 }
 0x183   :  { %v512_v29 = vmul.f32 %v510_v61, %v2322_v55  ;;  %v513_v44 = vmul.f32 %v511_v19, %v2325_v6  ;;  %v3412_v19 = vld [vmem:[#allocation21_spill] sm:$0xff] }
 0x184   :  { %v618_v53 = vsel %vm284_vm9, %v3413_v15, %v3412_v19 }
 0x185   :  { %v515_v25 = vmul.f32 %v514_v60, %v512_v29  ;;  %v516_v49 = vmul.f32 %v514_v60, %v513_v44  ;;  %v608_v60 = vstv %s1728_s28  ;;  %v619_v29 = vsel %vm284_vm9, %v3412_v19, %v3413_v15  ;;  %s1746_s28 = sld [smem:[#allocation3 + $0x2b]] }
 0x186   :  { %v620_v37 = vmul.f32 %v618_v53, %v2328_v8 }
 0x187   :  { %v517_v35 = vadd.f32 %v515_v25, %v503_v59  ;;  %v518_v45 = vadd.f32 %v516_v49, %v504_v38  ;;  %v621_v25 = vmul.f32 %v619_v29, %v2331_v41  ;;  %v622_v49 = vstv %s1729_s29  ;;  %s1747_s29 = sld [smem:[#allocation3 + $0x2c]] }
 0x189   :  { %v547_v9 = vadd.f32 %v545_v27, %v517_v35  ;;  %v548_v11 = vadd.f32 %v546_v36, %v518_v45  ;;  %v644_v14 = vpop.permute.xlu1 %643  ;;  %v3415_v27 = vld [vmem:[#allocation22_spill] sm:$0xff]  ;;  %v636_v35 = vstv %s1730_s30  ;;  %s2789_s30 = sld [smem:[#allocation3 + $0x2e]] }
 0x18a   :  { %v646_v12 = vsel %vm645_vm11, %v642_v17, %v644_v14  ;;  %v647_v63 = vsel %vm645_vm11, %v644_v14, %v642_v17 }
 0x18b   :  { %v561_v58 = vadd.f32 %v559_v51, %v547_v9  ;;  %v562_v54 = vadd.f32 %v560_v0, %v548_v11  ;;  %v2517_v20 = vmul.f32 %v648_v34, %v646_v12  ;;  %v2521_v57 = vmul.f32 %v649_v24, %v647_v63 }
 0x18c   :  { %v623_v51 = vmul.f32 %v622_v49, %v620_v37  ;;  %v624_v0 = vmul.f32 %v622_v49, %v621_v25  ;;  %v661_v12 = vstv %s2575_s6  ;;  %s1750_s6 = sld [smem:[#allocation3 + $0x2f]] }
 0x18d   :  { %v575_v10 = vadd.f32 %v573_v13, %v561_v58  ;;  %v576_v39 = vadd.f32 %v574_v31, %v562_v54  ;;  %655 = vrot.lane.b32.xlu0 %v2521_v57, %s1949_s15  ;;  %667 = vrot.lane.b32.xlu1 %v2517_v20, %s1950_s16  ;;  %v695_v49 = vmul.f32 %v2517_v20, %v2021_v43 }
 0x18e   :  { %653 = vrot.lane.b32.xlu2 %v2517_v20, %s1949_s15 }
 0x18f   :  { %v597_v40 = vadd.f32 %v2048_v1, %v575_v10  ;;  %v598_v59 = vadd.f32 %v2051_v2, %v576_v39  ;;  %v3411_v1 = vld [vmem:[#allocation20_spill] sm:$0xff] }
 0x190   :  { %v604_v2 = vsel %vm267_vm8, %v3411_v1, %v2209_v50  ;;  %v605_v38 = vsel %vm267_vm8, %v2209_v50, %v3411_v1  ;;  %v3414_v50 = vld [vmem:[#allocation19_spill] sm:$0xff]  ;;  %v675_v1 = vstv %s2583_s3  ;;  %s1751_s3 = sld [smem:[#allocation3 + $0x30]] }
 0x191   :  { %v606_v21 = vmul.f32 %v604_v2, %v2300_v3  ;;  %v607_v61 = vmul.f32 %v605_v38, %v2303_v47  ;;  %v632_v36 = vsel %vm301_vm10, %v3415_v27, %v3414_v50  ;;  %v633_v22 = vsel %vm301_vm10, %v3414_v50, %v3415_v27 }
 0x192   :  { %v634_v42 = vmul.f32 %v632_v36, %v2322_v55  ;;  %v635_v45 = vmul.f32 %v633_v22, %v2325_v6  ;;  %v689_v22 = vstv %s1733_s7  ;;  %s1752_s7 = sld [smem:[#allocation3 + $0x31]] }
 0x193   :  { %v609_v44 = vmul.f32 %v608_v60, %v606_v21  ;;  %v610_v52 = vmul.f32 %v608_v60, %v607_v61 }
 0x194   :  { %v637_v9 = vmul.f32 %v636_v35, %v634_v42  ;;  %v638_v31 = vmul.f32 %v636_v35, %v635_v45  ;;  %v696_v42 = vmul.f32 %v2521_v57, %v2025_v46  ;;  %v697_v35 = vstv %s1734_s8  ;;  %s1753_s8 = sld [smem:[#allocation3 + $0x32]] }
 0x195   :  { %681 = vrot.lane.b32.xlu0 %v2517_v20, %s1951_s17  ;;  %683 = vrot.lane.b32.xlu1 %v2521_v57, %s1951_s17  ;;  %v611_v28 = vadd.f32 %v609_v44, %v597_v40  ;;  %v612_v23 = vadd.f32 %v610_v52, %v598_v59 }
 0x196   :  { %669 = vrot.lane.b32.xlu2 %v2521_v57, %s1950_s16 }
 0x197   :  { %v625_v11 = vadd.f32 %v623_v51, %v611_v28  ;;  %v626_v14 = vadd.f32 %v624_v0, %v612_v23  ;;  %v698_v51 = vmul.f32 %v697_v35, %v695_v49  ;;  %v699_v0 = vmul.f32 %v697_v35, %v696_v42  ;;  %v2633_v49 = vld [vmem:[#allocation7] sm:$0xff] }
 0x198   :  { %v751_v42 = vperm.slane %v2633_v49, 5 }
 0x199   :  { %v639_v21 = vadd.f32 %v637_v9, %v625_v11  ;;  %v640_v60 = vadd.f32 %v638_v31, %v626_v14  ;;  %v711_v14 = vstv %s2601_s9  ;;  %s1755_s9 = sld [smem:[#allocation3 + $0x34]] }
 0x19d   :  { %705 = vrot.lane.b32.xlu0 %v2521_v57, %s1952_s18  ;;  %717 = vrot.lane.b32.xlu1 %v2517_v20, %s1953_s19 }
 0x19e   :  { %703 = vrot.lane.b32.xlu2 %v2517_v20, %s1952_s18 }
 0x1a5   :  { %731 = vrot.lane.b32.xlu0 %v2517_v20, %s1954_s20  ;;  %733 = vrot.lane.b32.xlu1 %v2521_v57, %s1954_s20 }
 0x1a6   :  { %719 = vrot.lane.b32.xlu2 %v2521_v57, %s1953_s19 }
 0x1ad   :  { %746 = vrot.lane.b32.xlu0 %v2044_v62, %s1956_s1 }
 0x1ae   :  { %744 = vrot.lane.b32.xlu2 %v2029_v48, %s1956_s1 }
 0x1e8   :  { %v654_v32 = vpop.permute.xlu2 %653 }
 0x1f0   :  { %v670_v17 = vpop.permute.xlu2 %669 }
 0x1f8   :  { %v704_v44 = vpop.permute.xlu2 %703 }
 0x1ff   :  { %v656_v13 = vpop.permute.xlu0 %655  ;;  %v668_v54 = vpop.permute.xlu1 %667 }
 0x200   :  { %v657_v63 = vsel %vm206_vm5, %v654_v32, %v656_v13  ;;  %v658_v58 = vsel %vm206_vm5, %v656_v13, %v654_v32  ;;  %v671_v40 = vsel %vm223_vm6, %v668_v54, %v670_v17  ;;  %v672_v59 = vsel %vm223_vm6, %v670_v17, %v668_v54  ;;  %v720_v31 = vpop.permute.xlu2 %719 }
 0x201   :  { %v659_v10 = vmul.f32 %v658_v58, %v2238_v5  ;;  %v660_v39 = vmul.f32 %v657_v63, %v2235_v4  ;;  %v673_v2 = vmul.f32 %v672_v59, %v2253_v16  ;;  %v674_v38 = vmul.f32 %v671_v40, %v2256_v18 }
 0x202   :  { %v725_v59 = vstv %s1736_s10  ;;  %s1756_s10 = sld [smem:[#allocation3 + $0x35]] }
 0x203   :  { %v662_v32 = vmul.f32 %v661_v12, %v659_v10  ;;  %v663_v61 = vmul.f32 %v661_v12, %v660_v39  ;;  %v676_v53 = vmul.f32 %v675_v1, %v673_v2  ;;  %v677_v29 = vmul.f32 %v675_v1, %v674_v38 }
 0x205   :  { %v664_v19 = vadd.f32 %v662_v32, %v639_v21  ;;  %v665_v15 = vadd.f32 %v663_v61, %v640_v60 }
 0x207   :  { %v678_v50 = vadd.f32 %v676_v53, %v664_v19  ;;  %v679_v27 = vadd.f32 %v677_v29, %v665_v15  ;;  %v682_v36 = vpop.permute.xlu0 %681  ;;  %v684_v52 = vpop.permute.xlu1 %683 }
 0x208   :  { %v685_v37 = vsel %vm240_vm7, %v682_v36, %v684_v52  ;;  %v686_v25 = vsel %vm240_vm7, %v684_v52, %v682_v36  ;;  %v745_v35 = vpop.permute.xlu2 %744 }
 0x209   :  { %v687_v28 = vmul.f32 %v686_v25, %v2267_v33  ;;  %v688_v23 = vmul.f32 %v685_v37, %v2270_v56 }
 0x20b   :  { %v690_v45 = vmul.f32 %v689_v22, %v687_v28  ;;  %v691_v17 = vmul.f32 %v689_v22, %v688_v23  ;;  %v2636_v28 = vld [vmem:[#allocation7 + $0x8] sm:$0xff] }
 0x20c   :  { %v752_v23 = vperm.slane %v2636_v28, 5 }
 0x20d   :  { %v692_v9 = vadd.f32 %v690_v45, %v678_v50  ;;  %v693_v11 = vadd.f32 %v691_v17, %v679_v27  ;;  %v739_v50 = vstv %s1737_s11  ;;  %s1757_s11 = sld [smem:[#allocation3 + $0x36]] }
 0x20f   :  { %v706_v13 = vpop.permute.xlu0 %705  ;;  %v700_v12 = vadd.f32 %v698_v51, %v692_v9  ;;  %v701_v20 = vadd.f32 %v699_v0, %v693_v11  ;;  %v718_v58 = vpop.permute.xlu1 %717 }
 0x210   :  { %v707_v57 = vsel %vm267_vm8, %v704_v44, %v706_v13  ;;  %v708_v63 = vsel %vm267_vm8, %v706_v13, %v704_v44  ;;  %v721_v39 = vsel %vm284_vm9, %v718_v58, %v720_v31  ;;  %v722_v40 = vsel %vm284_vm9, %v720_v31, %v718_v58 }
 0x211   :  { %v709_v54 = vmul.f32 %v707_v57, %v2300_v3  ;;  %v710_v10 = vmul.f32 %v708_v63, %v2303_v47  ;;  %v723_v1 = vmul.f32 %v721_v39, %v2328_v8  ;;  %v724_v2 = vmul.f32 %v722_v40, %v2331_v41 }
 0x213   :  { %v712_v38 = vmul.f32 %v711_v14, %v709_v54  ;;  %v713_v21 = vmul.f32 %v711_v14, %v710_v10  ;;  %v726_v61 = vmul.f32 %v725_v59, %v723_v1  ;;  %v727_v19 = vmul.f32 %v725_v59, %v724_v2 }
 0x215   :  { %v714_v60 = vadd.f32 %v712_v38, %v700_v12  ;;  %v715_v32 = vadd.f32 %v713_v21, %v701_v20  ;;  %v764_v20 = vstv %s1738_s13  ;;  %v778_v21 = vstv %s1739_s2  ;;  %s1758_s13 = sld [smem:[#allocation3 + $0x37]] }
 0x216   :  { %s1759_s2 = sld [smem:[#allocation3 + $0x38]] }
 0x217   :  { %v728_v15 = vadd.f32 %v726_v61, %v714_v60  ;;  %v729_v53 = vadd.f32 %v727_v19, %v715_v32  ;;  %v732_v29 = vpop.permute.xlu0 %731  ;;  %v734_v44 = vpop.permute.xlu1 %733 }
 0x218   :  { %v735_v27 = vsel %vm301_vm10, %v732_v29, %v734_v44  ;;  %v736_v36 = vsel %vm301_vm10, %v734_v44, %v732_v29  ;;  %v792_v29 = vstv %s1740_s22  ;;  %s1760_s22 = sld [smem:[#allocation3 + $0x39]] }
 0x219   :  { %v737_v52 = vmul.f32 %v735_v27, %v2322_v55  ;;  %v738_v22 = vmul.f32 %v736_v36, %v2325_v6 }
 0x21b   :  { %v740_v37 = vmul.f32 %v739_v50, %v737_v52  ;;  %v741_v25 = vmul.f32 %v739_v50, %v738_v22  ;;  %v800_v22 = vstv %s1741_s23  ;;  %s1761_s23 = sld [smem:[#allocation3 + $0x3a]] }
 0x21d   :  { %v742_v45 = vadd.f32 %v740_v37, %v728_v15  ;;  %v743_v17 = vadd.f32 %v741_v25, %v729_v53 }
 0x21f   :  { %v747_v51 = vpop.permute.xlu0 %746 }
 0x220   :  { %v749_v0 = vsel %vm748_vm12, %v745_v35, %v747_v51  ;;  %v750_v9 = vsel %vm748_vm12, %v747_v51, %v745_v35 }
 0x221   :  { %v753_v11 = vmul.f32 %v751_v42, %v749_v0  ;;  %v754_v14 = vmul.f32 %v752_v23, %v750_v9 }
 0x223   :  { %758 = vrot.lane.b32.xlu2 %v754_v14, %s1949_s15  ;;  %770 = vrot.lane.b32.xlu0 %v753_v11, %s1950_s16  ;;  %v798_v44 = vmul.f32 %v753_v11, %v2021_v43  ;;  %v799_v50 = vmul.f32 %v754_v14, %v2025_v46 }
 0x224   :  { %756 = vrot.lane.b32.xlu1 %v753_v11, %s1949_s15 }
 0x225   :  { %v801_v51 = vmul.f32 %v800_v22, %v798_v44  ;;  %v802_v0 = vmul.f32 %v800_v22, %v799_v50  ;;  %v854_v50 = vperm.slane %v2633_v49, 6 }
 0x22b   :  { %784 = vrot.lane.b32.xlu2 %v753_v11, %s1951_s17  ;;  %786 = vrot.lane.b32.xlu0 %v754_v14, %s1951_s17 }
 0x22c   :  { %772 = vrot.lane.b32.xlu1 %v754_v14, %s1950_s16 }
 0x233   :  { %808 = vrot.lane.b32.xlu2 %v754_v14, %s1952_s18  ;;  %820 = vrot.lane.b32.xlu0 %v753_v11, %s1953_s19 }
 0x234   :  { %806 = vrot.lane.b32.xlu1 %v753_v11, %s1952_s18 }
 0x23b   :  { %834 = vrot.lane.b32.xlu2 %v753_v11, %s1954_s20  ;;  %836 = vrot.lane.b32.xlu0 %v754_v14, %s1954_s20 }
 0x23c   :  { %822 = vrot.lane.b32.xlu1 %v754_v14, %s1953_s19 }
 0x243   :  { %849 = vrot.lane.b32.xlu2 %v2044_v62, %s1957_s12 }
 0x244   :  { %847 = vrot.lane.b32.xlu1 %v2029_v48, %s1957_s12 }
 0x27d   :  { %v759_v13 = vpop.permute.xlu2 %758 }
 0x285   :  { %v785_v58 = vpop.permute.xlu2 %784 }
 0x28d   :  { %v809_v27 = vpop.permute.xlu2 %808 }
 0x295   :  { %v771_v31 = vpop.permute.xlu0 %770 }
 0x296   :  { %v757_v12 = vpop.permute.xlu1 %756 }
 0x297   :  { %v760_v57 = vsel %vm206_vm5, %v757_v12, %v759_v13  ;;  %v761_v63 = vsel %vm206_vm5, %v759_v13, %v757_v12  ;;  %v814_v12 = vstv %s2677_s24  ;;  %s2918_s24 = sld [smem:[#allocation3 + $0x3c]] }
 0x298   :  { %v762_v54 = vmul.f32 %v761_v63, %v2238_v5  ;;  %v763_v62 = vmul.f32 %v760_v57, %v2235_v4 }
 0x29a   :  { %v765_v10 = vmul.f32 %v764_v20, %v762_v54  ;;  %v766_v48 = vmul.f32 %v764_v20, %v763_v62 }
 0x29c   :  { %v767_v39 = vadd.f32 %v765_v10, %v742_v45  ;;  %v768_v40 = vadd.f32 %v766_v48, %v743_v17  ;;  %v835_v10 = vpop.permute.xlu2 %834 }
 0x29d   :  { %v787_v59 = vpop.permute.xlu0 %786 }
 0x29e   :  { %v788_v1 = vsel %vm240_vm7, %v785_v58, %v787_v59  ;;  %v789_v2 = vsel %vm240_vm7, %v787_v59, %v785_v58  ;;  %v773_v38 = vpop.permute.xlu1 %772 }
 0x29f   :  { %v774_v60 = vsel %vm223_vm6, %v771_v31, %v773_v38  ;;  %v775_v32 = vsel %vm223_vm6, %v773_v38, %v771_v31  ;;  %v790_v61 = vmul.f32 %v789_v2, %v2267_v33  ;;  %v791_v19 = vmul.f32 %v788_v1, %v2270_v56 }
 0x2a0   :  { %v776_v15 = vmul.f32 %v775_v32, %v2253_v16  ;;  %v777_v53 = vmul.f32 %v774_v60, %v2256_v18  ;;  %v828_v38 = vstv %s1743_s25  ;;  %s1764_s25 = sld [smem:[#allocation3 + $0x3d]] }
 0x2a1   :  { %v793_v37 = vmul.f32 %v792_v29, %v790_v61  ;;  %v794_v25 = vmul.f32 %v792_v29, %v791_v19 }
 0x2a2   :  { %v779_v36 = vmul.f32 %v778_v21, %v776_v15  ;;  %v780_v52 = vmul.f32 %v778_v21, %v777_v53  ;;  %v842_v53 = vstv %s1744_s26  ;;  %s1765_s26 = sld [smem:[#allocation3 + $0x3e]] }
 0x2a4   :  { %v781_v35 = vadd.f32 %v779_v36, %v767_v39  ;;  %v782_v45 = vadd.f32 %v780_v52, %v768_v40 }
 0x2a5   :  { %v821_v17 = vpop.permute.xlu0 %820 }
 0x2a6   :  { %v795_v9 = vadd.f32 %v793_v37, %v781_v35  ;;  %v796_v13 = vadd.f32 %v794_v25, %v782_v45  ;;  %v807_v31 = vpop.permute.xlu1 %806  ;;  %v850_v25 = vpop.permute.xlu2 %849  ;;  %v132_v35 = vld.sshfl [vmem:[#allocation1 + $0x8] sm:$0xff pattern:$0x75316420]  ;;  %v136_v45 = vld.sshfl [vmem:[#allocation1 + $0x18] sm:$0xff pattern:$0x75316420] }
 0x2a7   :  { %v810_v11 = vsel %vm267_vm8, %v807_v31, %v809_v27  ;;  %v811_v14 = vsel %vm267_vm8, %v809_v27, %v807_v31  ;;  %v855_v27 = vperm.slane %v2636_v28, 6 }
 0x2a8   :  { %v803_v20 = vadd.f32 %v801_v51, %v795_v9  ;;  %v804_v57 = vadd.f32 %v802_v0, %v796_v13  ;;  %v812_v63 = vmul.f32 %v810_v11, %v2300_v3  ;;  %v813_v58 = vmul.f32 %v811_v14, %v2303_v47  ;;  %v131_v9 = vld.sshfl [vmem:[#allocation1] sm:$0xff pattern:$0x75316420]  ;;  %v135_v13 = vld.sshfl [vmem:[#allocation1 + $0x10] sm:$0xff pattern:$0x75316420] }
 0x2aa   :  { %v815_v54 = vmul.f32 %v814_v12, %v812_v63  ;;  %v816_v62 = vmul.f32 %v814_v12, %v813_v58  ;;  %v141_v63 = vsel %vm101_vm0, %v131_v9, 0.0  ;;  %v155_v58 = vsel %vm101_vm0, %v135_v13, 0.0 }
 0x2ac   :  { %v817_v48 = vadd.f32 %v815_v54, %v803_v20  ;;  %v818_v39 = vadd.f32 %v816_v62, %v804_v57  ;;  %v148_v20 = vsel %vm101_vm0, %v132_v35, 0.0  ;;  %v162_v57 = vsel %vm101_vm0, %v136_v45, 0.0 }
 0x2ad   :  { %v837_v40 = vpop.permute.xlu0 %836  ;;  %v149_v54 = vrot.slane %v148_v20, 4  ;;  %v163_v62 = vrot.slane %v162_v57, 4 }
 0x2ae   :  { %v838_v59 = vsel %vm301_vm10, %v835_v10, %v837_v40  ;;  %v839_v1 = vsel %vm301_vm10, %v837_v40, %v835_v10  ;;  %v823_v2 = vpop.permute.xlu1 %822  ;;  %v142_v10 = vrot.slane %v141_v63, 4 }
 0x2af   :  { %v824_v21 = vsel %vm284_vm9, %v821_v17, %v823_v2  ;;  %v825_v60 = vsel %vm284_vm9, %v823_v2, %v821_v17  ;;  %v840_v32 = vmul.f32 %v838_v59, %v2322_v55  ;;  %v841_v61 = vmul.f32 %v839_v1, %v2325_v6 }
 0x2b0   :  { %v826_v19 = vmul.f32 %v824_v21, %v2328_v8  ;;  %v827_v15 = vmul.f32 %v825_v60, %v2331_v41  ;;  %v164_v40 = vadd.f32 %v163_v62, %v162_v57  ;;  %v143_v59 = vadd.f32 %v142_v10, %v141_v63 }
 0x2b1   :  { %v843_v36 = vmul.f32 %v842_v53, %v840_v32  ;;  %v844_v52 = vmul.f32 %v842_v53, %v841_v61  ;;  %v867_v63 = vstv %s1745_s27  ;;  %s1766_s27 = sld [smem:[#allocation3 + $0x3f]] }
 0x2b2   :  { %v829_v29 = vmul.f32 %v828_v38, %v826_v19  ;;  %v830_v44 = vmul.f32 %v828_v38, %v827_v15  ;;  %v165_v38 = vrot.slane %v164_v40, 2  ;;  %v144_v21 = vrot.slane %v143_v59, 2 }
 0x2b4   :  { %v831_v22 = vadd.f32 %v829_v29, %v817_v48  ;;  %v832_v37 = vadd.f32 %v830_v44, %v818_v39  ;;  %v156_v48 = vrot.slane %v155_v58, 4  ;;  %v150_v39 = vadd.f32 %v149_v54, %v148_v20 }
 0x2b5   :  { %v166_v61 = vadd.f32 %v165_v38, %v164_v40  ;;  %v145_v19 = vadd.f32 %v144_v21, %v143_v59 }
 0x2b6   :  { %v2707_v17 = vadd.f32 %v843_v36, %v831_v22  ;;  %v2709_v51 = vadd.f32 %v844_v52, %v832_v37  ;;  %v848_v0 = vpop.permute.xlu1 %847  ;;  %v157_v1 = vadd.f32 %v156_v48, %v155_v58  ;;  %v151_v2 = vrot.slane %v150_v39, 2 }
 0x2b7   :  { %v852_v31 = vsel %vm851_vm13, %v848_v0, %v850_v25  ;;  %v853_v12 = vsel %vm851_vm13, %v850_v25, %v848_v0  ;;  %v167_v29 = vrot.slane %v166_v61, 1  ;;  %v146_v44 = vrot.slane %v145_v19, 1 }
 0x2b8   :  { %v2717_v11 = vmul.f32 %v854_v50, %v852_v31  ;;  %v2721_v14 = vmul.f32 %v855_v27, %v853_v12  ;;  %v158_v60 = vrot.slane %v157_v1, 2  ;;  %v152_v32 = vadd.f32 %v151_v2, %v150_v39 }
 0x2b9   :  { %v168_v22 = vadd.f32 %v167_v29, %v166_v61  ;;  %v147_v37 = vadd.f32 %v146_v44, %v145_v19  ;;  %v895_v29 = vstv %s1747_s29  ;;  %s3033_s29 = sld [smem:[#allocation3 + $0x43]] }
 0x2ba   :  { %861 = vrot.lane.b32.xlu1 %v2721_v14, %s1949_s15  ;;  %873 = vrot.lane.b32.xlu2 %v2717_v11, %s1950_s16  ;;  %v159_v15 = vadd.f32 %v158_v60, %v157_v1  ;;  %v153_v53 = vrot.slane %v152_v32, 1  ;;  %v901_v44 = vmul.f32 %v2717_v11, %v2021_v43 }
 0x2bb   :  { %859 = vrot.lane.b32.xlu0 %v2717_v11, %s1949_s15  ;;  %v2753_v45 = vmul.f32 0.25, %v168_v22  ;;  %v2755_v0 = vmul.f32 0.25, %v147_v37 }
 0x2bc   :  { %v160_v36 = vrot.slane %v159_v15, 1  ;;  %v154_v52 = vadd.f32 %v153_v53, %v152_v32  ;;  %v881_v32 = vstv %s1746_s28  ;;  %s1767_s28 = sld [smem:[#allocation3 + $0x40]] }
 0x2be   :  { %v161_v25 = vadd.f32 %v160_v36, %v159_v15  ;;  %v2751_v35 = vmul.f32 0.25, %v154_v52  ;;  %v902_v36 = vmul.f32 %v2721_v14, %v2025_v46 }
 0x2c0   :  { %v2757_v9 = vmul.f32 0.25, %v161_v25  ;;  %v2762_v13 = vsel %vm183_vm1, %v2753_v45, %v2751_v35 }
 0x2c2   :  { %887 = vrot.lane.b32.xlu1 %v2717_v11, %s1951_s17  ;;  %889 = vrot.lane.b32.xlu2 %v2721_v14, %s1951_s17  ;;  %v2767_v31 = vsel %vm183_vm1, %v2757_v9, %v2755_v0 }
 0x2c3   :  { %875 = vrot.lane.b32.xlu0 %v2721_v14, %s1950_s16 }
 0x2ca   :  { %911 = vrot.lane.b32.xlu1 %v2721_v14, %s1952_s18  ;;  %923 = vrot.lane.b32.xlu2 %v2717_v11, %s1953_s19 }
 0x2cb   :  { %909 = vrot.lane.b32.xlu0 %v2717_v11, %s1952_s18 }
 0x2d2   :  { %937 = vrot.lane.b32.xlu1 %v2717_v11, %s1954_s20  ;;  %939 = vrot.lane.b32.xlu2 %v2721_v14, %s1954_s20 }
 0x2d3   :  { %925 = vrot.lane.b32.xlu0 %v2721_v14, %s1953_s19 }
 0x2da   :  { %960 = vrot.lane.b32.xlu1 %v2762_v13, %s1947_s4 }
 0x2db   :  { %958 = vrot.lane.b32.xlu0 %v2767_v31, %s1947_s4  ;;  %s1748_s4 = sld [smem:[#allocation3 + $0x2d]] }
 0x2e1   :  { %v903_v37 = vstv %s1748_s4  ;;  %s1771_s4 = sld [smem:[#allocation3 + $0x44]] }
 0x314   :  { %v874_v12 = vpop.permute.xlu2 %873 }
 0x31c   :  { %v890_v48 = vpop.permute.xlu2 %889 }
 0x324   :  { %v924_v25 = vpop.permute.xlu2 %923 }
 0x32c   :  { %v862_v20 = vpop.permute.xlu1 %861 }
 0x32d   :  { %v860_v57 = vpop.permute.xlu0 %859 }
 0x32e   :  { %v863_v58 = vsel %vm206_vm5, %v860_v57, %v862_v20  ;;  %v864_v54 = vsel %vm206_vm5, %v862_v20, %v860_v57 }
 0x32f   :  { %v865_v62 = vmul.f32 %v864_v54, %v2238_v5  ;;  %v866_v10 = vmul.f32 %v863_v58, %v2235_v4  ;;  %v904_v54 = vmul.f32 %v903_v37, %v901_v44 }
 0x331   :  { %v868_v39 = vmul.f32 %v867_v63, %v865_v62  ;;  %v869_v40 = vmul.f32 %v867_v63, %v866_v10  ;;  %v905_v62 = vmul.f32 %v903_v37, %v902_v36 }
 0x333   :  { %v870_v59 = vadd.f32 %v868_v39, %v2707_v17  ;;  %v871_v1 = vadd.f32 %v869_v40, %v2709_v51  ;;  %v917_v40 = vstv %s2789_s30  ;;  %s1772_s30 = sld [smem:[#allocation3 + $0x45]] }
 0x334   :  { %v888_v2 = vpop.permute.xlu1 %887 }
 0x335   :  { %v891_v38 = vsel %vm240_vm7, %v888_v2, %v890_v48  ;;  %v892_v21 = vsel %vm240_vm7, %v890_v48, %v888_v2  ;;  %v876_v60 = vpop.permute.xlu0 %875 }
 0x336   :  { %v877_v61 = vsel %vm223_vm6, %v874_v12, %v876_v60  ;;  %v878_v19 = vsel %vm223_vm6, %v876_v60, %v874_v12  ;;  %v893_v17 = vmul.f32 %v892_v21, %v2267_v33  ;;  %v894_v51 = vmul.f32 %v891_v38, %v2270_v56 }
 0x337   :  { %v879_v15 = vmul.f32 %v878_v19, %v2253_v16  ;;  %v880_v53 = vmul.f32 %v877_v61, %v2256_v18  ;;  %v940_v19 = vpop.permute.xlu2 %939 }
 0x338   :  { %v896_v12 = vmul.f32 %v895_v29, %v893_v17  ;;  %v897_v20 = vmul.f32 %v895_v29, %v894_v51  ;;  %v931_v29 = vstv %s1750_s6  ;;  %s1773_s6 = sld [smem:[#allocation3 + $0x46]] }
 0x339   :  { %v882_v52 = vmul.f32 %v881_v32, %v879_v15  ;;  %v883_v22 = vmul.f32 %v881_v32, %v880_v53 }
 0x33b   :  { %v884_v57 = vadd.f32 %v882_v52, %v870_v59  ;;  %v885_v63 = vadd.f32 %v883_v22, %v871_v1 }
 0x33c   :  { %v912_v58 = vpop.permute.xlu1 %911 }
 0x33d   :  { %v898_v10 = vadd.f32 %v896_v12, %v884_v57  ;;  %v899_v48 = vadd.f32 %v897_v20, %v885_v63  ;;  %v910_v39 = vpop.permute.xlu0 %909  ;;  %v945_v20 = vstv %s1751_s3  ;;  %s1776_s3 = sld [smem:[#allocation3 + $0x49]] }
 0x33e   :  { %v913_v11 = vsel %vm267_vm8, %v910_v39, %v912_v58  ;;  %v914_v14 = vsel %vm267_vm8, %v912_v58, %v910_v39 }
 0x33f   :  { %v906_v2 = vadd.f32 %v904_v54, %v898_v10  ;;  %v907_v38 = vadd.f32 %v905_v62, %v899_v48  ;;  %v915_v21 = vmul.f32 %v913_v11, %v2300_v3  ;;  %v916_v59 = vmul.f32 %v914_v14, %v2303_v47 }
 0x341   :  { %v918_v1 = vmul.f32 %v917_v40, %v915_v21  ;;  %v919_v60 = vmul.f32 %v917_v40, %v916_v59  ;;  %v3417_v21 = vperm.slane %v2008_v30, 0 }
 0x343   :  { %v920_v32 = vadd.f32 %v918_v1, %v906_v2  ;;  %v921_v61 = vadd.f32 %v919_v60, %v907_v38  ;;  %v3416_v2 = vperm.slane %v2006_v26, 0 }
 0x344   :  { %v938_v17 = vpop.permute.xlu1 %937 }
 0x345   :  { %v941_v51 = vsel %vm301_vm10, %v938_v17, %v940_v19  ;;  %v942_v15 = vsel %vm301_vm10, %v940_v19, %v938_v17  ;;  %v926_v53 = vpop.permute.xlu0 %925 }
 0x346   :  { %v927_v44 = vsel %vm284_vm9, %v924_v25, %v926_v53  ;;  %v928_v36 = vsel %vm284_vm9, %v926_v53, %v924_v25  ;;  %v943_v52 = vmul.f32 %v941_v51, %v2322_v55  ;;  %v944_v22 = vmul.f32 %v942_v15, %v2325_v6 }
 0x347   :  { %v929_v37 = vmul.f32 %v927_v44, %v2328_v8  ;;  %v930_v12 = vmul.f32 %v928_v36, %v2331_v41  ;;  %v975_v51 = vstv %s1752_s7  ;;  %s3066_s7 = sld [smem:[#allocation3 + $0x47]] }
 0x348   :  { %v946_v58 = vmul.f32 %v945_v20, %v943_v52  ;;  %v947_v54 = vmul.f32 %v945_v20, %v944_v22  ;;  %v989_v22 = vstv %s1753_s8  ;;  %s3068_s8 = sld [smem:[#allocation3 + $0x48]] }
 0x349   :  { %v932_v57 = vmul.f32 %v931_v29, %v929_v37  ;;  %v933_v63 = vmul.f32 %v931_v29, %v930_v12 }
 0x34b   :  { %v934_v62 = vadd.f32 %v932_v57, %v920_v32  ;;  %v935_v10 = vadd.f32 %v933_v63, %v921_v61 }
 0x34c   :  { %v961_v48 = vpop.permute.xlu1 %960 }
 0x34d   :  { %v948_v39 = vadd.f32 %v946_v58, %v934_v62  ;;  %v949_v40 = vadd.f32 %v947_v54, %v935_v10  ;;  %v959_v11 = vpop.permute.xlu0 %958 }
 0x34e   :  { %v962_v25 = vsel %vm194_vm2, %v959_v11, %v961_v48  ;;  %v963_v14 = vsel %vm194_vm2, %v961_v48, %v959_v11 }
 0x34f   :  { %v964_v38 = vmul.f32 %v963_v14, %v3416_v2  ;;  %v965_v59 = vmul.f32 %v962_v25, %v3417_v21 }
 0x351   :  { %981 = vrot.lane.b32.xlu1 %v964_v38, %s1950_s16  ;;  %967 = vrot.lane.b32.xlu2 %v964_v38, %s1949_s15  ;;  %v1009_v21 = vmul.f32 %v964_v38, %v2021_v43 }
 0x352   :  { %969 = vrot.lane.b32.xlu0 %v965_v59, %s1949_s15 }
 0x359   :  { %997 = vrot.lane.b32.xlu1 %v965_v59, %s1951_s17  ;;  %983 = vrot.lane.b32.xlu2 %v965_v59, %s1950_s16 }
 0x35a   :  { %995 = vrot.lane.b32.xlu0 %v964_v38, %s1951_s17 }
 0x361   :  { %1031 = vrot.lane.b32.xlu1 %v964_v38, %s1953_s19  ;;  %1017 = vrot.lane.b32.xlu2 %v964_v38, %s1952_s18 }
 0x362   :  { %1019 = vrot.lane.b32.xlu0 %v965_v59, %s1952_s18 }
 0x369   :  { %1047 = vrot.lane.b32.xlu1 %v965_v59, %s1954_s20  ;;  %1033 = vrot.lane.b32.xlu2 %v965_v59, %s1953_s19 }
 0x36a   :  { %1045 = vrot.lane.b32.xlu0 %v964_v38, %s1954_s20 }
 0x371   :  { %1058 = vrot.lane.b32.xlu2 %v2767_v31, %s1948_s14 }
 0x372   :  { %1060 = vrot.lane.b32.xlu0 %v2762_v13, %s1948_s14  ;;  %s1754_s14 = sld [smem:[#allocation3 + $0x33]] }
 0x378   :  { %v1003_v25 = vstv %s1754_s14  ;;  %s3090_s14 = sld [smem:[#allocation3 + $0x4a]] }
 0x3ab   :  { %v968_v1 = vpop.permute.xlu2 %967 }
 0x3b3   :  { %v984_v60 = vpop.permute.xlu2 %983 }
 0x3bb   :  { %v1018_v20 = vpop.permute.xlu2 %1017 }
 0x3c3   :  { %v982_v32 = vpop.permute.xlu1 %981 }
 0x3c4   :  { %v985_v61 = vsel %vm223_vm6, %v982_v32, %v984_v60  ;;  %v986_v19 = vsel %vm223_vm6, %v984_v60, %v982_v32  ;;  %v970_v17 = vpop.permute.xlu0 %969 }
 0x3c5   :  { %v971_v15 = vsel %vm206_vm5, %v968_v1, %v970_v17  ;;  %v972_v53 = vsel %vm206_vm5, %v970_v17, %v968_v1  ;;  %v987_v29 = vmul.f32 %v986_v19, %v2253_v16  ;;  %v988_v44 = vmul.f32 %v985_v61, %v2256_v18 }
 0x3c6   :  { %v973_v36 = vmul.f32 %v972_v53, %v2238_v5  ;;  %v974_v52 = vmul.f32 %v971_v15, %v2235_v4  ;;  %v1010_v1 = vmul.f32 %v965_v59, %v2025_v46  ;;  %v1034_v53 = vpop.permute.xlu2 %1033 }
 0x3c7   :  { %v990_v57 = vmul.f32 %v989_v22, %v987_v29  ;;  %v991_v63 = vmul.f32 %v989_v22, %v988_v44  ;;  %v1025_v22 = vstv %s1756_s10  ;;  %s1779_s10 = sld [smem:[#allocation3 + $0x4c]] }
 0x3c8   :  { %v976_v37 = vmul.f32 %v975_v51, %v973_v36  ;;  %v977_v12 = vmul.f32 %v975_v51, %v974_v52 }
 0x3ca   :  { %v978_v58 = vadd.f32 %v976_v37, %v948_v39  ;;  %v979_v54 = vadd.f32 %v977_v12, %v949_v40  ;;  %v1011_v40 = vstv %s1755_s9  ;;  %s1778_s9 = sld [smem:[#allocation3 + $0x4b]] }
 0x3cb   :  { %v998_v62 = vpop.permute.xlu1 %997  ;;  %v1012_v19 = vmul.f32 %v1011_v40, %v1009_v21  ;;  %v1013_v17 = vmul.f32 %v1011_v40, %v1010_v1 }
 0x3cc   :  { %v992_v10 = vadd.f32 %v990_v57, %v978_v58  ;;  %v993_v48 = vadd.f32 %v991_v63, %v979_v54  ;;  %v996_v11 = vpop.permute.xlu0 %995 }
 0x3cd   :  { %v999_v14 = vsel %vm240_vm7, %v996_v11, %v998_v62  ;;  %v1000_v2 = vsel %vm240_vm7, %v998_v62, %v996_v11  ;;  %v1039_v62 = vstv %s1757_s11  ;;  %s1781_s11 = sld [smem:[#allocation3 + $0x4e]] }
 0x3ce   :  { %v1001_v60 = vmul.f32 %v1000_v2, %v2267_v33  ;;  %v1002_v39 = vmul.f32 %v999_v14, %v2270_v56 }
 0x3d0   :  { %v1004_v32 = vmul.f32 %v1003_v25, %v1001_v60  ;;  %v1005_v61 = vmul.f32 %v1003_v25, %v1002_v39  ;;  %v1053_v39 = vstv %s1758_s13  ;;  %s1782_s13 = sld [smem:[#allocation3 + $0x4f]] }
 0x3d2   :  { %v1006_v51 = vadd.f32 %v1004_v32, %v992_v10  ;;  %v1007_v15 = vadd.f32 %v1005_v61, %v993_v48 }
 0x3d3   :  { %v1032_v29 = vpop.permute.xlu1 %1031 }
 0x3d4   :  { %v1014_v44 = vadd.f32 %v1012_v19, %v1006_v51  ;;  %v1015_v36 = vadd.f32 %v1013_v17, %v1007_v15  ;;  %v1035_v38 = vsel %vm284_vm9, %v1032_v29, %v1034_v53  ;;  %v1036_v59 = vsel %vm284_vm9, %v1034_v53, %v1032_v29  ;;  %v1020_v52 = vpop.permute.xlu0 %1019  ;;  %v1059_v29 = vpop.permute.xlu2 %1058 }
 0x3d5   :  { %v1021_v37 = vsel %vm267_vm8, %v1018_v20, %v1020_v52  ;;  %v1022_v12 = vsel %vm267_vm8, %v1020_v52, %v1018_v20  ;;  %v1037_v57 = vmul.f32 %v1035_v38, %v2328_v8  ;;  %v1038_v63 = vmul.f32 %v1036_v59, %v2331_v41 }
 0x3d6   :  { %v1023_v58 = vmul.f32 %v1021_v37, %v2300_v3  ;;  %v1024_v54 = vmul.f32 %v1022_v12, %v2303_v47  ;;  %v3418_v59 = vperm.slane %v2006_v26, 1 }
 0x3d7   :  { %v1040_v11 = vmul.f32 %v1039_v62, %v1037_v57  ;;  %v1041_v25 = vmul.f32 %v1039_v62, %v1038_v63 }
 0x3d8   :  { %v1026_v10 = vmul.f32 %v1025_v22, %v1023_v58  ;;  %v1027_v48 = vmul.f32 %v1025_v22, %v1024_v54  ;;  %v3419_v22 = vperm.slane %v2008_v30, 1  ;;  %v1075_v58 = vstv %s1759_s2  ;;  %s1783_s2 = sld [smem:[#allocation3 + $0x50]] }
 0x3da   :  { %v1028_v14 = vadd.f32 %v1026_v10, %v1014_v44  ;;  %v1029_v2 = vadd.f32 %v1027_v48, %v1015_v36 }
 0x3db   :  { %v1048_v21 = vpop.permute.xlu1 %1047 }
 0x3dc   :  { %v1042_v1 = vadd.f32 %v1040_v11, %v1028_v14  ;;  %v1043_v60 = vadd.f32 %v1041_v25, %v1029_v2  ;;  %v1046_v20 = vpop.permute.xlu0 %1045 }
 0x3dd   :  { %v1049_v40 = vsel %vm301_vm10, %v1046_v20, %v1048_v21  ;;  %v1050_v32 = vsel %vm301_vm10, %v1048_v21, %v1046_v20 }
 0x3de   :  { %v1051_v61 = vmul.f32 %v1049_v40, %v2322_v55  ;;  %v1052_v19 = vmul.f32 %v1050_v32, %v2325_v6 }
 0x3e0   :  { %v1054_v17 = vmul.f32 %v1053_v39, %v1051_v61  ;;  %v1055_v51 = vmul.f32 %v1053_v39, %v1052_v19 }
 0x3e2   :  { %v1056_v15 = vadd.f32 %v1054_v17, %v1042_v1  ;;  %v1057_v53 = vadd.f32 %v1055_v51, %v1043_v60  ;;  %v1089_v60 = vstv %s1760_s22  ;;  %s1784_s22 = sld [smem:[#allocation3 + $0x51]] }
 0x3e4   :  { %v1061_v44 = vpop.permute.xlu0 %1060 }
 0x3e5   :  { %v1062_v36 = vsel %vm317_vm3, %v1059_v29, %v1061_v44  ;;  %v1063_v38 = vsel %vm317_vm3, %v1061_v44, %v1059_v29 }
 0x3e6   :  { %v1064_v52 = vmul.f32 %v1063_v38, %v3418_v59  ;;  %v1065_v37 = vmul.f32 %v1062_v36, %v3419_v22 }
 0x3e8   :  { %1081 = vrot.lane.b32.xlu0 %v1064_v52, %s1950_s16  ;;  %1067 = vrot.lane.b32.xlu1 %v1064_v52, %s1949_s15  ;;  %v1109_v44 = vmul.f32 %v1064_v52, %v2021_v43  ;;  %v1110_v59 = vmul.f32 %v1065_v37, %v2025_v46 }
 0x3e9   :  { %1069 = vrot.lane.b32.xlu2 %v1065_v37, %s1949_s15 }
 0x3f0   :  { %1097 = vrot.lane.b32.xlu0 %v1065_v37, %s1951_s17  ;;  %1083 = vrot.lane.b32.xlu1 %v1065_v37, %s1950_s16 }
 0x3f1   :  { %1095 = vrot.lane.b32.xlu2 %v1064_v52, %s1951_s17 }
 0x3f8   :  { %1131 = vrot.lane.b32.xlu0 %v1064_v52, %s1953_s19  ;;  %1117 = vrot.lane.b32.xlu1 %v1064_v52, %s1952_s18 }
 0x3f9   :  { %1119 = vrot.lane.b32.xlu2 %v1065_v37, %s1952_s18 }
 0x400   :  { %1147 = vrot.lane.b32.xlu0 %v1065_v37, %s1954_s20  ;;  %1133 = vrot.lane.b32.xlu1 %v1065_v37, %s1953_s19 }
 0x401   :  { %1145 = vrot.lane.b32.xlu2 %v1064_v52, %s1954_s20 }
 0x408   :  { %1158 = vrot.lane.b32.xlu1 %v2767_v31, %s1945_s0 }
 0x409   :  { %1160 = vrot.lane.b32.xlu2 %v2762_v13, %s1945_s0  ;;  %s1762_s0 = sld [smem:[#allocation3 + $0x3b]] }
 0x40f   :  { %v1111_v22 = vstv %s1762_s0  ;;  %s3271_s0 = sld [smem:[#allocation3 + $0x56]] }
 0x443   :  { %v1070_v12 = vpop.permute.xlu2 %1069 }
 0x44b   :  { %v1096_v10 = vpop.permute.xlu2 %1095 }
 0x453   :  { %v1120_v29 = vpop.permute.xlu2 %1119 }
 0x45a   :  { %v1082_v57 = vpop.permute.xlu0 %1081  ;;  %v1068_v63 = vpop.permute.xlu1 %1067 }
 0x45b   :  { %v1071_v54 = vsel %vm206_vm5, %v1068_v63, %v1070_v12  ;;  %v1072_v62 = vsel %vm206_vm5, %v1070_v12, %v1068_v63 }
 0x45c   :  { %v1073_v48 = vmul.f32 %v1072_v62, %v2238_v5  ;;  %v1074_v11 = vmul.f32 %v1071_v54, %v2235_v4  ;;  %v1112_v54 = vmul.f32 %v1111_v22, %v1109_v44 }
 0x45e   :  { %v1076_v25 = vmul.f32 %v1075_v58, %v1073_v48  ;;  %v1077_v14 = vmul.f32 %v1075_v58, %v1074_v11  ;;  %v1113_v48 = vmul.f32 %v1111_v22, %v1110_v59 }
 0x460   :  { %v1078_v2 = vadd.f32 %v1076_v25, %v1056_v15  ;;  %v1079_v21 = vadd.f32 %v1077_v14, %v1057_v53  ;;  %v1103_v53 = vstv %s1761_s23  ;;  %v1125_v14 = vstv %s2918_s24  ;;  %s3269_s23 = sld [smem:[#allocation3 + $0x55]] }
 0x461   :  { %s3317_s24 = sld [smem:[#allocation3 + $0x5a]] }
 0x462   :  { %v1098_v1 = vpop.permute.xlu0 %1097  ;;  %v1084_v20 = vpop.permute.xlu1 %1083 }
 0x463   :  { %v1099_v39 = vsel %vm240_vm7, %v1096_v10, %v1098_v1  ;;  %v1100_v40 = vsel %vm240_vm7, %v1098_v1, %v1096_v10  ;;  %v1085_v32 = vsel %vm223_vm6, %v1082_v57, %v1084_v20  ;;  %v1086_v61 = vsel %vm223_vm6, %v1084_v20, %v1082_v57 }
 0x464   :  { %v1101_v19 = vmul.f32 %v1100_v40, %v2267_v33  ;;  %v1102_v17 = vmul.f32 %v1099_v39, %v2270_v56  ;;  %v1087_v51 = vmul.f32 %v1086_v61, %v2253_v16  ;;  %v1088_v15 = vmul.f32 %v1085_v32, %v2256_v18  ;;  %v1146_v40 = vpop.permute.xlu2 %1145 }
 0x466   :  { %v1090_v36 = vmul.f32 %v1089_v60, %v1087_v51  ;;  %v1091_v38 = vmul.f32 %v1089_v60, %v1088_v15  ;;  %v1104_v12 = vmul.f32 %v1103_v53, %v1101_v19  ;;  %v1105_v57 = vmul.f32 %v1103_v53, %v1102_v17 }
 0x467   :  { %v1139_v17 = vstv %s1764_s25  ;;  %s1794_s25 = sld [smem:[#allocation3 + $0x5b]] }
 0x468   :  { %v1092_v63 = vadd.f32 %v1090_v36, %v1078_v2  ;;  %v1093_v58 = vadd.f32 %v1091_v38, %v1079_v21 }
 0x46a   :  { %v1106_v62 = vadd.f32 %v1104_v12, %v1092_v63  ;;  %v1107_v10 = vadd.f32 %v1105_v57, %v1093_v58  ;;  %v1132_v11 = vpop.permute.xlu0 %1131  ;;  %v1118_v25 = vpop.permute.xlu1 %1117  ;;  %v1153_v12 = vstv %s1765_s26  ;;  %s3335_s26 = sld [smem:[#allocation3 + $0x5c]] }
 0x46b   :  { %v1121_v52 = vsel %vm267_vm8, %v1118_v25, %v1120_v29  ;;  %v1122_v1 = vsel %vm267_vm8, %v1120_v29, %v1118_v25 }
 0x46c   :  { %v1114_v37 = vadd.f32 %v1112_v54, %v1106_v62  ;;  %v1115_v60 = vadd.f32 %v1113_v48, %v1107_v10  ;;  %v1123_v20 = vmul.f32 %v1121_v52, %v2300_v3  ;;  %v1124_v2 = vmul.f32 %v1122_v1, %v2303_v47  ;;  %v1161_v48 = vpop.permute.xlu2 %1160 }
 0x46e   :  { %v1126_v21 = vmul.f32 %v1125_v14, %v1123_v20  ;;  %v1127_v39 = vmul.f32 %v1125_v14, %v1124_v2  ;;  %v3421_v20 = vperm.slane %v2008_v30, 2 }
 0x470   :  { %v1128_v32 = vadd.f32 %v1126_v21, %v1114_v37  ;;  %v1129_v61 = vadd.f32 %v1127_v39, %v1115_v60  ;;  %v3420_v37 = vperm.slane %v2006_v26, 2  ;;  %v3422_v21 = vld [vmem:[#allocation16_spill] sm:$0xff] }
 0x471   :  { %v2977_v39 = vmul.f32 %v3422_v21, %v2757_v9 }
 0x472   :  { %v1148_v19 = vpop.permute.xlu0 %1147  ;;  %v1134_v51 = vpop.permute.xlu1 %1133 }
 0x473   :  { %v1149_v15 = vsel %vm301_vm10, %v1146_v40, %v1148_v19  ;;  %v1150_v53 = vsel %vm301_vm10, %v1148_v19, %v1146_v40  ;;  %v1135_v29 = vsel %vm284_vm9, %v1132_v11, %v1134_v51  ;;  %v1136_v44 = vsel %vm284_vm9, %v1134_v51, %v1132_v11  ;;  %v3423_v40 = vld [vmem:[#allocation17_spill] sm:$0xff] }
 0x474   :  { %v1151_v36 = vmul.f32 %v1149_v15, %v2322_v55  ;;  %v1152_v38 = vmul.f32 %v1150_v53, %v2325_v6  ;;  %v1137_v59 = vmul.f32 %v1135_v29, %v2328_v8  ;;  %v1138_v22 = vmul.f32 %v1136_v44, %v2331_v41 }
 0x475   :  { %v1267_v9 = vrot.slane %v2977_v39, 7  ;;  %v2996_v19 = vmul.f32 %v3423_v40, %v2751_v35  ;;  %v1175_v29 = vstv %s1766_s27  ;;  %s3337_s27 = sld [smem:[#allocation3 + $0x5d]] }
 0x476   :  { %v1140_v57 = vmul.f32 %v1139_v17, %v1137_v59  ;;  %v1141_v63 = vmul.f32 %v1139_v17, %v1138_v22  ;;  %v1154_v58 = vmul.f32 %v1153_v12, %v1151_v36  ;;  %v1155_v54 = vmul.f32 %v1153_v12, %v1152_v38 }
 0x478   :  { %v1142_v62 = vadd.f32 %v1140_v57, %v1128_v32  ;;  %v1143_v10 = vadd.f32 %v1141_v63, %v1129_v61  ;;  %v2981_v32 = vmul.f32 %v3423_v40, %v2753_v45  ;;  %v2991_v61 = vmul.f32 %v3422_v21, %v2755_v0 }
 0x47a   :  { %v1157_v25 = vadd.f32 %v1155_v54, %v1143_v10  ;;  %v1159_v14 = vpop.permute.xlu1 %1158  ;;  %v1156_v52 = vadd.f32 %v1154_v58, %v1142_v62  ;;  %v1269_v45 = vrot.slane %v2981_v32, 7  ;;  %v1268_v17 = vsel %vm183_vm1, %v1267_v9, %v2991_v61 }
 0x47b   :  { %v1162_v11 = vsel %vm420_vm4, %v1159_v14, %v1161_v48  ;;  %v1163_v1 = vsel %vm420_vm4, %v1161_v48, %v1159_v14  ;;  %v1189_v62 = vstv %s1767_s28  ;;  %s3341_s28 = sld [smem:[#allocation3 + $0x5e]] }
 0x47c   :  { %v2951_v60 = vmul.f32 %v1163_v1, %v3420_v37  ;;  %v2955_v2 = vmul.f32 %v1162_v11, %v3421_v20  ;;  %v1270_v51 = vsel %vm183_vm1, %v1269_v45, %v2996_v19 }
 0x47e   :  { %1181 = vrot.lane.b32.xlu2 %v2951_v60, %s1950_s16  ;;  %1167 = vrot.lane.b32.xlu0 %v2951_v60, %s1949_s15  ;;  %v1209_v45 = vmul.f32 %v2951_v60, %v2021_v43 }
 0x47f   :  { %1169 = vrot.lane.b32.xlu1 %v2955_v2, %s1949_s15 }
 0x486   :  { %1197 = vrot.lane.b32.xlu2 %v2955_v2, %s1951_s17  ;;  %1183 = vrot.lane.b32.xlu0 %v2955_v2, %s1950_s16 }
 0x487   :  { %1195 = vrot.lane.b32.xlu1 %v2951_v60, %s1951_s17 }
 0x48e   :  { %1231 = vrot.lane.b32.xlu2 %v2951_v60, %s1953_s19  ;;  %1217 = vrot.lane.b32.xlu0 %v2951_v60, %s1952_s18 }
 0x48f   :  { %1219 = vrot.lane.b32.xlu1 %v2955_v2, %s1952_s18 }
 0x496   :  { %1247 = vrot.lane.b32.xlu2 %v2955_v2, %s1954_s20  ;;  %1233 = vrot.lane.b32.xlu0 %v2955_v2, %s1953_s19 }
 0x497   :  { %1245 = vrot.lane.b32.xlu1 %v2951_v60, %s1954_s20 }
 0x49e   :  { %1273 = vrot.lane.b32.xlu0 %v1268_v17, %s1949_s15  ;;  %1287 = vrot.lane.b32.xlu2 %v1268_v17, %s1950_s16 }
 0x49f   :  { %1275 = vrot.lane.b32.xlu1 %v1270_v51, %s1949_s15 }
 0x4a6   :  { %1289 = vrot.lane.b32.xlu0 %v1270_v51, %s1950_s16  ;;  %1303 = vrot.lane.b32.xlu2 %v1270_v51, %s1951_s17 }
 0x4a7   :  { %1301 = vrot.lane.b32.xlu1 %v1268_v17, %s1951_s17 }
 0x4ae   :  { %1337 = vrot.lane.b32.xlu0 %v1268_v17, %s1952_s18  ;;  %1351 = vrot.lane.b32.xlu2 %v1268_v17, %s1953_s19 }
 0x4af   :  { %1339 = vrot.lane.b32.xlu1 %v1270_v51, %s1952_s18 }
 0x4b6   :  { %1353 = vrot.lane.b32.xlu0 %v1270_v51, %s1953_s19  ;;  %1380 = vrot.lane.b32.xlu2 %v2762_v13, %s1955_s21 }
 0x4b7   :  { %1378 = vrot.lane.b32.xlu1 %v2767_v31, %s1955_s21  ;;  %s1768_s21 = sld [smem:[#allocation3 + $0x41]] }
 0x4be   :  { %1365 = vrot.lane.b32.xlu0 %v1268_v17, %s1954_s20  ;;  %v1210_v17 = vmul.f32 %v2955_v2, %v2025_v46 }
 0x4bf   :  { %1367 = vrot.lane.b32.xlu1 %v1270_v51, %s1954_s20 }
 0x4c6   :  { %1478 = vrot.lane.b32.xlu0 %v2767_v31, %s1956_s1 }
 0x4c7   :  { %1480 = vrot.lane.b32.xlu1 %v2762_v13, %s1956_s1  ;;  %s1769_s1 = sld [smem:[#allocation3 + $0x42]] }
 0x4cd   :  { %v1211_v51 = vstv %s1769_s1  ;;  %s1799_s1 = sld [smem:[#allocation3 + $0x60]] }
 0x4d8   :  { %v1182_v35 = vpop.permute.xlu2 %1181 }
 0x4e0   :  { %v1198_v0 = vpop.permute.xlu2 %1197 }
 0x4e8   :  { %v1232_v57 = vpop.permute.xlu2 %1231 }
 0x4f0   :  { %v1168_v15 = vpop.permute.xlu0 %1167 }
 0x4f1   :  { %v1170_v53 = vpop.permute.xlu1 %1169 }
 0x4f2   :  { %v1171_v44 = vsel %vm206_vm5, %v1168_v15, %v1170_v53  ;;  %v1172_v36 = vsel %vm206_vm5, %v1170_v53, %v1168_v15 }
 0x4f3   :  { %v1173_v38 = vmul.f32 %v1172_v36, %v2238_v5  ;;  %v1174_v59 = vmul.f32 %v1171_v44, %v2235_v4 }
 0x4f5   :  { %v1176_v22 = vmul.f32 %v1175_v29, %v1173_v38  ;;  %v1177_v12 = vmul.f32 %v1175_v29, %v1174_v59  ;;  %v1212_v38 = vmul.f32 %v1211_v51, %v1209_v45  ;;  %v1213_v59 = vmul.f32 %v1211_v51, %v1210_v17 }
 0x4f7   :  { %v1178_v63 = vadd.f32 %v1176_v22, %v1156_v52  ;;  %v1179_v58 = vadd.f32 %v1177_v12, %v1157_v25  ;;  %v1203_v52 = vstv %s1768_s21  ;;  %v1248_v22 = vpop.permute.xlu2 %1247  ;;  %v1225_v12 = vstv %s3033_s29  ;;  %s1798_s21 = sld [smem:[#allocation3 + $0x5f]] }
 0x4f8   :  { %v1184_v54 = vpop.permute.xlu0 %1183  ;;  %s1800_s29 = sld [smem:[#allocation3 + $0x61]] }
 0x4f9   :  { %v1185_v10 = vsel %vm223_vm6, %v1182_v35, %v1184_v54  ;;  %v1186_v48 = vsel %vm223_vm6, %v1184_v54, %v1182_v35  ;;  %v1196_v14 = vpop.permute.xlu1 %1195 }
 0x4fa   :  { %v1187_v11 = vmul.f32 %v1186_v48, %v2253_v16  ;;  %v1188_v1 = vmul.f32 %v1185_v10, %v2256_v18  ;;  %v1199_v37 = vsel %vm240_vm7, %v1196_v14, %v1198_v0  ;;  %v1200_v25 = vsel %vm240_vm7, %v1198_v0, %v1196_v14 }
 0x4fb   :  { %v1201_v20 = vmul.f32 %v1200_v25, %v2267_v33  ;;  %v1202_v21 = vmul.f32 %v1199_v37, %v2270_v56  ;;  %v1239_v25 = vstv %s1771_s4  ;;  %s1958_s4 = smov [#allocation11]  }
 0x4fc   :  { %v1190_v40 = vmul.f32 %v1189_v62, %v1187_v11  ;;  %v1191_v9 = vmul.f32 %v1189_v62, %v1188_v1 }
 0x4fd   :  { %v1204_v53 = vmul.f32 %v1203_v52, %v1201_v20  ;;  %v1205_v29 = vmul.f32 %v1203_v52, %v1202_v21 }
 0x4fe   :  { %v1192_v35 = vadd.f32 %v1190_v40, %v1178_v63  ;;  %v1193_v15 = vadd.f32 %v1191_v9, %v1179_v58 }
 0x4ff   :  { %v1288_v40 = vpop.permute.xlu2 %1287 }
 0x500   :  { %v1206_v0 = vadd.f32 %v1204_v53, %v1192_v35  ;;  %v1207_v44 = vadd.f32 %v1205_v29, %v1193_v15  ;;  %v1218_v36 = vpop.permute.xlu0 %1217  ;;  %v1253_v35 = vstv %s1772_s30  ;;  %s1690_s30 = sshll.u32 %s1958_s4, 4  ;;  %s1691_s30 = int_to_ptr.vmem [resolvable:$true] %s1690_s30 }
 0x501   :  { %v1220_v54 = vpop.permute.xlu1 %1219 }
 0x502   :  { %v1214_v62 = vadd.f32 %v1212_v38, %v1206_v0  ;;  %v1215_v10 = vadd.f32 %v1213_v59, %v1207_v44  ;;  %v1221_v60 = vsel %vm267_vm8, %v1218_v36, %v1220_v54  ;;  %v1222_v2 = vsel %vm267_vm8, %v1220_v54, %v1218_v36 }
 0x503   :  { %v1223_v63 = vmul.f32 %v1221_v60, %v2300_v3  ;;  %v1224_v58 = vmul.f32 %v1222_v2, %v2303_v47 }
 0x505   :  { %v1226_v48 = vmul.f32 %v1225_v12, %v1223_v63  ;;  %v1227_v14 = vmul.f32 %v1225_v12, %v1224_v58 }
 0x507   :  { %v1228_v11 = vadd.f32 %v1226_v48, %v1214_v62  ;;  %v1229_v1 = vadd.f32 %v1227_v14, %v1215_v10  ;;  %v1281_v62 = vstv %s1773_s6  ;;  %v1304_v58 = vpop.permute.xlu2 %1303  ;;  %v1317_v48 = vmul.f32 %v2977_v39, %v2021_v43 }
 0x508   :  { %v1234_v37 = vpop.permute.xlu0 %1233  ;;  %v1318_v14 = vmul.f32 %v2981_v32, %v2025_v46 }
 0x509   :  { %v1235_v52 = vsel %vm284_vm9, %v1232_v57, %v1234_v37  ;;  %v1236_v20 = vsel %vm284_vm9, %v1234_v37, %v1232_v57  ;;  %v1246_v21 = vpop.permute.xlu1 %1245  ;;  %v1316_v37 = vmul.f32 %v2996_v19, %v2025_v46 }
 0x50a   :  { %v1237_v9 = vmul.f32 %v1235_v52, %v2328_v8  ;;  %v1238_v45 = vmul.f32 %v1236_v20, %v2331_v41  ;;  %v1249_v17 = vsel %vm301_vm10, %v1246_v21, %v1248_v22  ;;  %v1250_v51 = vsel %vm301_vm10, %v1248_v22, %v1246_v21 }
 0x50b   :  { %v1251_v15 = vmul.f32 %v1249_v17, %v2322_v55  ;;  %v1252_v53 = vmul.f32 %v1250_v51, %v2325_v6  ;;  %v1295_v17 = vstv %s3066_s7  ;;  %s1692_s7 = sshll.u32 %s3388_s5, 4  ;;  %s1693_s7 = int_to_ptr.hbm [resolvable:$true] %s1692_s7 }
 0x50c   :  { %v1240_v29 = vmul.f32 %v1239_v25, %v1237_v9  ;;  %v1241_v57 = vmul.f32 %v1239_v25, %v1238_v45 }
 0x50d   :  { %v1254_v36 = vmul.f32 %v1253_v35, %v1251_v15  ;;  %v1255_v38 = vmul.f32 %v1253_v35, %v1252_v53  ;;  %v1309_v35 = vstv %s3068_s8 }
 0x50e   :  { %v1242_v0 = vadd.f32 %v1240_v29, %v1228_v11  ;;  %v1243_v44 = vadd.f32 %v1241_v57, %v1229_v1  ;;  %v1319_v11 = vstv %s1776_s3  ;;  %v1315_v1 = vmul.f32 %v2991_v61, %v2021_v43 }
 0x50f   :  { %v1322_v9 = vmul.f32 %v1319_v11, %v1317_v48  ;;  %v1323_v45 = vmul.f32 %v1319_v11, %v1318_v14  ;;  %v1321_v53 = vmul.f32 %v1319_v11, %v1316_v37 }
 0x510   :  { %v1256_v59 = vadd.f32 %v1254_v36, %v1242_v0  ;;  %v1257_v12 = vadd.f32 %v1255_v38, %v1243_v44  ;;  %v1274_v54 = vpop.permute.xlu0 %1273  ;;  %v1320_v61 = vmul.f32 %v1319_v11, %v1315_v1  ;;  %v1345_v11 = vstv %s3090_s14 }
 0x511   :  { %v1276_v22 = vpop.permute.xlu1 %1275  ;;  %v1328_v36 = vrot.slane %v1322_v9, 7  ;;  %v1330_v38 = vrot.slane %v1323_v45, 7 }
 0x512   :  { %v1277_v10 = vsel %vm206_vm5, %v1274_v54, %v1276_v22  ;;  %v1278_v60 = vsel %vm206_vm5, %v1276_v22, %v1274_v54  ;;  %v1352_v54 = vpop.permute.xlu2 %1351 }
 0x513   :  { %v1279_v2 = vmul.f32 %v1278_v60, %v2238_v5  ;;  %v1280_v63 = vmul.f32 %v1277_v10, %v2235_v4 }
 0x515   :  { %v1282_v25 = vmul.f32 %v1281_v62, %v1279_v2  ;;  %v1283_v52 = vmul.f32 %v1281_v62, %v1280_v63  ;;  %v1329_v2 = vsel %vm183_vm1, %v1328_v36, %v1320_v61  ;;  %v1331_v63 = vsel %vm183_vm1, %v1330_v38, %v1321_v53 }
 0x517   :  { %v1284_v20 = vadd.f32 %v1282_v25, %v1256_v59  ;;  %v1285_v21 = vadd.f32 %v1283_v52, %v1257_v12 }
 0x518   :  { %v1290_v51 = vpop.permute.xlu0 %1289 }
 0x519   :  { %v1291_v39 = vsel %vm223_vm6, %v1288_v40, %v1290_v51  ;;  %v1292_v32 = vsel %vm223_vm6, %v1290_v51, %v1288_v40  ;;  %v1302_v15 = vpop.permute.xlu1 %1301 }
 0x51a   :  { %v1293_v19 = vmul.f32 %v1292_v32, %v2253_v16  ;;  %v1294_v29 = vmul.f32 %v1291_v39, %v2256_v18  ;;  %v1305_v57 = vsel %vm240_vm7, %v1302_v15, %v1304_v58  ;;  %v1306_v0 = vsel %vm240_vm7, %v1304_v58, %v1302_v15  ;;  %v1381_v39 = vpop.permute.xlu2 %1380 }
 0x51b   :  { %v1307_v44 = vmul.f32 %v1306_v0, %v2267_v33  ;;  %v1308_v40 = vmul.f32 %v1305_v57, %v2270_v56  ;;  %v1359_v15 = vstv %s1778_s9 }
 0x51c   :  { %v1296_v59 = vmul.f32 %v1295_v17, %v1293_v19  ;;  %v1297_v12 = vmul.f32 %v1295_v17, %v1294_v29 }
 0x51d   :  { %v1310_v10 = vmul.f32 %v1309_v35, %v1307_v44  ;;  %v1311_v60 = vmul.f32 %v1309_v35, %v1308_v40 }
 0x51e   :  { %v1298_v22 = vadd.f32 %v1296_v59, %v1284_v20  ;;  %v1299_v62 = vadd.f32 %v1297_v12, %v1285_v21 }
 0x520   :  { %v1312_v48 = vadd.f32 %v1310_v10, %v1298_v22  ;;  %v1313_v58 = vadd.f32 %v1311_v60, %v1299_v62  ;;  %v1338_v14 = vpop.permute.xlu0 %1337  ;;  %v1373_v22 = vstv %s1779_s10 }
 0x521   :  { %v1340_v1 = vpop.permute.xlu1 %1339 }
 0x522   :  { %v1334_v37 = vadd.f32 %v1329_v2, %v1312_v48  ;;  %v1335_v25 = vadd.f32 %v1331_v63, %v1313_v58  ;;  %v1341_v52 = vsel %vm267_vm8, %v1338_v14, %v1340_v1  ;;  %v1342_v20 = vsel %vm267_vm8, %v1340_v1, %v1338_v14 }
 0x523   :  { %v1343_v21 = vmul.f32 %v1341_v52, %v2300_v3  ;;  %v1344_v9 = vmul.f32 %v1342_v20, %v2303_v47 }
 0x525   :  { %v1346_v45 = vmul.f32 %v1345_v11, %v1343_v21  ;;  %v1347_v17 = vmul.f32 %v1345_v11, %v1344_v9 }
 0x527   :  { %v1348_v51 = vadd.f32 %v1346_v45, %v1334_v37  ;;  %v1349_v35 = vadd.f32 %v1347_v17, %v1335_v25 }
 0x528   :  { %v1354_v32 = vpop.permute.xlu0 %1353 }
 0x529   :  { %v1355_v61 = vsel %vm284_vm9, %v1352_v54, %v1354_v32  ;;  %v1356_v53 = vsel %vm284_vm9, %v1354_v32, %v1352_v54  ;;  %v1379_v19 = vpop.permute.xlu1 %1378 }
 0x52a   :  { %v1357_v29 = vmul.f32 %v1355_v61, %v2328_v8  ;;  %v1358_v57 = vmul.f32 %v1356_v53, %v2331_v41  ;;  %v1382_v0 = vsel %vm645_vm11, %v1379_v19, %v1381_v39  ;;  %v1383_v44 = vsel %vm645_vm11, %v1381_v39, %v1379_v19 }
 0x52b   :  { %v3121_v40 = vmul.f32 %v1382_v0, %v648_v34  ;;  %v3125_v36 = vmul.f32 %v1383_v44, %v649_v24  ;;  %v1409_v61 = vstv %s1781_s11 }
 0x52c   :  { %v1360_v38 = vmul.f32 %v1359_v15, %v1357_v29  ;;  %v1361_v59 = vmul.f32 %v1359_v15, %v1358_v57 }
 0x52d   :  { %1403 = vrot.lane.b32.xlu1 %v3125_v36, %s1950_s16  ;;  %1401 = vrot.lane.b32.xlu0 %v3121_v40, %s1950_s16 }
 0x52e   :  { %v1362_v12 = vadd.f32 %v1360_v38, %v1348_v51  ;;  %v1363_v54 = vadd.f32 %v1361_v59, %v1349_v35  ;;  %1387 = vrot.lane.b32.xlu2 %v3121_v40, %s1949_s15 }
 0x530   :  { %v1366_v26 = vpop.permute.xlu0 %1365 }
 0x531   :  { %v1368_v34 = vpop.permute.xlu1 %1367 }
 0x532   :  { %v1369_v30 = vsel %vm301_vm10, %v1366_v26, %v1368_v34  ;;  %v1370_v24 = vsel %vm301_vm10, %v1368_v34, %v1366_v26  ;;  %v1429_v34 = vmul.f32 %v3121_v40, %v2021_v43 }
 0x533   :  { %v1371_v62 = vmul.f32 %v1369_v30, %v2322_v55  ;;  %v1372_v10 = vmul.f32 %v1370_v24, %v2325_v6 }
 0x535   :  { %v1374_v60 = vmul.f32 %v1373_v22, %v1371_v62  ;;  %v1375_v2 = vmul.f32 %v1373_v22, %v1372_v10  ;;  %1415 = vrot.lane.b32.xlu1 %v3121_v40, %s1951_s17  ;;  %1580 = vrot.lane.b32.xlu0 %v2762_v13, %s1957_s12  ;;  %v1430_v22 = vmul.f32 %v3125_v36, %v2025_v46 }
 0x536   :  { %1389 = vrot.lane.b32.xlu2 %v3125_v36, %s1949_s15 }
 0x537   :  { %v1376_v63 = vadd.f32 %v1374_v60, %v1362_v12  ;;  %v1377_v48 = vadd.f32 %v1375_v2, %v1363_v54  ;;  %v1423_v54 = vstv %s1782_s13 }
 0x538   :  { %v1479_v58 = vpop.permute.xlu0 %1478 }
 0x539   :  { %v1481_v14 = vpop.permute.xlu1 %1480 }
 0x53a   :  { %v1482_v13 = vsel %vm748_vm12, %v1479_v58, %v1481_v14  ;;  %v1483_v11 = vsel %vm748_vm12, %v1481_v14, %v1479_v58 }
 0x53b   :  { %v3167_v1 = vmul.f32 %v1483_v11, %v752_v23 }
 0x53d   :  { %1439 = vrot.lane.b32.xlu1 %v3125_v36, %s1952_s18  ;;  %1437 = vrot.lane.b32.xlu0 %v3121_v40, %s1952_s18 }
 0x53e   :  { %1578 = vrot.lane.b32.xlu2 %v2767_v31, %s1957_s12  ;;  %v3163_v31 = vmul.f32 %v1482_v13, %v751_v42  ;;  %s1780_s12 = sld [smem:[#allocation3 + $0x4d]] }
 0x544   :  { %v1395_v37 = vstv %s1780_s12 }
 0x545   :  { %1465 = vrot.lane.b32.xlu1 %v3121_v40, %s1954_s20  ;;  %1453 = vrot.lane.b32.xlu0 %v3125_v36, %s1953_s19 }
 0x546   :  { %1417 = vrot.lane.b32.xlu2 %v3125_v36, %s1951_s17 }
 0x54d   :  { %1489 = vrot.lane.b32.xlu1 %v3167_v1, %s1949_s15  ;;  %1487 = vrot.lane.b32.xlu0 %v3163_v31, %s1949_s15 }
 0x54e   :  { %1451 = vrot.lane.b32.xlu2 %v3121_v40, %s1953_s19 }
 0x555   :  { %1515 = vrot.lane.b32.xlu1 %v3163_v31, %s1951_s17  ;;  %1503 = vrot.lane.b32.xlu0 %v3167_v1, %s1950_s16 }
 0x556   :  { %1467 = vrot.lane.b32.xlu2 %v3125_v36, %s1954_s20 }
 0x55d   :  { %1539 = vrot.lane.b32.xlu1 %v3167_v1, %s1952_s18  ;;  %1537 = vrot.lane.b32.xlu0 %v3163_v31, %s1952_s18 }
 0x55e   :  { %1501 = vrot.lane.b32.xlu2 %v3163_v31, %s1950_s16 }
 0x565   :  { %1553 = vrot.lane.b32.xlu0 %v3167_v1, %s1953_s19  ;;  %1565 = vrot.lane.b32.xlu1 %v3163_v31, %s1954_s20 }
 0x566   :  { %1517 = vrot.lane.b32.xlu2 %v3167_v1, %s1951_s17 }
 0x56e   :  { %1551 = vrot.lane.b32.xlu2 %v3163_v31, %s1953_s19 }
 0x576   :  { %1567 = vrot.lane.b32.xlu2 %v3167_v1, %s1954_s20 }
 0x588   :  { %v1388_v42 = vpop.permute.xlu2 %1387 }
 0x590   :  { %v1390_v23 = vpop.permute.xlu2 %1389 }
 0x591   :  { %v1391_v25 = vsel %vm206_vm5, %v1388_v42, %v1390_v23  ;;  %v1392_v52 = vsel %vm206_vm5, %v1390_v23, %v1388_v42 }
 0x592   :  { %v1393_v20 = vmul.f32 %v1392_v52, %v2238_v5  ;;  %v1394_v21 = vmul.f32 %v1391_v25, %v2235_v4 }
 0x594   :  { %v1396_v9 = vmul.f32 %v1395_v37, %v1393_v20  ;;  %v1397_v45 = vmul.f32 %v1395_v37, %v1394_v21 }
 0x596   :  { %v1398_v17 = vadd.f32 %v1396_v9, %v1376_v63  ;;  %v1399_v51 = vadd.f32 %v1397_v45, %v1377_v48  ;;  %v1431_v48 = vstv %s1783_s2 }
 0x598   :  { %v1579_v35 = vpop.permute.xlu2 %1578 }
 0x59f   :  { %v1402_v39 = vpop.permute.xlu0 %1401  ;;  %v1404_v32 = vpop.permute.xlu1 %1403 }
 0x5a0   :  { %v1418_v15 = vpop.permute.xlu2 %1417  ;;  %v1405_v53 = vsel %vm223_vm6, %v1402_v39, %v1404_v32  ;;  %v1406_v19 = vsel %vm223_vm6, %v1404_v32, %v1402_v39 }
 0x5a1   :  { %v1407_v29 = vmul.f32 %v1406_v19, %v2253_v16  ;;  %v1408_v57 = vmul.f32 %v1405_v53, %v2256_v18 }
 0x5a3   :  { %v1410_v0 = vmul.f32 %v1409_v61, %v1407_v29  ;;  %v1411_v44 = vmul.f32 %v1409_v61, %v1408_v57 }
 0x5a5   :  { %v1412_v38 = vadd.f32 %v1410_v0, %v1398_v17  ;;  %v1413_v59 = vadd.f32 %v1411_v44, %v1399_v51 }
 0x5a7   :  { %v1581_v12 = vpop.permute.xlu0 %1580  ;;  %v1416_v26 = vpop.permute.xlu1 %1415 }
 0x5a8   :  { %v1582_v30 = vsel %vm851_vm13, %v1579_v35, %v1581_v12  ;;  %v1583_v24 = vsel %vm851_vm13, %v1581_v12, %v1579_v35  ;;  %v1419_v62 = vsel %vm240_vm7, %v1416_v26, %v1418_v15  ;;  %v1420_v10 = vsel %vm240_vm7, %v1418_v15, %v1416_v26  ;;  %v1452_v36 = vpop.permute.xlu2 %1451 }
 0x5a9   :  { %v3223_v60 = vmul.f32 %v1582_v30, %v854_v50  ;;  %v3227_v40 = vmul.f32 %v1583_v24, %v855_v27  ;;  %v1421_v2 = vmul.f32 %v1420_v10, %v2267_v33  ;;  %v1422_v63 = vmul.f32 %v1419_v62, %v2270_v56 }
 0x5aa   :  { %v1432_v50 = vmul.f32 %v1431_v48, %v1429_v34  ;;  %v1433_v27 = vmul.f32 %v1431_v48, %v1430_v22  ;;  %v1445_v35 = vstv %s1784_s22 }
 0x5ab   :  { %v1424_v58 = vmul.f32 %v1423_v54, %v1421_v2  ;;  %v1425_v14 = vmul.f32 %v1423_v54, %v1422_v63  ;;  %1589 = vrot.lane.b32.xlu1 %v3227_v40, %s1949_s15  ;;  %1601 = vrot.lane.b32.xlu2 %v3223_v60, %s1950_s16 }
 0x5ac   :  { %1587 = vrot.lane.b32.xlu0 %v3223_v60, %s1949_s15  ;;  %s1785_s15 = sld [smem:[#allocation3 + $0x52]] }
 0x5ad   :  { %v1426_v49 = vadd.f32 %v1424_v58, %v1412_v38  ;;  %v1427_v28 = vadd.f32 %v1425_v14, %v1413_v59 }
 0x5af   :  { %v1438_v13 = vpop.permute.xlu0 %1437  ;;  %v1440_v11 = vpop.permute.xlu1 %1439  ;;  %v1434_v42 = vadd.f32 %v1432_v50, %v1426_v49  ;;  %v1435_v23 = vadd.f32 %v1433_v27, %v1427_v28 }
 0x5b0   :  { %v1468_v37 = vpop.permute.xlu2 %1467  ;;  %v1441_v25 = vsel %vm267_vm8, %v1438_v13, %v1440_v11  ;;  %v1442_v52 = vsel %vm267_vm8, %v1440_v11, %v1438_v13  ;;  %v1509_v13 = vstv %s3269_s23 }
 0x5b1   :  { %v1443_v17 = vmul.f32 %v1441_v25, %v2300_v3  ;;  %v1444_v51 = vmul.f32 %v1442_v52, %v2303_v47 }
 0x5b2   :  { %v1459_v61 = vstv %s1785_s15 }
 0x5b3   :  { %1615 = vrot.lane.b32.xlu1 %v3223_v60, %s1951_s17  ;;  %1617 = vrot.lane.b32.xlu2 %v3227_v40, %s1951_s17  ;;  %s3259_s17 = sld [smem:[#allocation3 + $0x54]]  ;;  %v1446_v53 = vmul.f32 %v1445_v35, %v1443_v17  ;;  %v1447_v19 = vmul.f32 %v1445_v35, %v1444_v51 }
 0x5b4   :  { %1603 = vrot.lane.b32.xlu0 %v3227_v40, %s1950_s16  ;;  %s3253_s16 = sld [smem:[#allocation3 + $0x53]] }
 0x5b5   :  { %v1448_v26 = vadd.f32 %v1446_v53, %v1434_v42  ;;  %v1449_v34 = vadd.f32 %v1447_v19, %v1435_v23  ;;  %v1523_v23 = vstv %s3271_s0 }
 0x5b7   :  { %v1454_v20 = vpop.permute.xlu0 %1453  ;;  %v1466_v21 = vpop.permute.xlu1 %1465 }
 0x5b8   :  { %v1455_v9 = vsel %vm284_vm9, %v1452_v36, %v1454_v20  ;;  %v1456_v45 = vsel %vm284_vm9, %v1454_v20, %v1452_v36  ;;  %v1502_v15 = vpop.permute.xlu2 %1501  ;;  %v1469_v29 = vsel %vm301_vm10, %v1466_v21, %v1468_v37  ;;  %v1470_v57 = vsel %vm301_vm10, %v1468_v37, %v1466_v21 }
 0x5b9   :  { %v1457_v39 = vmul.f32 %v1455_v9, %v2328_v8  ;;  %v1458_v32 = vmul.f32 %v1456_v45, %v2331_v41  ;;  %v1471_v22 = vmul.f32 %v1469_v29, %v2322_v55  ;;  %v1472_v30 = vmul.f32 %v1470_v57, %v2325_v6 }
 0x5ba   :  { %v1473_v24 = vstv %s3253_s16  ;;  %v1495_v63 = vstv %s3259_s17 }
 0x5bb   :  { %1639 = vrot.lane.b32.xlu1 %v3227_v40, %s1952_s18  ;;  %1651 = vrot.lane.b32.xlu2 %v3223_v60, %s1953_s19  ;;  %v1460_v0 = vmul.f32 %v1459_v61, %v1457_v39  ;;  %v1461_v44 = vmul.f32 %v1459_v61, %v1458_v32  ;;  %v1474_v48 = vmul.f32 %v1473_v24, %v1471_v22 }
 0x5bc   :  { %1637 = vrot.lane.b32.xlu0 %v3223_v60, %s1952_s18  ;;  %s3289_s18 = sld [smem:[#allocation3 + $0x57]]  ;;  %v1475_v58 = vmul.f32 %v1473_v24, %v1472_v30  ;;  %v1529_v39 = vmul.f32 %v3163_v31, %v2021_v43  ;;  %v1530_v32 = vmul.f32 %v3167_v1, %v2025_v46 }
 0x5bd   :  { %v1462_v36 = vadd.f32 %v1460_v0, %v1448_v26  ;;  %v1463_v2 = vadd.f32 %v1461_v44, %v1449_v34 }
 0x5bf   :  { %v1488_v38 = vpop.permute.xlu0 %1487  ;;  %v1490_v59 = vpop.permute.xlu1 %1489  ;;  %v1476_v50 = vadd.f32 %v1474_v48, %v1462_v36  ;;  %v1477_v27 = vadd.f32 %v1475_v58, %v1463_v2 }
 0x5c0   :  { %v1491_v12 = vsel %vm206_vm5, %v1488_v38, %v1490_v59  ;;  %v1492_v54 = vsel %vm206_vm5, %v1490_v59, %v1488_v38  ;;  %v1518_v14 = vpop.permute.xlu2 %1517 }
 0x5c1   :  { %v1493_v62 = vmul.f32 %v1492_v54, %v2238_v5  ;;  %v1494_v10 = vmul.f32 %v1491_v12, %v2235_v4 }
 0x5c2   :  { %v1531_v29 = vstv %s3289_s18 }
 0x5c3   :  { %1665 = vrot.lane.b32.xlu1 %v3223_v60, %s1954_s20  ;;  %1667 = vrot.lane.b32.xlu2 %v3227_v40, %s1954_s20  ;;  %v1496_v49 = vmul.f32 %v1495_v63, %v1493_v62  ;;  %v1497_v28 = vmul.f32 %v1495_v63, %v1494_v10  ;;  %v1532_v59 = vmul.f32 %v1531_v29, %v1529_v39  ;;  %s1792_s20 = sld [smem:[#allocation3 + $0x59]] }
 0x5c4   :  { %1653 = vrot.lane.b32.xlu0 %v3227_v40, %s1953_s19  ;;  %v1533_v12 = vmul.f32 %v1531_v29, %v1530_v32  ;;  %s1791_s19 = sld [smem:[#allocation3 + $0x58]] }
 0x5c5   :  { %v1498_v51 = vadd.f32 %v1496_v49, %v1476_v50  ;;  %v1499_v35 = vadd.f32 %v1497_v28, %v1477_v27 }
 0x5c7   :  { %v1504_v11 = vpop.permute.xlu0 %1503  ;;  %v1516_v42 = vpop.permute.xlu1 %1515 }
 0x5c8   :  { %v1505_v37 = vsel %vm223_vm6, %v1502_v15, %v1504_v11  ;;  %v1506_v25 = vsel %vm223_vm6, %v1504_v11, %v1502_v15  ;;  %v1519_v52 = vsel %vm240_vm7, %v1516_v42, %v1518_v14  ;;  %v1520_v20 = vsel %vm240_vm7, %v1518_v14, %v1516_v42  ;;  %v1552_v34 = vpop.permute.xlu2 %1551 }
 0x5c9   :  { %v1507_v21 = vmul.f32 %v1506_v25, %v2253_v16  ;;  %v1508_v9 = vmul.f32 %v1505_v37, %v2256_v18  ;;  %v1521_v45 = vmul.f32 %v1520_v20, %v2267_v33  ;;  %v1522_v17 = vmul.f32 %v1519_v52, %v2270_v56 }
 0x5ca   :  { %v1545_v63 = vstv %s1791_s19  ;;  %v1559_v50 = vstv %s1792_s20  ;;  %v1573_v20 = vstv %s3317_s24 }
 0x5cb   :  { %v1510_v15 = vmul.f32 %v1509_v13, %v1507_v21  ;;  %v1511_v61 = vmul.f32 %v1509_v13, %v1508_v9  ;;  %v1524_v53 = vmul.f32 %v1523_v23, %v1521_v45  ;;  %v1525_v19 = vmul.f32 %v1523_v23, %v1522_v17 }
 0x5cd   :  { %v1512_v57 = vadd.f32 %v1510_v15, %v1498_v51  ;;  %v1513_v0 = vadd.f32 %v1511_v61, %v1499_v35 }
 0x5cf   :  { %v1526_v44 = vadd.f32 %v1524_v53, %v1512_v57  ;;  %v1527_v38 = vadd.f32 %v1525_v19, %v1513_v0  ;;  %v1538_v22 = vpop.permute.xlu0 %1537  ;;  %v1540_v30 = vpop.permute.xlu1 %1539  ;;  %v1595_v57 = vstv %s1794_s25 }
 0x5d0   :  { %v1568_v31 = vpop.permute.xlu2 %1567  ;;  %v1541_v1 = vsel %vm267_vm8, %v1538_v22, %v1540_v30  ;;  %v1542_v10 = vsel %vm267_vm8, %v1540_v30, %v1538_v22 }
 0x5d1   :  { %v1534_v54 = vadd.f32 %v1532_v59, %v1526_v44  ;;  %v1535_v26 = vadd.f32 %v1533_v12, %v1527_v38  ;;  %v1543_v36 = vmul.f32 %v1541_v1, %v2300_v3  ;;  %v1544_v14 = vmul.f32 %v1542_v10, %v2303_v47 }
 0x5d2   :  { %v1629_v10 = vmul.f32 %v3223_v60, %v2021_v43 }
 0x5d3   :  { %v1546_v28 = vmul.f32 %v1545_v63, %v1543_v36  ;;  %v1547_v42 = vmul.f32 %v1545_v63, %v1544_v14  ;;  %v1630_v36 = vmul.f32 %v3227_v40, %v2025_v46 }
 0x5d5   :  { %v1548_v52 = vadd.f32 %v1546_v28, %v1534_v54  ;;  %v1549_v35 = vadd.f32 %v1547_v42, %v1535_v26 }
 0x5d7   :  { %v1554_v24 = vpop.permute.xlu0 %1553  ;;  %v1566_v62 = vpop.permute.xlu1 %1565 }
 0x5d8   :  { %v1555_v2 = vsel %vm284_vm9, %v1552_v34, %v1554_v24  ;;  %v1556_v58 = vsel %vm284_vm9, %v1554_v24, %v1552_v34  ;;  %v1569_v27 = vsel %vm301_vm10, %v1566_v62, %v1568_v31  ;;  %v1570_v11 = vsel %vm301_vm10, %v1568_v31, %v1566_v62 }
 0x5d9   :  { %v1557_v49 = vmul.f32 %v1555_v2, %v2328_v8  ;;  %v1558_v13 = vmul.f32 %v1556_v58, %v2331_v41  ;;  %v1571_v37 = vmul.f32 %v1569_v27, %v2322_v55  ;;  %v1572_v45 = vmul.f32 %v1570_v11, %v2325_v6 }
 0x5da   :  { %v1609_v34 = vstv %s3335_s26  ;;  %v1623_v62 = vstv %s3337_s27 }
 0x5db   :  { %v1560_v23 = vmul.f32 %v1559_v50, %v1557_v49  ;;  %v1561_v9 = vmul.f32 %v1559_v50, %v1558_v13  ;;  %v1574_v32 = vmul.f32 %v1573_v20, %v1571_v37  ;;  %v1575_v29 = vmul.f32 %v1573_v20, %v1572_v45 }
 0x5dc   :  { %v1645_v37 = vstv %s1798_s21 }
 0x5dd   :  { %v1562_v39 = vadd.f32 %v1560_v23, %v1548_v52  ;;  %v1563_v19 = vadd.f32 %v1561_v9, %v1549_v35 }
 0x5df   :  { %v1576_v0 = vadd.f32 %v1574_v32, %v1562_v39 }
 0x605   :  { %v1602_v48 = vpop.permute.xlu2 %1601 }
 0x60d   :  { %v1618_v15 = vpop.permute.xlu2 %1617 }
 0x61d   :  { %v1590_v25 = vpop.permute.xlu1 %1589 }
 0x61e   :  { %v1588_v21 = vpop.permute.xlu0 %1587 }
 0x61f   :  { %v1591_v17 = vsel %vm206_vm5, %v1588_v21, %v1590_v25  ;;  %v1592_v51 = vsel %vm206_vm5, %v1590_v25, %v1588_v21 }
 0x620   :  { %v1593_v61 = vmul.f32 %v1592_v51, %v2238_v5  ;;  %v1594_v53 = vmul.f32 %v1591_v17, %v2235_v4  ;;  %v1577_v5 = vadd.f32 %v1575_v29, %v1563_v19  ;;  %v1659_v51 = vstv %s1799_s1 }
 0x622   :  { %v1596_v38 = vmul.f32 %v1595_v57, %v1593_v61  ;;  %v1597_v59 = vmul.f32 %v1595_v57, %v1594_v53  ;;  %v1673_v53 = vstv %s1800_s29 }
 0x624   :  { %v1598_v2 = vadd.f32 %v1596_v38, %v1576_v0  ;;  %v1599_v63 = vadd.f32 %v1597_v59, %v1577_v5 }
 0x625   :  { %v1616_v44 = vpop.permute.xlu1 %1615 }
 0x626   :  { %v1604_v12 = vpop.permute.xlu0 %1603  ;;  %v1619_v54 = vsel %vm240_vm7, %v1616_v44, %v1618_v15  ;;  %v1620_v26 = vsel %vm240_vm7, %v1618_v15, %v1616_v44 }
 0x627   :  { %v1605_v4 = vsel %vm223_vm6, %v1602_v48, %v1604_v12  ;;  %v1606_v22 = vsel %vm223_vm6, %v1604_v12, %v1602_v48  ;;  %v1621_v1 = vmul.f32 %v1620_v26, %v2267_v33  ;;  %v1622_v24 = vmul.f32 %v1619_v54, %v2270_v56  ;;  %v1652_v48 = vpop.permute.xlu2 %1651 }
 0x628   :  { %v1607_v30 = vmul.f32 %v1606_v22, %v2253_v16  ;;  %v1608_v31 = vmul.f32 %v1605_v4, %v2256_v18  ;;  %v1631_v16 = vstv %s3341_s28 }
 0x629   :  { %v1624_v28 = vmul.f32 %v1623_v62, %v1621_v1  ;;  %v1625_v33 = vmul.f32 %v1623_v62, %v1622_v24  ;;  %v1632_v11 = vmul.f32 %v1631_v16, %v1629_v10  ;;  %v1633_v43 = vmul.f32 %v1631_v16, %v1630_v36 }
 0x62a   :  { %v1610_v58 = vmul.f32 %v1609_v34, %v1607_v30  ;;  %v1611_v14 = vmul.f32 %v1609_v34, %v1608_v31 }
 0x62c   :  { %v1612_v49 = vadd.f32 %v1610_v58, %v1598_v2  ;;  %v1613_v18 = vadd.f32 %v1611_v14, %v1599_v63 }
 0x62d   :  { %v1640_v50 = vpop.permute.xlu1 %1639 }
 0x62e   :  { %v1626_v56 = vadd.f32 %v1624_v28, %v1612_v49  ;;  %v1627_v27 = vadd.f32 %v1625_v33, %v1613_v18  ;;  %v1638_v13 = vpop.permute.xlu0 %1637 }
 0x62f   :  { %v1641_v46 = vsel %vm267_vm8, %v1638_v13, %v1640_v50  ;;  %v1642_v60 = vsel %vm267_vm8, %v1640_v50, %v1638_v13  ;;  %v1668_v52 = vpop.permute.xlu2 %1667 }
 0x630   :  { %v1634_v40 = vadd.f32 %v1632_v11, %v1626_v56  ;;  %v1635_v42 = vadd.f32 %v1633_v43, %v1627_v27  ;;  %v1643_v23 = vmul.f32 %v1641_v46, %v2300_v3  ;;  %v1644_v25 = vmul.f32 %v1642_v60, %v2303_v47 }
 0x632   :  { %v1646_v20 = vmul.f32 %v1645_v37, %v1643_v23  ;;  %v1647_v9 = vmul.f32 %v1645_v37, %v1644_v25 }
 0x634   :  { %v1648_v61 = vadd.f32 %v1646_v20, %v1634_v40  ;;  %v1649_v19 = vadd.f32 %v1647_v9, %v1635_v42 }
 0x635   :  { %v1666_v21 = vpop.permute.xlu1 %1665 }
 0x636   :  { %v1654_v45 = vpop.permute.xlu0 %1653  ;;  %v1670_v17 = vsel %vm301_vm10, %v1668_v52, %v1666_v21  ;;  %v1669_v3 = vsel %vm301_vm10, %v1666_v21, %v1668_v52 }
 0x637   :  { %v1655_v35 = vsel %vm284_vm9, %v1652_v48, %v1654_v45  ;;  %v1656_v39 = vsel %vm284_vm9, %v1654_v45, %v1652_v48  ;;  %v1672_v15 = vmul.f32 %v1670_v17, %v2325_v6  ;;  %v1671_v0 = vmul.f32 %v1669_v3, %v2322_v55 }
 0x638   :  { %v1657_v47 = vmul.f32 %v1655_v35, %v2328_v8  ;;  %v1658_v32 = vmul.f32 %v1656_v39, %v2331_v41 }
 0x639   :  { %v1675_v59 = vmul.f32 %v1673_v53, %v1672_v15  ;;  %v1674_v12 = vmul.f32 %v1673_v53, %v1671_v0 }
 0x63a   :  { %v1660_v29 = vmul.f32 %v1659_v51, %v1657_v47  ;;  %v1661_v57 = vmul.f32 %v1659_v51, %v1658_v32 }
 0x63c   :  { %v1662_v44 = vadd.f32 %v1660_v29, %v1648_v61  ;;  %v1663_v38 = vadd.f32 %v1661_v57, %v1649_v19 }
 0x63e   :  { %v1677_v54 = vadd.f32 %v1675_v59, %v1663_v38  ;;  %v1676_v7 = vadd.f32 %v1674_v12, %v1662_v44 }
 0x640   :  { %v1680_v6 = vrot.slane %v1677_v54, 6 }
 0x642   :  { %v1682_v8 = vsel %vm1681_vm14, %v1676_v7, %v1680_v6 }
 0x643   :  { %1684 = vst [vmem:[#allocation11] sm:$0xf] %v1682_v8 }
 0x644   :  { %1695 = dma.vmem_to_hbm [thread:$0]  %s1691_s30, 64, %s1693_s7, [#allocation5]  }
 0x645   :  { %1937 = dma.done.wait [#allocation5], 64  }
 0x646   :  { %1938 = vsyncadd [#allocation5], 4294967232 }
 0x647   :  { %1700 = vsyncpa [#allocation4], 1 }
 0x648   :  { %1701 = vsyncpa [#allocation9], 1 }
 0x649   :  { %1702 = vsyncpa [#allocation5], 1 }
 0x64a   :  { %1703 = vsyncpa [#allocation6], 1 }

</bundles_post_ra>
